<compile_context>
chip_gen: v7x
topology: tpu7x:2x2x1
jax: 0.10.0
libtpu: 0.0.40
codegen_flags: <defaults>
</compile_context>

<pallas_src>
import functools

import numpy as np
import jax
import jax.numpy as jnp
from jax import lax
from jax.experimental import pallas as pl
from jax.experimental.pallas import tpu as pltpu


def _basic_block_kernel(C, HW, shifts, x_ref, w1_ref, w2_ref, mask_ref,
                        seg_ref, segT_ref, o_ref, stk_ref):
    f32 = jnp.float32
    x = x_ref[...].astype(f32)                      # (C, N), N = Bt*HW
    masks = mask_ref[...]                           # (9, N) f32, host-precomputed
    seg = seg_ref[...]                              # (N, Bt) per-image indicator
    segT = segT_ref[...]                            # (Bt, N)

    def conv3x3(h, w_ref):
        # Write the 9 shifted+masked windows straight into the bf16 VMEM
        # scratch (no concatenate copy), then contract with the (C, 9C) bf16
        # weight in a single MXU matmul with f32 accumulation.
        for t in range(9):
            s = shifts[t]
            if s == 0:
                win = h                              # center tap: no roll, no mask
            else:
                win = pltpu.roll(h, shift=s, axis=1) * masks[t:t + 1, :]
            stk_ref[pl.ds(t * C, C), :] = win.astype(jnp.bfloat16)
        return jnp.dot(w_ref[...], stk_ref[...], preferred_element_type=f32)

    inv_n = 1.0 / HW
    eps = 1e-5

    def inorm(h):
        # Per-image InstanceNorm on the concatenated slab. Row reductions and
        # broadcast-back both use the (otherwise idle) MXU via the segment
        # matrices; two-pass statistics for numerical robustness.
        mu = jnp.dot(h, seg, preferred_element_type=f32) * inv_n         # (C, Bt)
        mu_full = jnp.dot(mu, segT, preferred_element_type=f32)          # (C, N)
        hc = h - mu_full
        var = jnp.dot(hc * hc, seg, preferred_element_type=f32) * inv_n  # (C, Bt)
        scale_full = jnp.dot(lax.rsqrt(var + eps), segT,
                             preferred_element_type=f32)                 # (C, N)
        return hc * scale_full

    h = jnp.maximum(inorm(conv3x3(x, w1_ref)), 0.0)   # conv1 -> bn1 -> relu
    h = inorm(conv3x3(h, w2_ref))                     # conv2 -> bn2
    o_ref[...] = jnp.maximum(h + x, 0.0).astype(o_ref.dtype)  # + residual, relu


def _pick_block_batch(B, C, HW, vmem_budget=20 << 20):
    """Largest Bt that divides B, keeps >=2 grid steps (v7x megacore), keeps
    the blocks lane-dense, and fits the per-step VMEM footprint."""
    best = 1
    for bt in range(1, max(1, B // 2) + 1):
        if B % bt:
            continue
        n = bt * HW
        if n % 128 != 0:                      # keep output blocks lane-dense / legal
            continue
        # x + out blocks (double-buffered f32) + bf16 window stack + f32 temps
        footprint = 2 * 2 * C * n * 4 + 9 * C * n * 2 + 4 * C * n * 4
        if footprint <= vmem_budget:
            best = bt
    if best == 1 and B > 1 and HW % 128 != 0:
        best = B                               # single full-array block stays legal
    return best


def basic_block_instance_norm(x, conv1_w, conv2_w, *, block_batch=None):
    """x: (B, C, H, W) f32; conv*_w: (C, C, 3, 3) PyTorch OIHW, bias=False."""
    B, C, H, W = x.shape
    HW = H * W
    Bt = block_batch if block_batch is not None else _pick_block_batch(B, C, HW)
    assert B % Bt == 0
    N = Bt * HW
    G = B // Bt

    # ---- host-side layout plumbing: (B,C,H,W) -> image-major columns (C, B*HW)
    x2d = x.reshape(B, C, HW).transpose(1, 0, 2).reshape(C, B * HW)

    # OIHW -> (O, Kh*Kw*I): tap-major / in-channel-minor, bf16 MXU operands.
    w1_2d = conv1_w.transpose(0, 2, 3, 1).reshape(C, 9 * C).astype(jnp.bfloat16)
    w2_2d = conv2_w.transpose(0, 2, 3, 1).reshape(C, 9 * C).astype(jnp.bfloat16)

    # ---- host-precomputed tap shifts, boundary masks and IN segment matrices
    p = np.arange(HW)
    row, col = p // W, p % W
    masks, shifts = [], []
    for ky in range(3):
        for kx in range(3):
            dy, dx = ky - 1, kx - 1
            masks.append((row + dy >= 0) & (row + dy < H) &
                         (col + dx >= 0) & (col + dx < W))
            shifts.append((-(dy * W + dx)) % N)
    masks = np.tile(np.stack(masks).astype(np.float32), (1, Bt))        # (9, N)
    seg = (np.arange(N)[:, None] // HW ==
           np.arange(Bt)[None, :]).astype(np.float32)                   # (N, Bt)
    segT = np.ascontiguousarray(seg.T)                                  # (Bt, N)

    kernel = functools.partial(_basic_block_kernel, C, HW, tuple(shifts))

    out2d = pl.pallas_call(
        kernel,
        out_shape=jax.ShapeDtypeStruct((C, B * HW), x.dtype),
        grid=(G,),
        in_specs=[
            pl.BlockSpec((C, N), lambda g: (0, g)),       # x slab (Bt images)
            pl.BlockSpec((C, 9 * C), lambda g: (0, 0)),   # conv1 weight (resident)
            pl.BlockSpec((C, 9 * C), lambda g: (0, 0)),   # conv2 weight (resident)
            pl.BlockSpec((9, N), lambda g: (0, 0)),       # boundary masks (resident)
            pl.BlockSpec((N, Bt), lambda g: (0, 0)),      # IN segment reducer
            pl.BlockSpec((Bt, N), lambda g: (0, 0)),      # IN segment broadcaster
        ],
        out_specs=pl.BlockSpec((C, N), lambda g: (0, g)),
        scratch_shapes=[pltpu.VMEM((9 * C, N), jnp.bfloat16)],
        compiler_params=pltpu.CompilerParams(
            dimension_semantics=("parallel",),
            vmem_limit_bytes=32 * 1024 * 1024,
        ),
    )(x2d, w1_2d, w2_2d, jnp.asarray(masks), jnp.asarray(seg), jnp.asarray(segT))

    return out2d.reshape(C, B, HW).transpose(1, 0, 2).reshape(B, C, H, W)


# ---------------------- pure-JAX reference (for checking) -------------------
def _ref_forward(x, conv1_w, conv2_w, conv_dtype=jnp.float32):
    """conv_dtype=bfloat16 mirrors the kernel's MXU operand rounding
    (accumulation stays f32); float32 is the exact PyTorch semantics."""
    def inorm(h):
        mu = h.mean(axis=(2, 3), keepdims=True)
        var = ((h - mu) ** 2).mean(axis=(2, 3), keepdims=True)
        return (h - mu) / jnp.sqrt(var + 1e-5)

    def conv(h, w):
        return lax.conv_general_dilated(
            h.astype(conv_dtype), w.astype(conv_dtype),
            window_strides=(1, 1), padding=((1, 1), (1, 1)),
            dimension_numbers=("NCHW", "OIHW", "NCHW"),
            preferred_element_type=jnp.float32)

    out = jax.nn.relu(inorm(conv(x, conv1_w)))
    out = inorm(conv(out, conv2_w))
    return jax.nn.relu(out + x)


if __name__ == "__main__":
    key = jax.random.PRNGKey(0)
    k0, k1, k2 = jax.random.split(key, 3)

    def init(k, shape, fan_in):
        return (jax.random.normal(k, shape, jnp.float32) /
                jnp.sqrt(jnp.float32(fan_in)))

    C, H, W = 32, 16, 16                      # inplanes = planes = 32, stride = 1
    conv1_w = init(k1, (C, C, 3, 3), C * 9)
    conv2_w = init(k2, (C, C, 3, 3), C * 9)

    for B in (4, 2):                          # exercises Bt=2 (batched) and Bt=1
        x = jax.random.normal(jax.random.fold_in(k0, B), (B, C, H, W), jnp.float32)
        out = basic_block_instance_norm(x, conv1_w, conv2_w)
        jax.block_until_ready(out)
        assert out.shape == x.shape

        # Tight check vs a reference with identically-rounded bf16 conv operands.
        ref_bf16 = _ref_forward(x, conv1_w, conv2_w, conv_dtype=jnp.bfloat16)
        err_tight = float(jnp.max(jnp.abs(out - ref_bf16)))
        assert err_tight < 1e-2, f"B={B}: max abs error vs bf16 ref {err_tight}"

        # Loose sanity check vs the pure-f32 (PyTorch-equivalent) reference.
        ref_f32 = _ref_forward(x, conv1_w, conv2_w, conv_dtype=jnp.float32)
        err_loose = float(jnp.max(jnp.abs(out - ref_f32)))
        assert err_loose < 1e-1, f"B={B}: max abs error vs f32 ref {err_loose}"

    print("KERNEL_OK")
</pallas_src>

<mosaic_0001>
module attributes {stable_mosaic.version = 11 : i64} {
  func.func @_basic_block_kernel(%arg0: i32, %arg1: memref<32x512xf32, #tpu.memory_space<vmem>>, %arg2: memref<32x288xbf16, #tpu.memory_space<vmem>>, %arg3: memref<32x288xbf16, #tpu.memory_space<vmem>>, %arg4: memref<9x512xf32, #tpu.memory_space<vmem>>, %arg5: memref<512x2xf32, #tpu.memory_space<vmem>>, %arg6: memref<2x512xf32, #tpu.memory_space<vmem>>, %arg7: memref<32x512xf32, #tpu.memory_space<vmem>>, %arg8: memref<288x512xbf16, #tpu.memory_space<vmem>>) attributes {dimension_semantics = [#tpu.dimension_semantics<parallel>], iteration_bounds = array<i64: 2>, scalar_prefetch = 0 : i64, scratch_operands = 1 : i64, tpu.core_type = #tpu.core_type<tc>, window_params = [{transform_indices = @transform_0, window_bounds = array<i64: 32, 512>}, {pipeline_mode = #tpu.pipeline_mode<synchronous>, transform_indices = @transform_1, window_bounds = array<i64: 32, 288>}, {pipeline_mode = #tpu.pipeline_mode<synchronous>, transform_indices = @transform_2, window_bounds = array<i64: 32, 288>}, {pipeline_mode = #tpu.pipeline_mode<synchronous>, transform_indices = @transform_3, window_bounds = array<i64: 9, 512>}, {pipeline_mode = #tpu.pipeline_mode<synchronous>, transform_indices = @transform_4, window_bounds = array<i64: 512, 2>}, {pipeline_mode = #tpu.pipeline_mode<synchronous>, transform_indices = @transform_5, window_bounds = array<i64: 2, 512>}, {transform_indices = @transform_6, window_bounds = array<i64: 32, 512>}]} {
    %c0 = arith.constant 0 : index
    %c0_0 = arith.constant 0 : index
    %0 = vector.load %arg1[%c0, %c0_0] : memref<32x512xf32, #tpu.memory_space<vmem>>, vector<32x512xf32>
    %c0_1 = arith.constant 0 : index
    %c0_2 = arith.constant 0 : index
    %1 = vector.load %arg4[%c0_1, %c0_2] : memref<9x512xf32, #tpu.memory_space<vmem>>, vector<9x512xf32>
    %c0_3 = arith.constant 0 : index
    %c0_4 = arith.constant 0 : index
    %2 = vector.load %arg5[%c0_3, %c0_4] : memref<512x2xf32, #tpu.memory_space<vmem>>, vector<512x2xf32>
    %c0_5 = arith.constant 0 : index
    %c0_6 = arith.constant 0 : index
    %3 = vector.load %arg6[%c0_5, %c0_6] : memref<2x512xf32, #tpu.memory_space<vmem>>, vector<2x512xf32>
    %c17_i32 = arith.constant 17 : i32
    %4 = tpu.dynamic_rotate %0 by %c17_i32 dim 1 : vector<32x512xf32>, i32 -> vector<32x512xf32>
    %5 = vector.extract_strided_slice %1 {offsets = [0, 0], sizes = [1, 512], strides = [1, 1]} : vector<9x512xf32> to vector<1x512xf32>
    %6 = vector.broadcast %5 : vector<1x512xf32> to vector<32x512xf32>
    %7 = arith.mulf %4, %6 : vector<32x512xf32>
    %8 = arith.truncf %7 : vector<32x512xf32> to vector<32x512xbf16>
    %c0_7 = arith.constant 0 : index
    %c0_8 = arith.constant 0 : index
    %9 = vector.load %arg8[%c0_7, %c0_8] : memref<288x512xbf16, #tpu.memory_space<vmem>>, vector<32x512xbf16>
    tpu.vector_store %arg8[%c0_7, %c0_8], %8 {strides = array<i32>} : memref<288x512xbf16, #tpu.memory_space<vmem>>, vector<32x512xbf16>,
    %c16_i32 = arith.constant 16 : i32
    %10 = tpu.dynamic_rotate %0 by %c16_i32 dim 1 : vector<32x512xf32>, i32 -> vector<32x512xf32>
    %11 = vector.extract_strided_slice %1 {offsets = [1, 0], sizes = [1, 512], strides = [1, 1]} : vector<9x512xf32> to vector<1x512xf32>
    %12 = vector.broadcast %11 : vector<1x512xf32> to vector<32x512xf32>
    %13 = arith.mulf %10, %12 : vector<32x512xf32>
    %14 = arith.truncf %13 : vector<32x512xf32> to vector<32x512xbf16>
    %c32 = arith.constant 32 : index
    %c0_9 = arith.constant 0 : index
    %15 = vector.load %arg8[%c32, %c0_9] : memref<288x512xbf16, #tpu.memory_space<vmem>>, vector<32x512xbf16>
    tpu.vector_store %arg8[%c32, %c0_9], %14 {strides = array<i32>} : memref<288x512xbf16, #tpu.memory_space<vmem>>, vector<32x512xbf16>,
    %c15_i32 = arith.constant 15 : i32
    %16 = tpu.dynamic_rotate %0 by %c15_i32 dim 1 : vector<32x512xf32>, i32 -> vector<32x512xf32>
    %17 = vector.extract_strided_slice %1 {offsets = [2, 0], sizes = [1, 512], strides = [1, 1]} : vector<9x512xf32> to vector<1x512xf32>
    %18 = vector.broadcast %17 : vector<1x512xf32> to vector<32x512xf32>
    %19 = arith.mulf %16, %18 : vector<32x512xf32>
    %20 = arith.truncf %19 : vector<32x512xf32> to vector<32x512xbf16>
    %c64 = arith.constant 64 : index
    %c0_10 = arith.constant 0 : index
    %21 = vector.load %arg8[%c64, %c0_10] : memref<288x512xbf16, #tpu.memory_space<vmem>>, vector<32x512xbf16>
    tpu.vector_store %arg8[%c64, %c0_10], %20 {strides = array<i32>} : memref<288x512xbf16, #tpu.memory_space<vmem>>, vector<32x512xbf16>,
    %c1_i32 = arith.constant 1 : i32
    %22 = tpu.dynamic_rotate %0 by %c1_i32 dim 1 : vector<32x512xf32>, i32 -> vector<32x512xf32>
    %23 = vector.extract_strided_slice %1 {offsets = [3, 0], sizes = [1, 512], strides = [1, 1]} : vector<9x512xf32> to vector<1x512xf32>
    %24 = vector.broadcast %23 : vector<1x512xf32> to vector<32x512xf32>
    %25 = arith.mulf %22, %24 : vector<32x512xf32>
    %26 = arith.truncf %25 : vector<32x512xf32> to vector<32x512xbf16>
    %c96 = arith.constant 96 : index
    %c0_11 = arith.constant 0 : index
    %27 = vector.load %arg8[%c96, %c0_11] : memref<288x512xbf16, #tpu.memory_space<vmem>>, vector<32x512xbf16>
    tpu.vector_store %arg8[%c96, %c0_11], %26 {strides = array<i32>} : memref<288x512xbf16, #tpu.memory_space<vmem>>, vector<32x512xbf16>,
    %28 = arith.truncf %0 : vector<32x512xf32> to vector<32x512xbf16>
    %c128 = arith.constant 128 : index
    %c0_12 = arith.constant 0 : index
    %29 = vector.load %arg8[%c128, %c0_12] : memref<288x512xbf16, #tpu.memory_space<vmem>>, vector<32x512xbf16>
    tpu.vector_store %arg8[%c128, %c0_12], %28 {strides = array<i32>} : memref<288x512xbf16, #tpu.memory_space<vmem>>, vector<32x512xbf16>,
    %c511_i32 = arith.constant 511 : i32
    %30 = tpu.dynamic_rotate %0 by %c511_i32 dim 1 : vector<32x512xf32>, i32 -> vector<32x512xf32>
    %31 = vector.extract_strided_slice %1 {offsets = [5, 0], sizes = [1, 512], strides = [1, 1]} : vector<9x512xf32> to vector<1x512xf32>
    %32 = vector.broadcast %31 : vector<1x512xf32> to vector<32x512xf32>
    %33 = arith.mulf %30, %32 : vector<32x512xf32>
    %34 = arith.truncf %33 : vector<32x512xf32> to vector<32x512xbf16>
    %c160 = arith.constant 160 : index
    %c0_13 = arith.constant 0 : index
    %35 = vector.load %arg8[%c160, %c0_13] : memref<288x512xbf16, #tpu.memory_space<vmem>>, vector<32x512xbf16>
    tpu.vector_store %arg8[%c160, %c0_13], %34 {strides = array<i32>} : memref<288x512xbf16, #tpu.memory_space<vmem>>, vector<32x512xbf16>,
    %c497_i32 = arith.constant 497 : i32
    %36 = tpu.dynamic_rotate %0 by %c497_i32 dim 1 : vector<32x512xf32>, i32 -> vector<32x512xf32>
    %37 = vector.extract_strided_slice %1 {offsets = [6, 0], sizes = [1, 512], strides = [1, 1]} : vector<9x512xf32> to vector<1x512xf32>
    %38 = vector.broadcast %37 : vector<1x512xf32> to vector<32x512xf32>
    %39 = arith.mulf %36, %38 : vector<32x512xf32>
    %40 = arith.truncf %39 : vector<32x512xf32> to vector<32x512xbf16>
    %c192 = arith.constant 192 : index
    %c0_14 = arith.constant 0 : index
    %41 = vector.load %arg8[%c192, %c0_14] : memref<288x512xbf16, #tpu.memory_space<vmem>>, vector<32x512xbf16>
    tpu.vector_store %arg8[%c192, %c0_14], %40 {strides = array<i32>} : memref<288x512xbf16, #tpu.memory_space<vmem>>, vector<32x512xbf16>,
    %c496_i32 = arith.constant 496 : i32
    %42 = tpu.dynamic_rotate %0 by %c496_i32 dim 1 : vector<32x512xf32>, i32 -> vector<32x512xf32>
    %43 = vector.extract_strided_slice %1 {offsets = [7, 0], sizes = [1, 512], strides = [1, 1]} : vector<9x512xf32> to vector<1x512xf32>
    %44 = vector.broadcast %43 : vector<1x512xf32> to vector<32x512xf32>
    %45 = arith.mulf %42, %44 : vector<32x512xf32>
    %46 = arith.truncf %45 : vector<32x512xf32> to vector<32x512xbf16>
    %c224 = arith.constant 224 : index
    %c0_15 = arith.constant 0 : index
    %47 = vector.load %arg8[%c224, %c0_15] : memref<288x512xbf16, #tpu.memory_space<vmem>>, vector<32x512xbf16>
    tpu.vector_store %arg8[%c224, %c0_15], %46 {strides = array<i32>} : memref<288x512xbf16, #tpu.memory_space<vmem>>, vector<32x512xbf16>,
    %c495_i32 = arith.constant 495 : i32
    %48 = tpu.dynamic_rotate %0 by %c495_i32 dim 1 : vector<32x512xf32>, i32 -> vector<32x512xf32>
    %49 = vector.extract_strided_slice %1 {offsets = [8, 0], sizes = [1, 512], strides = [1, 1]} : vector<9x512xf32> to vector<1x512xf32>
    %50 = vector.broadcast %49 : vector<1x512xf32> to vector<32x512xf32>
    %51 = arith.mulf %48, %50 : vector<32x512xf32>
    %52 = arith.truncf %51 : vector<32x512xf32> to vector<32x512xbf16>
    %c256 = arith.constant 256 : index
    %c0_16 = arith.constant 0 : index
    %53 = vector.load %arg8[%c256, %c0_16] : memref<288x512xbf16, #tpu.memory_space<vmem>>, vector<32x512xbf16>
    tpu.vector_store %arg8[%c256, %c0_16], %52 {strides = array<i32>} : memref<288x512xbf16, #tpu.memory_space<vmem>>, vector<32x512xbf16>,
    %c0_17 = arith.constant 0 : index
    %c0_18 = arith.constant 0 : index
    %54 = vector.load %arg2[%c0_17, %c0_18] : memref<32x288xbf16, #tpu.memory_space<vmem>>, vector<32x288xbf16>
    %c0_19 = arith.constant 0 : index
    %c0_20 = arith.constant 0 : index
    %55 = vector.load %arg8[%c0_19, %c0_20] : memref<288x512xbf16, #tpu.memory_space<vmem>>, vector<288x512xbf16>
    %cst = arith.constant dense<0.000000e+00> : vector<32x512xf32>
    %56 = tpu.matmul %54, %55, %cst {dimension_numbers = #tpu.dot_dimension_numbers<[1], [0], [0], [1], [0, 0, 1, 1], [], []>} : vector<32x288xbf16>, vector<288x512xbf16>, vector<32x512xf32> -> vector<32x512xf32>
    %cst_21 = arith.constant dense<0.000000e+00> : vector<32x2xf32>
    %57 = tpu.matmul %56, %2, %cst_21 {dimension_numbers = #tpu.dot_dimension_numbers<[1], [0], [0], [1], [0, 0, 1, 1], [], []>} : vector<32x512xf32>, vector<512x2xf32>, vector<32x2xf32> -> vector<32x2xf32>
    %cst_22 = arith.constant 3.906250e-03 : f32
    %58 = vector.broadcast %cst_22 : f32 to vector<32x2xf32>
    %59 = arith.mulf %57, %58 : vector<32x2xf32>
    %cst_23 = arith.constant dense<0.000000e+00> : vector<32x512xf32>
    %60 = tpu.matmul %59, %3, %cst_23 {dimension_numbers = #tpu.dot_dimension_numbers<[1], [0], [0], [1], [0, 0, 1, 1], [], []>} : vector<32x2xf32>, vector<2x512xf32>, vector<32x512xf32> -> vector<32x512xf32>
    %61 = arith.subf %56, %60 : vector<32x512xf32>
    %62 = arith.mulf %61, %61 : vector<32x512xf32>
    %cst_24 = arith.constant dense<0.000000e+00> : vector<32x2xf32>
    %63 = tpu.matmul %62, %2, %cst_24 {dimension_numbers = #tpu.dot_dimension_numbers<[1], [0], [0], [1], [0, 0, 1, 1], [], []>} : vector<32x512xf32>, vector<512x2xf32>, vector<32x2xf32> -> vector<32x2xf32>
    %cst_25 = arith.constant 3.906250e-03 : f32
    %64 = vector.broadcast %cst_25 : f32 to vector<32x2xf32>
    %65 = arith.mulf %63, %64 : vector<32x2xf32>
    %cst_26 = arith.constant 9.99999974E-6 : f32
    %66 = vector.broadcast %cst_26 : f32 to vector<32x2xf32>
    %67 = arith.addf %65, %66 : vector<32x2xf32>
    %68 = math.rsqrt %67 : vector<32x2xf32>
    %cst_27 = arith.constant dense<0.000000e+00> : vector<32x512xf32>
    %69 = tpu.matmul %68, %3, %cst_27 {dimension_numbers = #tpu.dot_dimension_numbers<[1], [0], [0], [1], [0, 0, 1, 1], [], []>} : vector<32x2xf32>, vector<2x512xf32>, vector<32x512xf32> -> vector<32x512xf32>
    %70 = arith.mulf %61, %69 : vector<32x512xf32>
    %cst_28 = arith.constant 0.000000e+00 : f32
    %71 = vector.broadcast %cst_28 : f32 to vector<32x512xf32>
    %72 = arith.maximumf %70, %71 : vector<32x512xf32>
    %c17_i32_29 = arith.constant 17 : i32
    %73 = tpu.dynamic_rotate %72 by %c17_i32_29 dim 1 : vector<32x512xf32>, i32 -> vector<32x512xf32>
    %74 = vector.extract_strided_slice %1 {offsets = [0, 0], sizes = [1, 512], strides = [1, 1]} : vector<9x512xf32> to vector<1x512xf32>
    %75 = vector.broadcast %74 : vector<1x512xf32> to vector<32x512xf32>
    %76 = arith.mulf %73, %75 : vector<32x512xf32>
    %77 = arith.truncf %76 : vector<32x512xf32> to vector<32x512xbf16>
    %c0_30 = arith.constant 0 : index
    %c0_31 = arith.constant 0 : index
    %78 = vector.load %arg8[%c0_30, %c0_31] : memref<288x512xbf16, #tpu.memory_space<vmem>>, vector<32x512xbf16>
    tpu.vector_store %arg8[%c0_30, %c0_31], %77 {strides = array<i32>} : memref<288x512xbf16, #tpu.memory_space<vmem>>, vector<32x512xbf16>,
    %c16_i32_32 = arith.constant 16 : i32
    %79 = tpu.dynamic_rotate %72 by %c16_i32_32 dim 1 : vector<32x512xf32>, i32 -> vector<32x512xf32>
    %80 = vector.extract_strided_slice %1 {offsets = [1, 0], sizes = [1, 512], strides = [1, 1]} : vector<9x512xf32> to vector<1x512xf32>
    %81 = vector.broadcast %80 : vector<1x512xf32> to vector<32x512xf32>
    %82 = arith.mulf %79, %81 : vector<32x512xf32>
    %83 = arith.truncf %82 : vector<32x512xf32> to vector<32x512xbf16>
    %c32_33 = arith.constant 32 : index
    %c0_34 = arith.constant 0 : index
    %84 = vector.load %arg8[%c32_33, %c0_34] : memref<288x512xbf16, #tpu.memory_space<vmem>>, vector<32x512xbf16>
    tpu.vector_store %arg8[%c32_33, %c0_34], %83 {strides = array<i32>} : memref<288x512xbf16, #tpu.memory_space<vmem>>, vector<32x512xbf16>,
    %c15_i32_35 = arith.constant 15 : i32
    %85 = tpu.dynamic_rotate %72 by %c15_i32_35 dim 1 : vector<32x512xf32>, i32 -> vector<32x512xf32>
    %86 = vector.extract_strided_slice %1 {offsets = [2, 0], sizes = [1, 512], strides = [1, 1]} : vector<9x512xf32> to vector<1x512xf32>
    %87 = vector.broadcast %86 : vector<1x512xf32> to vector<32x512xf32>
    %88 = arith.mulf %85, %87 : vector<32x512xf32>
    %89 = arith.truncf %88 : vector<32x512xf32> to vector<32x512xbf16>
    %c64_36 = arith.constant 64 : index
    %c0_37 = arith.constant 0 : index
    %90 = vector.load %arg8[%c64_36, %c0_37] : memref<288x512xbf16, #tpu.memory_space<vmem>>, vector<32x512xbf16>
    tpu.vector_store %arg8[%c64_36, %c0_37], %89 {strides = array<i32>} : memref<288x512xbf16, #tpu.memory_space<vmem>>, vector<32x512xbf16>,
    %c1_i32_38 = arith.constant 1 : i32
    %91 = tpu.dynamic_rotate %72 by %c1_i32_38 dim 1 : vector<32x512xf32>, i32 -> vector<32x512xf32>
    %92 = vector.extract_strided_slice %1 {offsets = [3, 0], sizes = [1, 512], strides = [1, 1]} : vector<9x512xf32> to vector<1x512xf32>
    %93 = vector.broadcast %92 : vector<1x512xf32> to vector<32x512xf32>
    %94 = arith.mulf %91, %93 : vector<32x512xf32>
    %95 = arith.truncf %94 : vector<32x512xf32> to vector<32x512xbf16>
    %c96_39 = arith.constant 96 : index
    %c0_40 = arith.constant 0 : index
    %96 = vector.load %arg8[%c96_39, %c0_40] : memref<288x512xbf16, #tpu.memory_space<vmem>>, vector<32x512xbf16>
    tpu.vector_store %arg8[%c96_39, %c0_40], %95 {strides = array<i32>} : memref<288x512xbf16, #tpu.memory_space<vmem>>, vector<32x512xbf16>,
    %97 = arith.truncf %72 : vector<32x512xf32> to vector<32x512xbf16>
    %c128_41 = arith.constant 128 : index
    %c0_42 = arith.constant 0 : index
    %98 = vector.load %arg8[%c128_41, %c0_42] : memref<288x512xbf16, #tpu.memory_space<vmem>>, vector<32x512xbf16>
    tpu.vector_store %arg8[%c128_41, %c0_42], %97 {strides = array<i32>} : memref<288x512xbf16, #tpu.memory_space<vmem>>, vector<32x512xbf16>,
    %c511_i32_43 = arith.constant 511 : i32
    %99 = tpu.dynamic_rotate %72 by %c511_i32_43 dim 1 : vector<32x512xf32>, i32 -> vector<32x512xf32>
    %100 = vector.extract_strided_slice %1 {offsets = [5, 0], sizes = [1, 512], strides = [1, 1]} : vector<9x512xf32> to vector<1x512xf32>
    %101 = vector.broadcast %100 : vector<1x512xf32> to vector<32x512xf32>
    %102 = arith.mulf %99, %101 : vector<32x512xf32>
    %103 = arith.truncf %102 : vector<32x512xf32> to vector<32x512xbf16>
    %c160_44 = arith.constant 160 : index
    %c0_45 = arith.constant 0 : index
    %104 = vector.load %arg8[%c160_44, %c0_45] : memref<288x512xbf16, #tpu.memory_space<vmem>>, vector<32x512xbf16>
    tpu.vector_store %arg8[%c160_44, %c0_45], %103 {strides = array<i32>} : memref<288x512xbf16, #tpu.memory_space<vmem>>, vector<32x512xbf16>,
    %c497_i32_46 = arith.constant 497 : i32
    %105 = tpu.dynamic_rotate %72 by %c497_i32_46 dim 1 : vector<32x512xf32>, i32 -> vector<32x512xf32>
    %106 = vector.extract_strided_slice %1 {offsets = [6, 0], sizes = [1, 512], strides = [1, 1]} : vector<9x512xf32> to vector<1x512xf32>
    %107 = vector.broadcast %106 : vector<1x512xf32> to vector<32x512xf32>
    %108 = arith.mulf %105, %107 : vector<32x512xf32>
    %109 = arith.truncf %108 : vector<32x512xf32> to vector<32x512xbf16>
    %c192_47 = arith.constant 192 : index
    %c0_48 = arith.constant 0 : index
    %110 = vector.load %arg8[%c192_47, %c0_48] : memref<288x512xbf16, #tpu.memory_space<vmem>>, vector<32x512xbf16>
    tpu.vector_store %arg8[%c192_47, %c0_48], %109 {strides = array<i32>} : memref<288x512xbf16, #tpu.memory_space<vmem>>, vector<32x512xbf16>,
    %c496_i32_49 = arith.constant 496 : i32
    %111 = tpu.dynamic_rotate %72 by %c496_i32_49 dim 1 : vector<32x512xf32>, i32 -> vector<32x512xf32>
    %112 = vector.extract_strided_slice %1 {offsets = [7, 0], sizes = [1, 512], strides = [1, 1]} : vector<9x512xf32> to vector<1x512xf32>
    %113 = vector.broadcast %112 : vector<1x512xf32> to vector<32x512xf32>
    %114 = arith.mulf %111, %113 : vector<32x512xf32>
    %115 = arith.truncf %114 : vector<32x512xf32> to vector<32x512xbf16>
    %c224_50 = arith.constant 224 : index
    %c0_51 = arith.constant 0 : index
    %116 = vector.load %arg8[%c224_50, %c0_51] : memref<288x512xbf16, #tpu.memory_space<vmem>>, vector<32x512xbf16>
    tpu.vector_store %arg8[%c224_50, %c0_51], %115 {strides = array<i32>} : memref<288x512xbf16, #tpu.memory_space<vmem>>, vector<32x512xbf16>,
    %c495_i32_52 = arith.constant 495 : i32
    %117 = tpu.dynamic_rotate %72 by %c495_i32_52 dim 1 : vector<32x512xf32>, i32 -> vector<32x512xf32>
    %118 = vector.extract_strided_slice %1 {offsets = [8, 0], sizes = [1, 512], strides = [1, 1]} : vector<9x512xf32> to vector<1x512xf32>
    %119 = vector.broadcast %118 : vector<1x512xf32> to vector<32x512xf32>
    %120 = arith.mulf %117, %119 : vector<32x512xf32>
    %121 = arith.truncf %120 : vector<32x512xf32> to vector<32x512xbf16>
    %c256_53 = arith.constant 256 : index
    %c0_54 = arith.constant 0 : index
    %122 = vector.load %arg8[%c256_53, %c0_54] : memref<288x512xbf16, #tpu.memory_space<vmem>>, vector<32x512xbf16>
    tpu.vector_store %arg8[%c256_53, %c0_54], %121 {strides = array<i32>} : memref<288x512xbf16, #tpu.memory_space<vmem>>, vector<32x512xbf16>,
    %c0_55 = arith.constant 0 : index
    %c0_56 = arith.constant 0 : index
    %123 = vector.load %arg3[%c0_55, %c0_56] : memref<32x288xbf16, #tpu.memory_space<vmem>>, vector<32x288xbf16>
    %c0_57 = arith.constant 0 : index
    %c0_58 = arith.constant 0 : index
    %124 = vector.load %arg8[%c0_57, %c0_58] : memref<288x512xbf16, #tpu.memory_space<vmem>>, vector<288x512xbf16>
    %cst_59 = arith.constant dense<0.000000e+00> : vector<32x512xf32>
    %125 = tpu.matmul %123, %124, %cst_59 {dimension_numbers = #tpu.dot_dimension_numbers<[1], [0], [0], [1], [0, 0, 1, 1], [], []>} : vector<32x288xbf16>, vector<288x512xbf16>, vector<32x512xf32> -> vector<32x512xf32>
    %cst_60 = arith.constant dense<0.000000e+00> : vector<32x2xf32>
    %126 = tpu.matmul %125, %2, %cst_60 {dimension_numbers = #tpu.dot_dimension_numbers<[1], [0], [0], [1], [0, 0, 1, 1], [], []>} : vector<32x512xf32>, vector<512x2xf32>, vector<32x2xf32> -> vector<32x2xf32>
    %cst_61 = arith.constant 3.906250e-03 : f32
    %127 = vector.broadcast %cst_61 : f32 to vector<32x2xf32>
    %128 = arith.mulf %126, %127 : vector<32x2xf32>
    %cst_62 = arith.constant dense<0.000000e+00> : vector<32x512xf32>
    %129 = tpu.matmul %128, %3, %cst_62 {dimension_numbers = #tpu.dot_dimension_numbers<[1], [0], [0], [1], [0, 0, 1, 1], [], []>} : vector<32x2xf32>, vector<2x512xf32>, vector<32x512xf32> -> vector<32x512xf32>
    %130 = arith.subf %125, %129 : vector<32x512xf32>
    %131 = arith.mulf %130, %130 : vector<32x512xf32>
    %cst_63 = arith.constant dense<0.000000e+00> : vector<32x2xf32>
    %132 = tpu.matmul %131, %2, %cst_63 {dimension_numbers = #tpu.dot_dimension_numbers<[1], [0], [0], [1], [0, 0, 1, 1], [], []>} : vector<32x512xf32>, vector<512x2xf32>, vector<32x2xf32> -> vector<32x2xf32>
    %cst_64 = arith.constant 3.906250e-03 : f32
    %133 = vector.broadcast %cst_64 : f32 to vector<32x2xf32>
    %134 = arith.mulf %132, %133 : vector<32x2xf32>
    %cst_65 = arith.constant 9.99999974E-6 : f32
    %135 = vector.broadcast %cst_65 : f32 to vector<32x2xf32>
    %136 = arith.addf %134, %135 : vector<32x2xf32>
    %137 = math.rsqrt %136 : vector<32x2xf32>
    %cst_66 = arith.constant dense<0.000000e+00> : vector<32x512xf32>
    %138 = tpu.matmul %137, %3, %cst_66 {dimension_numbers = #tpu.dot_dimension_numbers<[1], [0], [0], [1], [0, 0, 1, 1], [], []>} : vector<32x2xf32>, vector<2x512xf32>, vector<32x512xf32> -> vector<32x512xf32>
    %139 = arith.mulf %130, %138 : vector<32x512xf32>
    %140 = arith.addf %139, %0 : vector<32x512xf32>
    %cst_67 = arith.constant 0.000000e+00 : f32
    %141 = vector.broadcast %cst_67 : f32 to vector<32x512xf32>
    %142 = arith.maximumf %140, %141 : vector<32x512xf32>
    %c0_68 = arith.constant 0 : index
    %c0_69 = arith.constant 0 : index
    %143 = vector.load %arg7[%c0_68, %c0_69] : memref<32x512xf32, #tpu.memory_space<vmem>>, vector<32x512xf32>
    tpu.vector_store %arg7[%c0_68, %c0_69], %142 {strides = array<i32>} : memref<32x512xf32, #tpu.memory_space<vmem>>, vector<32x512xf32>,
    return
  }
  func.func @transform_0(%arg0: i32) -> (i32, i32) {
    %c0_i32 = arith.constant 0 : i32
    %c0_i32_0 = arith.constant 0 : i32
    return %c0_i32, %arg0 : i32, i32
  }
  func.func @transform_1(%arg0: i32) -> (i32, i32) {
    %c0_i32 = arith.constant 0 : i32
    %c0_i32_0 = arith.constant 0 : i32
    %c0_i32_1 = arith.constant 0 : i32
    return %c0_i32, %c0_i32_0 : i32, i32
  }
  func.func @transform_2(%arg0: i32) -> (i32, i32) {
    %c0_i32 = arith.constant 0 : i32
    %c0_i32_0 = arith.constant 0 : i32
    %c0_i32_1 = arith.constant 0 : i32
    return %c0_i32, %c0_i32_0 : i32, i32
  }
  func.func @transform_3(%arg0: i32) -> (i32, i32) {
    %c0_i32 = arith.constant 0 : i32
    %c0_i32_0 = arith.constant 0 : i32
    %c0_i32_1 = arith.constant 0 : i32
    return %c0_i32, %c0_i32_0 : i32, i32
  }
  func.func @transform_4(%arg0: i32) -> (i32, i32) {
    %c0_i32 = arith.constant 0 : i32
    %c0_i32_0 = arith.constant 0 : i32
    %c0_i32_1 = arith.constant 0 : i32
    return %c0_i32, %c0_i32_0 : i32, i32
  }
  func.func @transform_5(%arg0: i32) -> (i32, i32) {
    %c0_i32 = arith.constant 0 : i32
    %c0_i32_0 = arith.constant 0 : i32
    %c0_i32_1 = arith.constant 0 : i32
    return %c0_i32, %c0_i32_0 : i32, i32
  }
  func.func @transform_6(%arg0: i32) -> (i32, i32) {
    %c0_i32 = arith.constant 0 : i32
    %c0_i32_0 = arith.constant 0 : i32
    return %c0_i32, %arg0 : i32, i32
  }
}

</mosaic_0001>

<bundles_post_ra>
// kernel: tpu_custom_call.1
= control target key start
LH: loop header
LB: loop body
LE: loop exit
PB: predicated region body
PF: predicated region fallthrough
CT: control target
= control target key end

     0   :  { %11 = vsyncpa [#allocation5], 0  ;;  %s8201_s0 = inlined_call_operand.vmem [shape: f32[32,1024], index: 0, kind: input, shape index: {}]   ;;  %s8202_s1 = inlined_call_operand.vmem [shape: bf16[32,288], index: 1, kind: input, shape index: {}]   ;;  %s8203_s2 = inlined_call_operand.vmem [shape: bf16[32,288], index: 2, kind: input, shape index: {}]   ;;  %s8204_s3 = inlined_call_operand.vmem [shape: f32[9,512], index: 3, kind: input, shape index: {}]   ;;  %s8205_s4 = inlined_call_operand.vmem [shape: f32[512,2], index: 4, kind: input, shape index: {}]   ;;  %s8206_s5 = inlined_call_operand.vmem [shape: f32[2,512], index: 5, kind: input, shape index: {}]   ;;  %s8207_s6 = inlined_call_operand.hbm [shape: f32[32,1024], index: 6, kind: output, shape index: {}]  }
   0x1   :  { %13 = vsyncpa [#allocation5 + $0x1], 0  ;;  %s5192_s21 = smov 0   ;;  %s5194_s22 = smov 0  }
   0x2   :  { %s5196_s23 = smov 0   ;;  %s5198_s24 = smov 0  }
   0x3 LB: > { %s8209_s25 = sadd.s32 4294967295, %s5140_s24   ;;  %s4241_s26 = sadd.s32 4294967294, %s5140_s24   ;;  %s5140_s24 = sphi %s5198_s24, %s8769_s24   ;;  %s5136_s23 = sphi %s5196_s23, %s8768_s23   ;;  %s5132_s22 = sphi %s5194_s22, %s8767_s22   ;;  %s5128_s21 = sphi %s5192_s21, %s8766_s21  }
   0x4   : > { %s5215_s27 = sadd.s32 1, %s5140_s24   ;;  %s26_s28 = sadd.s32 1, %s5136_s23 }
   0x5   : > { %s23_s29 = ssub.s32 %s5140_s24, %s5215_s27  ;;  %p33_p0 = scmp.ne.s32.totalorder %s5136_s23, %s5132_s22 }
   0x6   : > { %p24_p1 = scmp.eq.s32.totalorder %s23_s29, 0  ;;  %p34_p2 = scmp.eq.s32.totalorder %s5140_s24, 0 }
   0x7   : > { %p168_p3 = scmp.eq.s32.totalorder %s8209_s25, 1  ;;  %p173_p4 = scmp.ne.s32.totalorder %s5132_s22, %s5128_s21 }
   0x8   : > { %s5228_s30 = scalar_select %p24_p1, %s5136_s23, %s26_s28  }
   0x9   : > { %p35_p5 = por %p34_p2, %p33_p0  ;;  %p5230_p6 = por %p168_p3, %p33_p0 }
   0xa   : > { %p174_p7 = scmp.eq.s32.totalorder %s4241_s26, 1  ;;  %p4243_p9 = scmp.ge.s32.totalorder %s5140_s24, 2 }
   0xc   : > { %p5234_p8 = por %p174_p7, %p173_p4  ;;  %205 = sbr.rel (%p4243_p9) target bundleno = 31 (0x1f), region = 36 }
  0x13   : > { %208 = sbr.rel (!%p35_p5) target bundleno = 31 (0x1f), region = 40  ;;  %s210_s9 = sand.u32 (%p35_p5), 1, %s5136_s23  }
  0x14   : > { %s4327_s10 = sshll.u32 (%p35_p5), %s5140_s24, 5  ;;  %s4244_s11 = sshll.u32 (%p35_p5), %s210_s9, 7 }
  0x15   : > { %s5246_s14 = scalar_lea.vmem (%p35_p5), %s8201_s0, %s4327_s10  ;;  %s212_s15 = scalar_lea.vmem (%p35_p5), [#allocation3], %s4244_s11 }
  0x16   : > { %v228_v0 = vld [vmem:[%s5246_s14] sm:$0xff] (%p35_p5)  ;;  %v230_v1 = vld [vmem:[%s5246_s14 + $0x8] sm:$0xff] (%p35_p5)  ;;  %v232_v2 = vld [vmem:[%s5246_s14 + $0x10] sm:$0xff] (%p35_p5) }
  0x17   : > { %229 = vst [vmem:[%s212_s15] sm:$0xff] (%p35_p5), %v228_v0  ;;  %231 = vst [vmem:[%s212_s15 + $0x8] sm:$0xff] (%p35_p5), %v230_v1  ;;  %v234_v3 = vld [vmem:[%s5246_s14 + $0x18] sm:$0xff] (%p35_p5)  ;;  %v236_v4 = vld [vmem:[%s5246_s14 + $0x40] sm:$0xff] (%p35_p5) }
  0x18   : > { %233 = vst [vmem:[%s212_s15 + $0x10] sm:$0xff] (%p35_p5), %v232_v2  ;;  %v238_v5 = vld [vmem:[%s5246_s14 + $0x48] sm:$0xff] (%p35_p5)  ;;  %235 = vst [vmem:[%s212_s15 + $0x18] sm:$0xff] (%p35_p5), %v234_v3  ;;  %v240_v6 = vld [vmem:[%s5246_s14 + $0x50] sm:$0xff] (%p35_p5) }
  0x19   : > { %237 = vst [vmem:[%s212_s15 + $0x20] sm:$0xff] (%p35_p5), %v236_v4  ;;  %239 = vst [vmem:[%s212_s15 + $0x28] sm:$0xff] (%p35_p5), %v238_v5  ;;  %v242_v7 = vld [vmem:[%s5246_s14 + $0x58] sm:$0xff] (%p35_p5)  ;;  %v244_v8 = vld [vmem:[%s5246_s14 + $0x80] sm:$0xff] (%p35_p5) }
  0x1a   : > { %241 = vst [vmem:[%s212_s15 + $0x30] sm:$0xff] %v240_v6  ;;  %243 = vst [vmem:[%s212_s15 + $0x38] sm:$0xff] %v242_v7  ;;  %v246_v9 = vld [vmem:[%s5246_s14 + $0x88] sm:$0xff]  ;;  %v248_v10 = vld [vmem:[%s5246_s14 + $0x90] sm:$0xff] }
  0x1b   : > { %245 = vst [vmem:[%s212_s15 + $0x40] sm:$0xff] %v244_v8  ;;  %v250_v11 = vld [vmem:[%s5246_s14 + $0x98] sm:$0xff]  ;;  %247 = vst [vmem:[%s212_s15 + $0x48] sm:$0xff] %v246_v9  ;;  %v252_v12 = vld [vmem:[%s5246_s14 + $0xc0] sm:$0xff] }
  0x1c   : > { %249 = vst [vmem:[%s212_s15 + $0x50] sm:$0xff] %v248_v10  ;;  %251 = vst [vmem:[%s212_s15 + $0x58] sm:$0xff] %v250_v11  ;;  %v254_v13 = vld [vmem:[%s5246_s14 + $0xc8] sm:$0xff]  ;;  %v256_v14 = vld [vmem:[%s5246_s14 + $0xd0] sm:$0xff] }
  0x1d   : > { %253 = vst [vmem:[%s212_s15 + $0x60] sm:$0xff] %v252_v12  ;;  %255 = vst [vmem:[%s212_s15 + $0x68] sm:$0xff] %v254_v13  ;;  %v258_v15 = vld [vmem:[%s5246_s14 + $0xd8] sm:$0xff] }
  0x1e   : > { %257 = vst [vmem:[%s212_s15 + $0x70] sm:$0xff] %v256_v14  ;;  %259 = vst [vmem:[%s212_s15 + $0x78] sm:$0xff] %v258_v15 }
  0x1f PF: > { %p4247_p10 = scmp.ge.s32.totalorder %s5140_s24, 1  ;;  %p264_p11 = scmp.lt.s32.totalorder %s5140_s24, 3 }
  0x21   : > { %p265_p12 = pnand %p4247_p10, %p264_p11 }
  0x23   : > { %268 = sbr.rel (%p265_p12) target bundleno = 3034 (0xbda), region = 63 }
  0x2a   : > { %s8208_s16 = sand.u32 1, %s5132_s22   ;;  %s5142_s19 = smov 17   ;;  %v424_v32 = vlaneseq  ;;  %v5446_v36 = vld [vmem:[%s8204_s3 + $0x8] sm:$0xff]  ;;  %v5463_v44 = vld [vmem:[%s8204_s3 + $0x10] sm:$0xff]  ;;  %v5474_v47 = vld [vmem:[%s8204_s3] sm:$0xff]  ;;  %vm1296_vm8 = vcmask 261120  }
  0x2b   : > { %s5269_s17 = sshll.u32 %s8208_s16, 7  ;;  %s5143_s20 = smov 16   ;;  %v5479_v48 = vld [vmem:[%s8204_s3 + $0x18] sm:$0xff]  ;;  %vm1720_vm9 = vcmask 1041408   ;;  %vm1707_vm10 = vcmask 15360  }
  0x2c   : > { %s5272_s18 = scalar_lea.vmem [#allocation3], %s5269_s17  ;;  %s5144_s26 = smov 15   ;;  %v5434_v33 = vshrl.u32 %v424_v32, 7  ;;  %v5436_v34 = vand.u32 127, %v424_v32 }
  0x2d   : > { %v5275_v16 = vld [vmem:[%s5272_s18 + $0x8] sm:$0xff]  ;;  %v5278_v17 = vld [vmem:[%s5272_s18] sm:$0xff]  ;;  %v5295_v20 = vld [vmem:[%s5272_s18 + $0x30] sm:$0xff]  ;;  %s5145_s28 = smov 1   ;;  %s8216_s29 = smov 127  }
  0x2e   : > { %400 = vrot.lane.b32.xlu1 %v5275_v16, %s5142_s19  ;;  %392 = vrot.lane.b32.xlu0 %v5278_v17, %s5142_s19  ;;  %v5285_v18 = vld [vmem:[%s5272_s18 + $0x28] sm:$0xff]  ;;  %v5288_v19 = vld [vmem:[%s5272_s18 + $0x20] sm:$0xff]  ;;  %8443 = vst [vmem:[#allocation7_spill] sm:$0xff] %v5436_v34  ;;  %v445_v35 = vsub.s32 0, %v5434_v33  ;;  %vm426_vm0 = vcmp.lt.s32.totalorder %v5436_v34, 17  ;;  %vm523_vm1 = vcmp.lt.s32.totalorder %v5436_v34, 16 }
  0x2f   : > { %v5298_v21 = vld [vmem:[%s5272_s18 + $0x10] sm:$0xff]  ;;  %v5305_v22 = vld [vmem:[%s5272_s18 + $0x38] sm:$0xff]  ;;  %v5315_v24 = vld [vmem:[%s5272_s18 + $0x60] sm:$0xff]  ;;  %s8214_s9 = smov 113   ;;  %vm620_vm2 = vcmp.lt.s32.totalorder %v5436_v34, 15  ;;  %s8212_s10 = smov 112  }
  0x30   : > { %v5308_v23 = vld [vmem:[%s5272_s18 + $0x18] sm:$0xff]  ;;  %v5318_v25 = vld [vmem:[%s5272_s18 + $0x40] sm:$0xff]  ;;  %v5325_v26 = vld [vmem:[%s5272_s18 + $0x68] sm:$0xff]  ;;  %v5454_v39 = vrot.slane %v5446_v36, %v445_v35  ;;  %v5482_v52 = vrot.slane %v5463_v44, %v445_v35  ;;  %v5493_v55 = vrot.slane %v5474_v47, %v445_v35  ;;  %v5496_v56 = vrot.slane %v5479_v48, %v445_v35  ;;  %s8210_s13 = smov 111   ;;  %s8524_s12 = smov 127  }
  0x31   : > { %v5328_v27 = vld [vmem:[%s5272_s18 + $0x48] sm:$0xff]  ;;  %v5335_v28 = vld [vmem:[%s5272_s18 + $0x70] sm:$0xff]  ;;  %v5345_v30 = vld [vmem:[%s5272_s18 + $0x78] sm:$0xff]  ;;  %vm717_vm3 = vcmp.lt.s32.totalorder %v5436_v34, 1  ;;  %vm830_vm4 = vcmp.lt.s32.totalorder %v5436_v34, 127  ;;  %vm927_vm5 = vcmp.lt.s32.totalorder %v5436_v34, 113 }
  0x32   : > { %402 = vrot.lane.b32.xlu1 %v5285_v18, %s5142_s19  ;;  %394 = vrot.lane.b32.xlu0 %v5288_v19, %s5142_s19  ;;  %v5338_v29 = vld [vmem:[%s5272_s18 + $0x50] sm:$0xff]  ;;  %v5348_v31 = vld [vmem:[%s5272_s18 + $0x58] sm:$0xff]  ;;  %8444 = vst [vmem:[#allocation8_spill] sm:$0xff] %v5454_v39  ;;  %8445 = vst [vmem:[#allocation9_spill] sm:$0xff] %v5482_v52  ;;  %vm1024_vm6 = vcmp.lt.s32.totalorder %v5436_v34, 112  ;;  %vm1121_vm7 = vcmp.lt.s32.totalorder %v5436_v34, 111 }
  0x33   : > { %8446 = vst [vmem:[#allocation10_spill] sm:$0xff] %v5493_v55  ;;  %8447 = vst [vmem:[#allocation11_spill] sm:$0xff] %v5496_v56  ;;  %s8525_s25 = smov 113   ;;  %s8526_s14 = smov 112  }
  0x34   : > { %s8527_s15 = smov 111  }
  0x36   : > { %410 = vrot.lane.b32.xlu1 %v5295_v20, %s5142_s19  ;;  %408 = vrot.lane.b32.xlu0 %v5298_v21, %s5142_s19 }
  0x3a   : > { %418 = vrot.lane.b32.xlu1 %v5305_v22, %s5142_s19  ;;  %416 = vrot.lane.b32.xlu0 %v5308_v23, %s5142_s19 }
  0x3e   : > { %398 = vrot.lane.b32.xlu1 %v5315_v24, %s5142_s19  ;;  %396 = vrot.lane.b32.xlu0 %v5318_v25, %s5142_s19 }
  0x42   : > { %406 = vrot.lane.b32.xlu1 %v5325_v26, %s5142_s19  ;;  %404 = vrot.lane.b32.xlu0 %v5328_v27, %s5142_s19 }
  0x46   : > { %414 = vrot.lane.b32.xlu1 %v5335_v28, %s5142_s19  ;;  %412 = vrot.lane.b32.xlu0 %v5338_v29, %s5142_s19 }
  0x4a   : > { %422 = vrot.lane.b32.xlu1 %v5345_v30, %s5142_s19  ;;  %420 = vrot.lane.b32.xlu0 %v5348_v31, %s5142_s19 }
  0x4e   : > { %493 = vrot.lane.b32.xlu1 %v5288_v19, %s5143_s20  ;;  %491 = vrot.lane.b32.xlu0 %v5278_v17, %s5143_s20 }
  0x52   : > { %501 = vrot.lane.b32.xlu1 %v5285_v18, %s5143_s20  ;;  %499 = vrot.lane.b32.xlu0 %v5275_v16, %s5143_s20 }
  0x56   : > { %509 = vrot.lane.b32.xlu1 %v5295_v20, %s5143_s20  ;;  %507 = vrot.lane.b32.xlu0 %v5298_v21, %s5143_s20 }
  0x5a   : > { %517 = vrot.lane.b32.xlu1 %v5305_v22, %s5143_s20  ;;  %515 = vrot.lane.b32.xlu0 %v5308_v23, %s5143_s20 }
  0x5e   : > { %497 = vrot.lane.b32.xlu1 %v5315_v24, %s5143_s20  ;;  %495 = vrot.lane.b32.xlu0 %v5318_v25, %s5143_s20 }
  0x62   : > { %505 = vrot.lane.b32.xlu1 %v5325_v26, %s5143_s20  ;;  %503 = vrot.lane.b32.xlu0 %v5328_v27, %s5143_s20 }
  0x66   : > { %513 = vrot.lane.b32.xlu1 %v5335_v28, %s5143_s20  ;;  %511 = vrot.lane.b32.xlu0 %v5338_v29, %s5143_s20 }
  0x6a   : > { %521 = vrot.lane.b32.xlu1 %v5345_v30, %s5143_s20  ;;  %519 = vrot.lane.b32.xlu0 %v5348_v31, %s5143_s20 }
  0x6e   : > { %590 = vrot.lane.b32.xlu1 %v5288_v19, %s5144_s26  ;;  %588 = vrot.lane.b32.xlu0 %v5278_v17, %s5144_s26 }
  0x72   : > { %598 = vrot.lane.b32.xlu1 %v5285_v18, %s5144_s26  ;;  %596 = vrot.lane.b32.xlu0 %v5275_v16, %s5144_s26 }
  0x76   : > { %606 = vrot.lane.b32.xlu1 %v5295_v20, %s5144_s26  ;;  %604 = vrot.lane.b32.xlu0 %v5298_v21, %s5144_s26 }
  0x7a   : > { %614 = vrot.lane.b32.xlu1 %v5305_v22, %s5144_s26  ;;  %612 = vrot.lane.b32.xlu0 %v5308_v23, %s5144_s26 }
  0x7e   : > { %594 = vrot.lane.b32.xlu1 %v5315_v24, %s5144_s26  ;;  %592 = vrot.lane.b32.xlu0 %v5318_v25, %s5144_s26 }
  0x82   : > { %602 = vrot.lane.b32.xlu1 %v5325_v26, %s5144_s26  ;;  %600 = vrot.lane.b32.xlu0 %v5328_v27, %s5144_s26 }
  0x86   : > { %610 = vrot.lane.b32.xlu1 %v5335_v28, %s5144_s26  ;;  %608 = vrot.lane.b32.xlu0 %v5338_v29, %s5144_s26 }
  0x8a   : > { %618 = vrot.lane.b32.xlu1 %v5345_v30, %s5144_s26  ;;  %616 = vrot.lane.b32.xlu0 %v5348_v31, %s5144_s26 }
  0x8e   : > { %687 = vrot.lane.b32.xlu1 %v5288_v19, %s5145_s28  ;;  %685 = vrot.lane.b32.xlu0 %v5278_v17, %s5145_s28 }
  0x92   : > { %695 = vrot.lane.b32.xlu1 %v5285_v18, %s5145_s28  ;;  %693 = vrot.lane.b32.xlu0 %v5275_v16, %s5145_s28 }
  0x96   : > { %703 = vrot.lane.b32.xlu1 %v5295_v20, %s5145_s28  ;;  %701 = vrot.lane.b32.xlu0 %v5298_v21, %s5145_s28 }
  0x9a   : > { %711 = vrot.lane.b32.xlu1 %v5305_v22, %s5145_s28  ;;  %709 = vrot.lane.b32.xlu0 %v5308_v23, %s5145_s28 }
  0x9e   : > { %691 = vrot.lane.b32.xlu1 %v5315_v24, %s5145_s28  ;;  %689 = vrot.lane.b32.xlu0 %v5318_v25, %s5145_s28 }
  0xa0   : > { %v401_v37 = vpop.permute.xlu1 %400  ;;  %v393_v38 = vpop.permute.xlu0 %392 }
  0xa1   : > { %v435_v40 = vsel %vm426_vm0, %v393_v38, %v401_v37 }
  0xa2   : > { %699 = vrot.lane.b32.xlu1 %v5325_v26, %s5145_s28  ;;  %697 = vrot.lane.b32.xlu0 %v5328_v27, %s5145_s28  ;;  %v460_v45 = vmul.f32 %v5454_v39, %v435_v40 }
  0xa4   : > { %v403_v41 = vpop.permute.xlu1 %402  ;;  %v395_v42 = vpop.permute.xlu0 %394 }
  0xa5   : > { %v436_v43 = vsel %vm426_vm0, %v395_v42, %v403_v41 }
  0xa6   : > { %707 = vrot.lane.b32.xlu1 %v5335_v28, %s5145_s28  ;;  %705 = vrot.lane.b32.xlu0 %v5338_v29, %s5145_s28  ;;  %v464_v46 = vmul.f32 %v5454_v39, %v436_v43 }
  0xa8   : > { %v411_v49 = vpop.permute.xlu1 %410  ;;  %v409_v50 = vpop.permute.xlu0 %408  ;;  %v476_v51 = vpack.c.bf16 %v464_v46, %v460_v45  ;;  %v542_v46 = vsub.s32 1, %v5434_v33 }
  0xa9   : > { %v432_v53 = vsel %vm426_vm0, %v403_v41, %v411_v49  ;;  %v431_v54 = vsel %vm426_vm0, %v401_v37, %v409_v50 }
  0xaa   : > { %715 = vrot.lane.b32.xlu1 %v5345_v30, %s5145_s28  ;;  %713 = vrot.lane.b32.xlu0 %v5348_v31, %s5145_s28  ;;  %v461_v59 = vmul.f32 %v5482_v52, %v431_v54  ;;  %v465_v60 = vmul.f32 %v5482_v52, %v432_v53 }
  0xab   : > { %1303 = vmatprep.subr.bf16.mxu0 %v476_v51 }
  0xac   : > { %v419_v57 = vpop.permute.xlu1 %418  ;;  %v417_v58 = vpop.permute.xlu0 %416  ;;  %v477_v9 = vpack.c.bf16 %v465_v60, %v461_v59 }
  0xad   : > { %v440_v61 = vsel %vm426_vm0, %v419_v57, %v395_v42  ;;  %v439_v62 = vsel %vm426_vm0, %v417_v58, %v393_v38  ;;  %v427_v63 = vsel %vm426_vm0, %v409_v50, %v417_v58  ;;  %v428_v0 = vsel %vm426_vm0, %v411_v49, %v419_v57 }
  0xae   : > { %800 = vrot.lane.b32.xlu1 %v5288_v19, %s8216_s29  ;;  %798 = vrot.lane.b32.xlu0 %v5278_v17, %s8216_s29  ;;  %v459_v1 = vmul.f32 %v5493_v55, %v439_v62  ;;  %v463_v2 = vmul.f32 %v5493_v55, %v440_v61  ;;  %v462_v3 = vmul.f32 %v5496_v56, %v427_v63 }
  0xaf   : > { %v466_v4 = vmul.f32 %v5496_v56, %v428_v0 }
  0xb0   : > { %v399_v5 = vpop.permute.xlu1 %398  ;;  %v397_v6 = vpop.permute.xlu0 %396  ;;  %v475_v7 = vpack.c.bf16 %v463_v2, %v459_v1  ;;  %v5561_v1 = vrot.slane %v5446_v36, %v542_v46 }
  0xb1   : > { %v478_v8 = vpack.c.bf16 %v466_v4, %v462_v3 }
  0xb2   : > { %808 = vrot.lane.b32.xlu1 %v5285_v18, %s8216_s29  ;;  %806 = vrot.lane.b32.xlu0 %v5275_v16, %s8216_s29  ;;  %8448 = vst [vmem:[#allocation12_spill] sm:$0xff] %v5561_v1 }
  0xb3   : > { %1304 = vmatpush1.bf16.msra.mxu0 %v475_v7  ;;  %1409 = vmatprep.subr.bf16.mxu1 %v478_v8  ;;  %v5576_v8 = vrot.slane %v5463_v44, %v542_v46 }
  0xb4   : > { %1410 = vmatpush1.bf16.msra.mxu1 %v477_v9  ;;  %v407_v10 = vpop.permute.xlu1 %406  ;;  %v405_v11 = vpop.permute.xlu0 %404 }
  0xb5   : > { %v438_v12 = vsel %vm426_vm0, %v399_v5, %v407_v10  ;;  %v437_v13 = vsel %vm426_vm0, %v397_v6, %v405_v11  ;;  %8449 = vst [vmem:[#allocation13_spill] sm:$0xff] %v5576_v8 }
  0xb6   : > { %v472_v14 = vmul.f32 %v5454_v39, %v438_v12  ;;  %v468_v15 = vmul.f32 %v5454_v39, %v437_v13  ;;  %816 = vrot.lane.b32.xlu1 %v5295_v20, %s8216_s29  ;;  %814 = vrot.lane.b32.xlu0 %v5298_v21, %s8216_s29 }
  0xb8   : > { %v415_v32 = vpop.permute.xlu1 %414  ;;  %v413_v35 = vpop.permute.xlu0 %412  ;;  %v480_v37 = vpack.c.bf16 %v472_v14, %v468_v15  ;;  %v5585_v14 = vrot.slane %v5474_v47, %v542_v46  ;;  %v5588_v15 = vrot.slane %v5479_v48, %v542_v46 }
  0xb9   : > { %v434_v38 = vsel %vm426_vm0, %v407_v10, %v415_v32  ;;  %v433_v40 = vsel %vm426_vm0, %v405_v11, %v413_v35 }
  0xba   : > { %824 = vrot.lane.b32.xlu1 %v5305_v22, %s8216_s29  ;;  %822 = vrot.lane.b32.xlu0 %v5308_v23, %s8216_s29  ;;  %v473_v41 = vmul.f32 %v5482_v52, %v434_v38  ;;  %v469_v42 = vmul.f32 %v5482_v52, %v433_v40  ;;  %8450 = vst [vmem:[#allocation14_spill] sm:$0xff] %v5585_v14  ;;  %8451 = vst [vmem:[#allocation15_spill] sm:$0xff] %v5588_v15 }
  0xbb   : > { %1305 = vmatprep.subr.bf16.mxu0 %v480_v37 }
  0xbc   : > { %v423_v43 = vpop.permute.xlu1 %422  ;;  %v421_v45 = vpop.permute.xlu0 %420  ;;  %v481_v0 = vpack.c.bf16 %v473_v41, %v469_v42 }
  0xbd   : > { %v430_v49 = vsel %vm426_vm0, %v415_v32, %v423_v43  ;;  %v442_v50 = vsel %vm426_vm0, %v423_v43, %v399_v5  ;;  %v429_v51 = vsel %vm426_vm0, %v413_v35, %v421_v45  ;;  %v441_v53 = vsel %vm426_vm0, %v421_v45, %v397_v6 }
  0xbe   : > { %v471_v54 = vmul.f32 %v5493_v55, %v442_v50  ;;  %v474_v57 = vmul.f32 %v5496_v56, %v430_v49  ;;  %v467_v58 = vmul.f32 %v5493_v55, %v441_v53  ;;  %v470_v59 = vmul.f32 %v5496_v56, %v429_v51  ;;  %804 = vrot.lane.b32.xlu1 %v5315_v24, %s8216_s29 }
  0xbf   : > { %802 = vrot.lane.b32.xlu0 %v5318_v25, %s8216_s29 }
  0xc0   : > { %v494_v60 = vpop.permute.xlu1 %493  ;;  %v492_v61 = vpop.permute.xlu0 %491  ;;  %v479_v62 = vpack.c.bf16 %v471_v54, %v467_v58  ;;  %v482_v63 = vpack.c.bf16 %v474_v57, %v470_v59 }
  0xc2   : > { %812 = vrot.lane.b32.xlu1 %v5325_v26, %s8216_s29  ;;  %1306 = vmatpush1.bf16.msra.mxu0 %v479_v62 }
  0xc3   : > { %810 = vrot.lane.b32.xlu0 %v5328_v27, %s8216_s29  ;;  %1411 = vmatprep.subr.bf16.mxu1 %v482_v63 }
  0xc4   : > { %1412 = vmatpush1.bf16.msra.mxu1 %v481_v0  ;;  %v502_v2 = vpop.permute.xlu1 %501  ;;  %v500_v3 = vpop.permute.xlu0 %499 }
  0xc5   : > { %v533_v4 = vsel %vm523_vm1, %v494_v60, %v502_v2  ;;  %v532_v5 = vsel %vm523_vm1, %v492_v61, %v500_v3 }
  0xc6   : > { %v561_v6 = vmul.f32 %v5561_v1, %v533_v4  ;;  %v557_v7 = vmul.f32 %v5561_v1, %v532_v5  ;;  %820 = vrot.lane.b32.xlu1 %v5335_v28, %s8216_s29 }
  0xc7   : > { %818 = vrot.lane.b32.xlu0 %v5338_v29, %s8216_s29 }
  0xc8   : > { %v510_v9 = vpop.permute.xlu1 %509  ;;  %v508_v10 = vpop.permute.xlu0 %507  ;;  %v573_v11 = vpack.c.bf16 %v561_v6, %v557_v7 }
  0xc9   : > { %v529_v12 = vsel %vm523_vm1, %v502_v2, %v510_v9  ;;  %v528_v13 = vsel %vm523_vm1, %v500_v3, %v508_v10 }
  0xca   : > { %828 = vrot.lane.b32.xlu1 %v5345_v30, %s8216_s29  ;;  %1307 = vmatprep.subr.bf16.mxu0 %v573_v11  ;;  %v562_v32 = vmul.f32 %v5576_v8, %v529_v12  ;;  %v558_v35 = vmul.f32 %v5576_v8, %v528_v13  ;;  %v639_v12 = vsub.s32 2, %v5434_v33 }
  0xcb   : > { %826 = vrot.lane.b32.xlu0 %v5348_v31, %s8216_s29  ;;  %s8109_s29 = scalar_lea.vmem [#allocation4], %s5269_s17  ;;  %s8764_s17 = sadd.s32 4294967295, %s5140_s24  }
  0xcc   : > { %v518_v37 = vpop.permute.xlu1 %517  ;;  %v516_v38 = vpop.permute.xlu0 %515  ;;  %v574_v58 = vpack.c.bf16 %v562_v32, %v558_v35  ;;  %s4173_s16 = sshll.u32 %s8109_s29, 4  ;;  %s8151_s16 = int_to_ptr.vmem [resolvable:$true] %s4173_s16 }
  0xcd   : > { %v525_v40 = vsel %vm523_vm1, %v510_v9, %v518_v37  ;;  %v537_v41 = vsel %vm523_vm1, %v518_v37, %v494_v60  ;;  %v524_v42 = vsel %vm523_vm1, %v508_v10, %v516_v38  ;;  %v536_v43 = vsel %vm523_vm1, %v516_v38, %v492_v61 }
  0xce   : > { %v560_v45 = vmul.f32 %v5585_v14, %v537_v41  ;;  %v563_v46 = vmul.f32 %v5588_v15, %v525_v40  ;;  %v556_v49 = vmul.f32 %v5585_v14, %v536_v43  ;;  %v559_v50 = vmul.f32 %v5588_v15, %v524_v42  ;;  %897 = vrot.lane.b32.xlu1 %v5288_v19, %s8214_s9 }
  0xcf   : > { %895 = vrot.lane.b32.xlu0 %v5278_v17, %s8214_s9 }
  0xd0   : > { %v498_v51 = vpop.permute.xlu1 %497  ;;  %v496_v53 = vpop.permute.xlu0 %495  ;;  %v572_v54 = vpack.c.bf16 %v560_v45, %v556_v49  ;;  %v575_v57 = vpack.c.bf16 %v563_v46, %v559_v50 }
  0xd2   : > { %905 = vrot.lane.b32.xlu1 %v5285_v18, %s8214_s9  ;;  %1308 = vmatpush1.bf16.msra.mxu0 %v572_v54 }
  0xd3   : > { %903 = vrot.lane.b32.xlu0 %v5275_v16, %s8214_s9  ;;  %1413 = vmatprep.subr.bf16.mxu1 %v575_v57 }
  0xd4   : > { %1414 = vmatpush1.bf16.msra.mxu1 %v574_v58  ;;  %v506_v59 = vpop.permute.xlu1 %505  ;;  %v504_v60 = vpop.permute.xlu0 %503 }
  0xd5   : > { %v535_v61 = vsel %vm523_vm1, %v498_v51, %v506_v59  ;;  %v534_v62 = vsel %vm523_vm1, %v496_v53, %v504_v60 }
  0xd6   : > { %v569_v63 = vmul.f32 %v5561_v1, %v535_v61  ;;  %v565_v0 = vmul.f32 %v5561_v1, %v534_v62  ;;  %913 = vrot.lane.b32.xlu1 %v5295_v20, %s8214_s9  ;;  %v5670_v61 = vrot.slane %v5463_v44, %v639_v12 }
  0xd7   : > { %911 = vrot.lane.b32.xlu0 %v5298_v21, %s8214_s9 }
  0xd8   : > { %v514_v2 = vpop.permute.xlu1 %513  ;;  %v512_v3 = vpop.permute.xlu0 %511  ;;  %v577_v4 = vpack.c.bf16 %v569_v63, %v565_v0  ;;  %8453 = vst [vmem:[#allocation17_spill] sm:$0xff] %v5670_v61 }
  0xd9   : > { %v531_v5 = vsel %vm523_vm1, %v506_v59, %v514_v2  ;;  %v530_v6 = vsel %vm523_vm1, %v504_v60, %v512_v3 }
  0xda   : > { %921 = vrot.lane.b32.xlu1 %v5305_v22, %s8214_s9  ;;  %1309 = vmatprep.subr.bf16.mxu0 %v577_v4  ;;  %v570_v7 = vmul.f32 %v5576_v8, %v531_v5  ;;  %v566_v9 = vmul.f32 %v5576_v8, %v530_v6  ;;  %v5679_v4 = vrot.slane %v5474_v47, %v639_v12 }
  0xdb   : > { %919 = vrot.lane.b32.xlu0 %v5308_v23, %s8214_s9  ;;  %v5682_v5 = vrot.slane %v5479_v48, %v639_v12 }
  0xdc   : > { %v522_v10 = vpop.permute.xlu1 %521  ;;  %v520_v11 = vpop.permute.xlu0 %519  ;;  %v578_v50 = vpack.c.bf16 %v570_v7, %v566_v9  ;;  %8454 = vst [vmem:[#allocation18_spill] sm:$0xff] %v5679_v4 }
  0xdd   : > { %v527_v13 = vsel %vm523_vm1, %v514_v2, %v522_v10  ;;  %v539_v32 = vsel %vm523_vm1, %v522_v10, %v498_v51  ;;  %v526_v35 = vsel %vm523_vm1, %v512_v3, %v520_v11  ;;  %v538_v37 = vsel %vm523_vm1, %v520_v11, %v496_v53  ;;  %8455 = vst [vmem:[#allocation19_spill] sm:$0xff] %v5682_v5 }
  0xde   : > { %v568_v38 = vmul.f32 %v5585_v14, %v539_v32  ;;  %v571_v40 = vmul.f32 %v5588_v15, %v527_v13  ;;  %v564_v41 = vmul.f32 %v5585_v14, %v538_v37  ;;  %v567_v42 = vmul.f32 %v5588_v15, %v526_v35  ;;  %901 = vrot.lane.b32.xlu1 %v5315_v24, %s8214_s9 }
  0xdf   : > { %899 = vrot.lane.b32.xlu0 %v5318_v25, %s8214_s9  ;;  %v5655_v51 = vrot.slane %v5446_v36, %v639_v12 }
  0xe0   : > { %v591_v43 = vpop.permute.xlu1 %590  ;;  %v589_v45 = vpop.permute.xlu0 %588  ;;  %v576_v46 = vpack.c.bf16 %v568_v38, %v564_v41  ;;  %v579_v49 = vpack.c.bf16 %v571_v40, %v567_v42 }
  0xe1   : > { %8452 = vst [vmem:[#allocation16_spill] sm:$0xff] %v5655_v51 }
  0xe2   : > { %909 = vrot.lane.b32.xlu1 %v5325_v26, %s8214_s9  ;;  %1310 = vmatpush1.bf16.msra.mxu0 %v576_v46 }
  0xe3   : > { %907 = vrot.lane.b32.xlu0 %v5328_v27, %s8214_s9  ;;  %1415 = vmatprep.subr.bf16.mxu1 %v579_v49 }
  0xe4   : > { %1416 = vmatpush1.bf16.msra.mxu1 %v578_v50  ;;  %v599_v53 = vpop.permute.xlu1 %598  ;;  %v597_v54 = vpop.permute.xlu0 %596 }
  0xe5   : > { %v630_v57 = vsel %vm620_vm2, %v591_v43, %v599_v53  ;;  %v629_v58 = vsel %vm620_vm2, %v589_v45, %v597_v54 }
  0xe6   : > { %v658_v59 = vmul.f32 %v5655_v51, %v630_v57  ;;  %v654_v60 = vmul.f32 %v5655_v51, %v629_v58  ;;  %917 = vrot.lane.b32.xlu1 %v5335_v28, %s8214_s9 }
  0xe7   : > { %915 = vrot.lane.b32.xlu0 %v5338_v29, %s8214_s9 }
  0xe8   : > { %v607_v62 = vpop.permute.xlu1 %606  ;;  %v605_v63 = vpop.permute.xlu0 %604  ;;  %v670_v0 = vpack.c.bf16 %v658_v59, %v654_v60 }
  0xe9   : > { %v626_v2 = vsel %vm620_vm2, %v599_v53, %v607_v62  ;;  %v625_v3 = vsel %vm620_vm2, %v597_v54, %v605_v63 }
  0xea   : > { %925 = vrot.lane.b32.xlu1 %v5345_v30, %s8214_s9  ;;  %1311 = vmatprep.subr.bf16.mxu0 %v670_v0  ;;  %v659_v6 = vmul.f32 %v5670_v61, %v626_v2  ;;  %v655_v7 = vmul.f32 %v5670_v61, %v625_v3 }
  0xeb   : > { %923 = vrot.lane.b32.xlu0 %v5348_v31, %s8214_s9  ;;  %s4328_s9 = sshll.u32 %s8764_s17, 9 }
  0xec   : > { %v615_v9 = vpop.permute.xlu1 %614  ;;  %v613_v10 = vpop.permute.xlu0 %612 }
  0xed   : > { %v622_v11 = vsel %vm620_vm2, %v607_v62, %v615_v9  ;;  %v634_v13 = vsel %vm620_vm2, %v615_v9, %v591_v43  ;;  %v621_v32 = vsel %vm620_vm2, %v605_v63, %v613_v10  ;;  %v633_v12 = vsel %vm620_vm2, %v613_v10, %v589_v45 }
  0xee   : > { %v657_v35 = vmul.f32 %v5679_v4, %v634_v13  ;;  %v660_v37 = vmul.f32 %v5682_v5, %v622_v11  ;;  %v653_v38 = vmul.f32 %v5679_v4, %v633_v12  ;;  %v656_v40 = vmul.f32 %v5682_v5, %v621_v32  ;;  %994 = vrot.lane.b32.xlu1 %v5288_v19, %s8212_s10 }
  0xef   : > { %992 = vrot.lane.b32.xlu0 %v5278_v17, %s8212_s10  ;;  %v671_v45 = vpack.c.bf16 %v659_v6, %v655_v7  ;;  %v736_v9 = vsub.s32 3, %v5434_v33 }
  0xf0   : > { %v595_v41 = vpop.permute.xlu1 %594  ;;  %v593_v42 = vpop.permute.xlu0 %592  ;;  %v669_v43 = vpack.c.bf16 %v657_v35, %v653_v38  ;;  %v672_v46 = vpack.c.bf16 %v660_v37, %v656_v40 }
  0xf2   : > { %1002 = vrot.lane.b32.xlu1 %v5285_v18, %s8212_s10  ;;  %1312 = vmatpush1.bf16.msra.mxu0 %v669_v43 }
  0xf3   : > { %1000 = vrot.lane.b32.xlu0 %v5275_v16, %s8212_s10  ;;  %1417 = vmatprep.subr.bf16.mxu1 %v672_v46 }
  0xf4   : > { %1418 = vmatpush1.bf16.msra.mxu1 %v671_v45  ;;  %v603_v49 = vpop.permute.xlu1 %602  ;;  %v601_v50 = vpop.permute.xlu0 %600  ;;  %v5749_v45 = vrot.slane %v5446_v36, %v736_v9 }
  0xf5   : > { %v632_v53 = vsel %vm620_vm2, %v595_v41, %v603_v49  ;;  %v631_v54 = vsel %vm620_vm2, %v593_v42, %v601_v50 }
  0xf6   : > { %v666_v57 = vmul.f32 %v5655_v51, %v632_v53  ;;  %v662_v58 = vmul.f32 %v5655_v51, %v631_v54  ;;  %1010 = vrot.lane.b32.xlu1 %v5295_v20, %s8212_s10  ;;  %8456 = vst [vmem:[#allocation20_spill] sm:$0xff] %v5749_v45 }
  0xf7   : > { %1008 = vrot.lane.b32.xlu0 %v5298_v21, %s8212_s10 }
  0xf8   : > { %v611_v59 = vpop.permute.xlu1 %610  ;;  %v609_v60 = vpop.permute.xlu0 %608  ;;  %v674_v62 = vpack.c.bf16 %v666_v57, %v662_v58 }
  0xf9   : > { %v628_v63 = vsel %vm620_vm2, %v603_v49, %v611_v59  ;;  %v627_v0 = vsel %vm620_vm2, %v601_v50, %v609_v60 }
  0xfa   : > { %1018 = vrot.lane.b32.xlu1 %v5305_v22, %s8212_s10  ;;  %1313 = vmatprep.subr.bf16.mxu0 %v674_v62  ;;  %v667_v2 = vmul.f32 %v5670_v61, %v628_v63  ;;  %v663_v3 = vmul.f32 %v5670_v61, %v627_v0 }
  0xfb   : > { %1016 = vrot.lane.b32.xlu0 %v5308_v23, %s8212_s10 }
  0xfc   : > { %v619_v6 = vpop.permute.xlu1 %618  ;;  %v617_v7 = vpop.permute.xlu0 %616 }
  0xfd   : > { %v624_v10 = vsel %vm620_vm2, %v611_v59, %v619_v6  ;;  %v636_v11 = vsel %vm620_vm2, %v619_v6, %v595_v41  ;;  %v623_v13 = vsel %vm620_vm2, %v609_v60, %v617_v7  ;;  %v635_v32 = vsel %vm620_vm2, %v617_v7, %v593_v42 }
  0xfe   : > { %v665_v12 = vmul.f32 %v5679_v4, %v636_v11  ;;  %v668_v35 = vmul.f32 %v5682_v5, %v624_v10  ;;  %v661_v37 = vmul.f32 %v5679_v4, %v635_v32  ;;  %v664_v38 = vmul.f32 %v5682_v5, %v623_v13  ;;  %998 = vrot.lane.b32.xlu1 %v5315_v24, %s8212_s10 }
  0xff   : > { %996 = vrot.lane.b32.xlu0 %v5318_v25, %s8212_s10  ;;  %v675_v42 = vpack.c.bf16 %v667_v2, %v663_v3  ;;  %v5764_v59 = vrot.slane %v5463_v44, %v736_v9  ;;  %v5773_v3 = vrot.slane %v5474_v47, %v736_v9  ;;  %v5776_v6 = vrot.slane %v5479_v48, %v736_v9 }
 0x100   : > { %v688_v40 = vpop.permute.xlu1 %687  ;;  %v686_v41 = vpop.permute.xlu0 %685  ;;  %v673_v43 = vpack.c.bf16 %v665_v12, %v661_v37  ;;  %v676_v46 = vpack.c.bf16 %v668_v35, %v664_v38  ;;  %v5024_v37 = vld [vmem:[%s8202_s1 + $0x4] ss:$12 sps:$4 sm:$0xff]  }
 0x101   : > { %8457 = vst [vmem:[#allocation21_spill] sm:$0xff] %v5764_v59  ;;  %8458 = vst [vmem:[#allocation22_spill] sm:$0xff] %v5773_v3  ;;  %1335 = vmatprep.mubr.bf16.mxu0 %v5024_v37  ;;  %1441 = vmatprep.mubr.bf16.mxu1 %v5024_v37 }
 0x102   : > { %1006 = vrot.lane.b32.xlu1 %v5325_v26, %s8212_s10  ;;  %1314 = vmatpush1.bf16.msra.mxu0 %v673_v43  ;;  %8459 = vst [vmem:[#allocation23_spill] sm:$0xff] %v5776_v6 }
 0x103   : > { %1004 = vrot.lane.b32.xlu0 %v5328_v27, %s8212_s10  ;;  %1419 = vmatprep.subr.bf16.mxu1 %v676_v46 }
 0x104   : > { %1420 = vmatpush1.bf16.msra.mxu1 %v675_v42  ;;  %v696_v49 = vpop.permute.xlu1 %695  ;;  %v694_v50 = vpop.permute.xlu0 %693 }
 0x105   : > { %v727_v53 = vsel %vm717_vm3, %v688_v40, %v696_v49  ;;  %v726_v54 = vsel %vm717_vm3, %v686_v41, %v694_v50 }
 0x106   : > { %v755_v57 = vmul.f32 %v5749_v45, %v727_v53  ;;  %v751_v58 = vmul.f32 %v5749_v45, %v726_v54  ;;  %1014 = vrot.lane.b32.xlu1 %v5335_v28, %s8212_s10 }
 0x107   : > { %1012 = vrot.lane.b32.xlu0 %v5338_v29, %s8212_s10 }
 0x108   : > { %v704_v60 = vpop.permute.xlu1 %703  ;;  %v702_v62 = vpop.permute.xlu0 %701  ;;  %v767_v63 = vpack.c.bf16 %v755_v57, %v751_v58 }
 0x109   : > { %v723_v0 = vsel %vm717_vm3, %v696_v49, %v704_v60  ;;  %v722_v2 = vsel %vm717_vm3, %v694_v50, %v702_v62 }
 0x10a   : > { %1022 = vrot.lane.b32.xlu1 %v5345_v30, %s8212_s10  ;;  %1315 = vmatprep.subr.bf16.mxu0 %v767_v63  ;;  %v756_v7 = vmul.f32 %v5764_v59, %v723_v0  ;;  %v752_v10 = vmul.f32 %v5764_v59, %v722_v2 }
 0x10b   : > { %1020 = vrot.lane.b32.xlu0 %v5348_v31, %s8212_s10 }
 0x10c   : > { %v712_v11 = vpop.permute.xlu1 %711  ;;  %v710_v13 = vpop.permute.xlu0 %709  ;;  %v768_v53 = vpack.c.bf16 %v756_v7, %v752_v10 }
 0x10d   : > { %v719_v32 = vsel %vm717_vm3, %v704_v60, %v712_v11  ;;  %v731_v12 = vsel %vm717_vm3, %v712_v11, %v688_v40  ;;  %v718_v35 = vsel %vm717_vm3, %v702_v62, %v710_v13  ;;  %v730_v9 = vsel %vm717_vm3, %v710_v13, %v686_v41 }
 0x10e   : > { %v754_v38 = vmul.f32 %v5773_v3, %v731_v12  ;;  %v757_v43 = vmul.f32 %v5776_v6, %v719_v32  ;;  %v750_v46 = vmul.f32 %v5773_v3, %v730_v9  ;;  %v753_v42 = vmul.f32 %v5776_v6, %v718_v35  ;;  %1091 = vrot.lane.b32.xlu1 %v5288_v19, %s8210_s13 }
 0x10f   : > { %1089 = vrot.lane.b32.xlu0 %v5278_v17, %s8210_s13 }
 0x110   : > { %v692_v40 = vpop.permute.xlu1 %691  ;;  %v690_v41 = vpop.permute.xlu0 %689  ;;  %v766_v49 = vpack.c.bf16 %v754_v38, %v750_v46  ;;  %v769_v50 = vpack.c.bf16 %v757_v43, %v753_v42 }
 0x112   : > { %1099 = vrot.lane.b32.xlu1 %v5285_v18, %s8210_s13  ;;  %1316 = vmatpush1.bf16.msra.mxu0 %v766_v49 }
 0x113   : > { %1097 = vrot.lane.b32.xlu0 %v5275_v16, %s8210_s13  ;;  %1421 = vmatprep.subr.bf16.mxu1 %v769_v50 }
 0x114   : > { %1422 = vmatpush1.bf16.msra.mxu1 %v768_v53  ;;  %v700_v54 = vpop.permute.xlu1 %699  ;;  %v698_v57 = vpop.permute.xlu0 %697 }
 0x115   : > { %v729_v58 = vsel %vm717_vm3, %v692_v40, %v700_v54  ;;  %v728_v60 = vsel %vm717_vm3, %v690_v41, %v698_v57 }
 0x116   : > { %v763_v62 = vmul.f32 %v5749_v45, %v729_v58  ;;  %v759_v63 = vmul.f32 %v5749_v45, %v728_v60  ;;  %1107 = vrot.lane.b32.xlu1 %v5295_v20, %s8210_s13  ;;  %v783_v58 = vpack.c.bf16 %v5285_v18, %v5275_v16  ;;  %v785_v60 = vpack.c.bf16 %v5305_v22, %v5308_v23 }
 0x117   : > { %1105 = vrot.lane.b32.xlu0 %v5298_v21, %s8210_s13  ;;  %v787_v16 = vpack.c.bf16 %v5325_v26, %v5328_v27  ;;  %v5151_v45 = vmov 1983009808  }
 0x118   : > { %v708_v0 = vpop.permute.xlu1 %707  ;;  %v706_v2 = vpop.permute.xlu0 %705  ;;  %v771_v7 = vpack.c.bf16 %v763_v62, %v759_v63  ;;  %v782_v63 = vpack.c.bf16 %v5288_v19, %v5278_v17  ;;  %v1692_v5 = vunpack.c.l.s4 %v5151_v45 }
 0x119   : > { %v725_v10 = vsel %vm717_vm3, %v700_v54, %v708_v0  ;;  %v724_v11 = vsel %vm717_vm3, %v698_v57, %v706_v2 }
 0x11a   : > { %1115 = vrot.lane.b32.xlu1 %v5305_v22, %s8210_s13  ;;  %1317 = vmatprep.subr.bf16.mxu0 %v771_v7  ;;  %v764_v13 = vmul.f32 %v5764_v59, %v725_v10  ;;  %v760_v32 = vmul.f32 %v5764_v59, %v724_v11  ;;  %v788_v11 = vpack.c.bf16 %v5335_v28, %v5338_v29  ;;  %v391_v59 = vld [vmem:[%s8206_s5] sm:$0xff]  ;;  %v1693_v4 = vunpack.c.0.s8 %v1692_v5 }
 0x11b   : > { %1113 = vrot.lane.b32.xlu0 %v5308_v23, %s8210_s13  ;;  %v1690_v61 = vcombine.high %v391_v59, %v391_v59 }
 0x11c   : > { %v716_v12 = vpop.permute.xlu1 %715  ;;  %v714_v35 = vpop.permute.xlu0 %713  ;;  %v772_v62 = vpack.c.bf16 %v764_v13, %v760_v32  ;;  %v1696_v51 = vsub.s32 %v1693_v4, %v5434_v33 }
 0x11d   : > { %v721_v9 = vsel %vm717_vm3, %v708_v0, %v716_v12  ;;  %v733_v37 = vsel %vm717_vm3, %v716_v12, %v692_v40  ;;  %v720_v38 = vsel %vm717_vm3, %v706_v2, %v714_v35  ;;  %v732_v43 = vsel %vm717_vm3, %v714_v35, %v690_v41 }
 0x11e   : > { %v762_v46 = vmul.f32 %v5773_v3, %v733_v37  ;;  %v765_v42 = vmul.f32 %v5776_v6, %v721_v9  ;;  %v758_v49 = vmul.f32 %v5773_v3, %v732_v43  ;;  %v761_v50 = vmul.f32 %v5776_v6, %v720_v38  ;;  %1095 = vrot.lane.b32.xlu1 %v5315_v24, %s8210_s13 }
 0x11f   : > { %1093 = vrot.lane.b32.xlu0 %v5318_v25, %s8210_s13  ;;  %v849_v41 = vsub.s32 5, %v5434_v33  ;;  %v784_v0 = vpack.c.bf16 %v5295_v20, %v5298_v21  ;;  %v786_v20 = vpack.c.bf16 %v5315_v24, %v5318_v25  ;;  %v6469_v15 = vrot.slane %v391_v59, %v1696_v51 }
 0x120   : > { %v801_v40 = vpop.permute.xlu1 %800  ;;  %v799_v53 = vpop.permute.xlu0 %798  ;;  %v770_v54 = vpack.c.bf16 %v762_v46, %v758_v49  ;;  %v773_v57 = vpack.c.bf16 %v765_v42, %v761_v50  ;;  %v6471_v14 = vrot.slane %v1690_v61, %v1696_v51 }
 0x121   : > { %v5856_v18 = vrot.slane %v5474_v47, %v849_v41  ;;  %v5884_v25 = vrot.slane %v5463_v44, %v849_v41  ;;  %8510 = vst [vmem:[#allocation74_spill] sm:$0xff] %v6469_v15  ;;  %v6475_v8 = vcombine.high %v6469_v15, %v6469_v15 }
 0x122   : > { %1103 = vrot.lane.b32.xlu1 %v5325_v26, %s8210_s13  ;;  %1318 = vmatpush1.bf16.msra.mxu0 %v770_v54  ;;  %v789_v26 = vpack.c.bf16 %v5345_v30, %v5348_v31  ;;  %8511 = vst [vmem:[#allocation75_spill] sm:$0xff] %v6471_v14  ;;  %v6479_v1 = vcombine.high %v6471_v14, %v6471_v14 }
 0x123   : > { %1101 = vrot.lane.b32.xlu0 %v5328_v27, %s8210_s13  ;;  %1423 = vmatprep.subr.bf16.mxu1 %v773_v57  ;;  %8460 = vst [vmem:[#allocation24_spill] sm:$0xff] %v5856_v18  ;;  %v5869_v27 = vrot.slane %v5446_v36, %v849_v41  ;;  %8462 = vst [vmem:[#allocation26_spill] sm:$0xff] %v5884_v25 }
 0x124   : > { %1424 = vmatpush1.bf16.msra.mxu1 %v772_v62  ;;  %v809_v22 = vpop.permute.xlu1 %808  ;;  %v807_v23 = vpop.permute.xlu0 %806  ;;  %1319 = vmatprep.subr.bf16.mxu0 %v783_v58  ;;  %8512 = vst [vmem:[#allocation76_spill] sm:$0xff] %v6475_v8  ;;  %8513 = vst [vmem:[#allocation77_spill] sm:$0xff] %v6479_v1 }
 0x125   : > { %v840_v17 = vsel %vm830_vm4, %v801_v40, %v809_v22  ;;  %v839_v19 = vsel %vm830_vm4, %v799_v53, %v807_v23  ;;  %1425 = vmatprep.subr.bf16.mxu1 %v785_v60  ;;  %8461 = vst [vmem:[#allocation25_spill] sm:$0xff] %v5869_v27 }
 0x126   : > { %1111 = vrot.lane.b32.xlu1 %v5335_v28, %s8210_s13  ;;  %1320 = vmatpush1.bf16.msra.mxu0 %v782_v63  ;;  %v867_v21 = vmul.f32 %v5856_v18, %v840_v17  ;;  %v863_v2 = vmul.f32 %v5856_v18, %v839_v19  ;;  %v5891_v28 = vrot.slane %v5479_v48, %v849_v41 }
 0x127   : > { %1109 = vrot.lane.b32.xlu0 %v5338_v29, %s8210_s13  ;;  %1321 = vmatprep.subr.bf16.mxu0 %v787_v16 }
 0x128   : > { %v817_v7 = vpop.permute.xlu1 %816  ;;  %v815_v10 = vpop.permute.xlu0 %814  ;;  %1426 = vmatpush1.bf16.msra.mxu1 %v784_v0  ;;  %8463 = vst [vmem:[#allocation27_spill] sm:$0xff] %v5891_v28  ;;  %v879_v37 = vpack.c.bf16 %v867_v21, %v863_v2 }
 0x129   : > { %v836_v13 = vsel %vm830_vm4, %v809_v22, %v817_v7  ;;  %v835_v24 = vsel %vm830_vm4, %v807_v23, %v815_v10  ;;  %1427 = vmatprep.subr.bf16.mxu1 %v789_v26 }
 0x12a   : > { %v868_v32 = vmul.f32 %v5869_v27, %v836_v13  ;;  %v864_v12 = vmul.f32 %v5869_v27, %v835_v24  ;;  %1119 = vrot.lane.b32.xlu1 %v5345_v30, %s8210_s13  ;;  %1322 = vmatpush1.bf16.msra.mxu0 %v786_v20 }
 0x12b   : > { %1117 = vrot.lane.b32.xlu0 %v5348_v31, %s8210_s13 }
 0x12c   : > { %v825_v29 = vpop.permute.xlu1 %824  ;;  %v823_v35 = vpop.permute.xlu0 %822  ;;  %v880_v9 = vpack.c.bf16 %v868_v32, %v864_v12  ;;  %1428 = vmatpush1.bf16.msra.mxu1 %v788_v11 }
 0x12d   : > { %v832_v38 = vsel %vm830_vm4, %v817_v7, %v825_v29  ;;  %v844_v43 = vsel %vm830_vm4, %v825_v29, %v801_v40  ;;  %v831_v30 = vsel %vm830_vm4, %v815_v10, %v823_v35  ;;  %v843_v46 = vsel %vm830_vm4, %v823_v35, %v799_v53 }
 0x12e   : > { %v869_v42 = vmul.f32 %v5884_v25, %v832_v38  ;;  %v870_v31 = vmul.f32 %v5891_v28, %v844_v43  ;;  %v865_v49 = vmul.f32 %v5884_v25, %v831_v30  ;;  %v866_v50 = vmul.f32 %v5891_v28, %v843_v46  ;;  %1323 = vmatprep.subr.bf16.mxu0 %v880_v9 }
 0x12f   : > { %1324 = vmatpush1.bf16.msra.mxu0 %v879_v37  ;;  %v946_v30 = vsub.s32 6, %v5434_v33 }
 0x130   : > { %v805_v54 = vpop.permute.xlu1 %804  ;;  %v882_v57 = vpack.c.bf16 %v870_v31, %v866_v50  ;;  %v881_v41 = vpack.c.bf16 %v869_v42, %v865_v49 }
 0x131   : > { %v803_v40 = vpop.permute.xlu0 %802  ;;  %v5934_v42 = vrot.slane %v5474_v47, %v946_v30 }
 0x132   : > { %1429 = vmatprep.subr.bf16.mxu1 %v882_v57 }
 0x133   : > { %1430 = vmatpush1.bf16.msra.mxu1 %v881_v41  ;;  %8464 = vst [vmem:[#allocation28_spill] sm:$0xff] %v5934_v42 }
 0x134   : > { %v813_v58 = vpop.permute.xlu1 %812 }
 0x135   : > { %v811_v60 = vpop.permute.xlu0 %810  ;;  %v842_v53 = vsel %vm830_vm4, %v805_v54, %v813_v58 }
 0x136   : > { %v841_v62 = vsel %vm830_vm4, %v803_v40, %v811_v60  ;;  %v875_v16 = vmul.f32 %v5856_v18, %v842_v53 }
 0x137   : > { %v871_v22 = vmul.f32 %v5856_v18, %v841_v62 }
 0x138   : > { %v821_v63 = vpop.permute.xlu1 %820 }
 0x139   : > { %v838_v23 = vsel %vm830_vm4, %v813_v58, %v821_v63  ;;  %v819_v0 = vpop.permute.xlu0 %818  ;;  %v883_v11 = vpack.c.bf16 %v875_v16, %v871_v22 }
 0x13a   : > { %v876_v17 = vmul.f32 %v5869_v27, %v838_v23  ;;  %v837_v19 = vsel %vm830_vm4, %v811_v60, %v819_v0 }
 0x13b   : > { %v872_v26 = vmul.f32 %v5869_v27, %v837_v19 }
 0x13c   : > { %v829_v20 = vpop.permute.xlu1 %828 }
 0x13d   : > { %v834_v21 = vsel %vm830_vm4, %v821_v63, %v829_v20  ;;  %v846_v2 = vsel %vm830_vm4, %v829_v20, %v805_v54  ;;  %v827_v7 = vpop.permute.xlu0 %826  ;;  %v884_v10 = vpack.c.bf16 %v876_v17, %v872_v26  ;;  %v5941_v54 = vrot.slane %v5446_v36, %v946_v30 }
 0x13e   : > { %v877_v13 = vmul.f32 %v5884_v25, %v834_v21  ;;  %v878_v24 = vmul.f32 %v5891_v28, %v846_v2  ;;  %v833_v32 = vsel %vm830_vm4, %v819_v0, %v827_v7  ;;  %v845_v12 = vsel %vm830_vm4, %v827_v7, %v803_v40 }
 0x13f   : > { %v873_v29 = vmul.f32 %v5884_v25, %v833_v32  ;;  %v874_v35 = vmul.f32 %v5891_v28, %v845_v12  ;;  %1325 = vmatprep.subr.bf16.mxu0 %v884_v10  ;;  %8465 = vst [vmem:[#allocation29_spill] sm:$0xff] %v5941_v54  ;;  %v5951_v63 = vrot.slane %v5463_v44, %v946_v30 }
 0x140   : > { %1326 = vmatpush1.bf16.msra.mxu0 %v883_v11  ;;  %v898_v9 = vpop.permute.xlu1 %897  ;;  %v5954_v36 = vrot.slane %v5479_v48, %v946_v30 }
 0x141   : > { %v896_v37 = vpop.permute.xlu0 %895  ;;  %v886_v38 = vpack.c.bf16 %v878_v24, %v874_v35  ;;  %v885_v43 = vpack.c.bf16 %v877_v13, %v873_v29  ;;  %8466 = vst [vmem:[#allocation30_spill] sm:$0xff] %v5951_v63 }
 0x142   : > { %8467 = vst [vmem:[#allocation31_spill] sm:$0xff] %v5954_v36 }
 0x143   : > { %1431 = vmatprep.subr.bf16.mxu1 %v886_v38 }
 0x144   : > { %1432 = vmatpush1.bf16.msra.mxu1 %v885_v43  ;;  %v906_v46 = vpop.permute.xlu1 %905 }
 0x145   : > { %v904_v31 = vpop.permute.xlu0 %903  ;;  %v937_v49 = vsel %vm927_vm5, %v898_v9, %v906_v46 }
 0x146   : > { %v936_v50 = vsel %vm927_vm5, %v896_v37, %v904_v31  ;;  %v964_v41 = vmul.f32 %v5934_v42, %v937_v49 }
 0x147   : > { %v960_v40 = vmul.f32 %v5934_v42, %v936_v50 }
 0x148   : > { %v914_v57 = vpop.permute.xlu1 %913 }
 0x149   : > { %v933_v58 = vsel %vm927_vm5, %v906_v46, %v914_v57  ;;  %v912_v60 = vpop.permute.xlu0 %911  ;;  %v976_v26 = vpack.c.bf16 %v964_v41, %v960_v40 }
 0x14a   : > { %v965_v53 = vmul.f32 %v5941_v54, %v933_v58  ;;  %v932_v62 = vsel %vm927_vm5, %v904_v31, %v912_v60 }
 0x14b   : > { %v961_v16 = vmul.f32 %v5941_v54, %v932_v62 }
 0x14c   : > { %v922_v22 = vpop.permute.xlu1 %921 }
 0x14d   : > { %v929_v23 = vsel %vm927_vm5, %v914_v57, %v922_v22  ;;  %v941_v0 = vsel %vm927_vm5, %v922_v22, %v898_v9  ;;  %v920_v17 = vpop.permute.xlu0 %919  ;;  %v977_v19 = vpack.c.bf16 %v965_v53, %v961_v16 }
 0x14e   : > { %v966_v20 = vmul.f32 %v5951_v63, %v929_v23  ;;  %v967_v44 = vmul.f32 %v5954_v36, %v941_v0  ;;  %v928_v48 = vsel %vm927_vm5, %v912_v60, %v920_v17  ;;  %v940_v21 = vsel %vm927_vm5, %v920_v17, %v896_v37 }
 0x14f   : > { %v962_v2 = vmul.f32 %v5951_v63, %v928_v48  ;;  %v963_v7 = vmul.f32 %v5954_v36, %v940_v21  ;;  %1327 = vmatprep.subr.bf16.mxu0 %v977_v19 }
 0x150   : > { %1328 = vmatpush1.bf16.msra.mxu0 %v976_v26  ;;  %v902_v10 = vpop.permute.xlu1 %901 }
 0x151   : > { %v900_v11 = vpop.permute.xlu0 %899  ;;  %v979_v13 = vpack.c.bf16 %v967_v44, %v963_v7  ;;  %v978_v24 = vpack.c.bf16 %v966_v20, %v962_v2  ;;  %v1043_v44 = vsub.s32 7, %v5434_v33  ;;  %v8281_v33 = vmov 0.0  }
 0x153   : > { %1433 = vmatprep.subr.bf16.mxu1 %v979_v13  ;;  %v5996_v21 = vrot.slane %v5474_v47, %v1043_v44 }
 0x154   : > { %1434 = vmatpush1.bf16.msra.mxu1 %v978_v24  ;;  %v910_v32 = vpop.permute.xlu1 %909 }
 0x155   : > { %v908_v12 = vpop.permute.xlu0 %907  ;;  %v939_v29 = vsel %vm927_vm5, %v902_v10, %v910_v32  ;;  %8468 = vst [vmem:[#allocation32_spill] sm:$0xff] %v5996_v21 }
 0x156   : > { %v938_v35 = vsel %vm927_vm5, %v900_v11, %v908_v12  ;;  %v972_v37 = vmul.f32 %v5934_v42, %v939_v29 }
 0x157   : > { %v968_v38 = vmul.f32 %v5934_v42, %v938_v35 }
 0x158   : > { %v918_v9 = vpop.permute.xlu1 %917 }
 0x159   : > { %v935_v43 = vsel %vm927_vm5, %v910_v32, %v918_v9  ;;  %v916_v30 = vpop.permute.xlu0 %915  ;;  %v980_v60 = vpack.c.bf16 %v972_v37, %v968_v38  ;;  %v5056_v37 = vld [vmem:[%s8204_s3 + $0x10] sm:$0xff] }
 0x15a   : > { %v973_v46 = vmul.f32 %v5941_v54, %v935_v43  ;;  %v934_v31 = vsel %vm927_vm5, %v908_v12, %v916_v30  ;;  %v6017_v38 = vrot.slane %v5056_v37, %v1043_v44  ;;  %v5057_v43 = vld [vmem:[%s8204_s3 + $0x18] sm:$0xff] }
 0x15b   : > { %v969_v49 = vmul.f32 %v5941_v54, %v934_v31 }
 0x15c   : > { %v926_v50 = vpop.permute.xlu1 %925  ;;  %8470 = vst [vmem:[#allocation34_spill] sm:$0xff] %v6017_v38 }
 0x15d   : > { %v931_v57 = vsel %vm927_vm5, %v918_v9, %v926_v50  ;;  %v943_v41 = vsel %vm927_vm5, %v926_v50, %v902_v10  ;;  %v924_v40 = vpop.permute.xlu0 %923  ;;  %v981_v58 = vpack.c.bf16 %v973_v46, %v969_v49 }
 0x15e   : > { %v974_v53 = vmul.f32 %v5951_v63, %v931_v57  ;;  %v975_v62 = vmul.f32 %v5954_v36, %v943_v41  ;;  %v930_v16 = vsel %vm927_vm5, %v916_v30, %v924_v40  ;;  %v942_v22 = vsel %vm927_vm5, %v924_v40, %v900_v11  ;;  %v5055_v11 = vld [vmem:[%s8204_s3 + $0x8] sm:$0xff] }
 0x15f   : > { %v970_v23 = vmul.f32 %v5951_v63, %v930_v16  ;;  %v971_v0 = vmul.f32 %v5954_v36, %v942_v22  ;;  %1329 = vmatprep.subr.bf16.mxu0 %v981_v58  ;;  %v6005_v13 = vrot.slane %v5055_v11, %v1043_v44  ;;  %v6022_v30 = vrot.slane %v5057_v43, %v1043_v44 }
 0x160   : > { %1330 = vmatpush1.bf16.msra.mxu0 %v980_v60  ;;  %v995_v17 = vpop.permute.xlu1 %994 }
 0x161   : > { %v993_v19 = vpop.permute.xlu0 %992  ;;  %v983_v26 = vpack.c.bf16 %v975_v62, %v971_v0  ;;  %v982_v20 = vpack.c.bf16 %v974_v53, %v970_v23  ;;  %8469 = vst [vmem:[#allocation33_spill] sm:$0xff] %v6005_v13  ;;  %8471 = vst [vmem:[#allocation35_spill] sm:$0xff] %v6022_v30 }
 0x163   : > { %1435 = vmatprep.subr.bf16.mxu1 %v983_v26 }
 0x164   : > { %1436 = vmatpush1.bf16.msra.mxu1 %v982_v20  ;;  %v1003_v48 = vpop.permute.xlu1 %1002 }
 0x165   : > { %v1001_v2 = vpop.permute.xlu0 %1000  ;;  %v1034_v7 = vsel %vm1024_vm6, %v995_v17, %v1003_v48 }
 0x166   : > { %v1033_v10 = vsel %vm1024_vm6, %v993_v19, %v1001_v2  ;;  %v1061_v32 = vmul.f32 %v5996_v21, %v1034_v7 }
 0x167   : > { %v1057_v12 = vmul.f32 %v5996_v21, %v1033_v10 }
 0x168   : > { %v1011_v24 = vpop.permute.xlu1 %1010 }
 0x169   : > { %v1030_v47 = vsel %vm1024_vm6, %v1003_v48, %v1011_v24  ;;  %v1009_v29 = vpop.permute.xlu0 %1008  ;;  %v1073_v40 = vpack.c.bf16 %v1061_v32, %v1057_v12 }
 0x16a   : > { %v1062_v35 = vmul.f32 %v6005_v13, %v1030_v47  ;;  %v1029_v9 = vsel %vm1024_vm6, %v1001_v2, %v1009_v29 }
 0x16b   : > { %v1058_v46 = vmul.f32 %v6005_v13, %v1029_v9 }
 0x16c   : > { %v1019_v31 = vpop.permute.xlu1 %1018 }
 0x16d   : > { %v1026_v49 = vsel %vm1024_vm6, %v1011_v24, %v1019_v31  ;;  %v1038_v50 = vsel %vm1024_vm6, %v1019_v31, %v995_v17  ;;  %v1017_v57 = vpop.permute.xlu0 %1016  ;;  %v1074_v41 = vpack.c.bf16 %v1062_v35, %v1058_v46 }
 0x16e   : > { %v1063_v58 = vmul.f32 %v6017_v38, %v1026_v49  ;;  %v1064_v60 = vmul.f32 %v6022_v30, %v1038_v50  ;;  %v1025_v53 = vsel %vm1024_vm6, %v1009_v29, %v1017_v57  ;;  %v1037_v62 = vsel %vm1024_vm6, %v1017_v57, %v993_v19 }
 0x16f   : > { %v1059_v16 = vmul.f32 %v6017_v38, %v1025_v53  ;;  %v1060_v22 = vmul.f32 %v6022_v30, %v1037_v62  ;;  %1331 = vmatprep.subr.bf16.mxu0 %v1074_v41  ;;  %v5025_v53 = vld [vmem:[%s8202_s1 + $0x1c] ss:$12 sps:$4 sm:$0xff]  }
 0x170   : > { %1332 = vmatpush1.bf16.msra.mxu0 %v1073_v40  ;;  %v999_v23 = vpop.permute.xlu1 %998 }
 0x171   : > { %v997_v0 = vpop.permute.xlu0 %996  ;;  %v1076_v17 = vpack.c.bf16 %v1064_v60, %v1060_v22  ;;  %v1075_v26 = vpack.c.bf16 %v1063_v58, %v1059_v16  ;;  %v5022_v58 = vld [vmem:[%s8202_s1] ss:$12 sps:$4 sm:$0xff]  }
 0x173   : > { %1437 = vmatprep.subr.bf16.mxu1 %v1076_v17  ;;  %v4250_v17 = vld [vmem:[%s8204_s3 + $0x20] ss:$0 sm:$0xff] }
 0x174   : > { %1438 = vmatpush1.bf16.msra.mxu1 %v1075_v26  ;;  %v1007_v20 = vpop.permute.xlu1 %1006 }
 0x175   : > { %v1005_v44 = vpop.permute.xlu0 %1004  ;;  %v1036_v48 = vsel %vm1024_vm6, %v999_v23, %v1007_v20 }
 0x176   : > { %v1035_v19 = vsel %vm1024_vm6, %v997_v0, %v1005_v44  ;;  %v1069_v7 = vmul.f32 %v5996_v21, %v1036_v48  ;;  %v5027_v48 = vld [vmem:[%s8202_s1 + $0x18] ss:$12 sps:$4 sm:$0xff]  }
 0x177   : > { %v1065_v10 = vmul.f32 %v5996_v21, %v1035_v19 }
 0x178   : > { %v1015_v2 = vpop.permute.xlu1 %1014 }
 0x179   : > { %v1032_v11 = vsel %vm1024_vm6, %v1007_v20, %v1015_v2  ;;  %v1013_v24 = vpop.permute.xlu0 %1012  ;;  %v1077_v46 = vpack.c.bf16 %v1069_v7, %v1065_v10 }
 0x17a   : > { %v1070_v32 = vmul.f32 %v6005_v13, %v1032_v11  ;;  %v1031_v12 = vsel %vm1024_vm6, %v1005_v44, %v1013_v24  ;;  %v4251_v44 = vld [vmem:[%s8204_s3 + $0x28] ss:$0 sm:$0xff] }
 0x17b   : > { %v1066_v47 = vmul.f32 %v6005_v13, %v1031_v12 }
 0x17c   : > { %v1023_v29 = vpop.permute.xlu1 %1022 }
 0x17d   : > { %v1028_v35 = vsel %vm1024_vm6, %v1015_v2, %v1023_v29  ;;  %v1040_v9 = vsel %vm1024_vm6, %v1023_v29, %v999_v23  ;;  %v1021_v37 = vpop.permute.xlu0 %1020  ;;  %v1078_v43 = vpack.c.bf16 %v1070_v32, %v1066_v47  ;;  %v4252_v47 = vld [vmem:[%s8204_s3 + $0x30] ss:$0 sm:$0xff]  ;;  %v4253_v29 = vld [vmem:[%s8204_s3 + $0x38] ss:$0 sm:$0xff] }
 0x17e   : > { %v1071_v31 = vmul.f32 %v6017_v38, %v1028_v35  ;;  %v1072_v49 = vmul.f32 %v6022_v30, %v1040_v9  ;;  %v1027_v50 = vsel %vm1024_vm6, %v1013_v24, %v1021_v37  ;;  %v1039_v57 = vsel %vm1024_vm6, %v1021_v37, %v997_v0 }
 0x17f   : > { %v1067_v41 = vmul.f32 %v6017_v38, %v1027_v50  ;;  %v1068_v40 = vmul.f32 %v6022_v30, %v1039_v57  ;;  %1333 = vmatprep.subr.bf16.mxu0 %v1078_v43  ;;  %v8218_v9 = vmov 0  }
 0x180   : > { %1334 = vmatpush1.bf16.msra.mxu0 %v1077_v46  ;;  %v1092_v60 = vpop.permute.xlu1 %1091 }
 0x181   : > { %v1090_v62 = vpop.permute.xlu0 %1089  ;;  %v1080_v16 = vpack.c.bf16 %v1072_v49, %v1068_v40  ;;  %v1079_v22 = vpack.c.bf16 %v1071_v31, %v1067_v41 }
 0x183   : > { %1439 = vmatprep.subr.bf16.mxu1 %v1080_v16  ;;  %1336 = vmatmul.mubr.bf16.vlgmr.msra.gmra.mrb[0].mxu0 %v5022_v58 }
 0x184   : > { %1440 = vmatpush1.bf16.msra.mxu1 %v1079_v22  ;;  %v1100_v23 = vpop.permute.xlu1 %1099  ;;  %1345 = vmatprep.mubr.bf16.mxu0 %v5025_v53 }
 0x185   : > { %v1098_v0 = vpop.permute.xlu0 %1097  ;;  %v1131_v26 = vsel %vm1121_vm7, %v1092_v60, %v1100_v23 }
 0x186   : > { %v1130_v20 = vsel %vm1121_vm7, %v1090_v62, %v1098_v0  ;;  %v1158_v2 = vmul.f32 %v4250_v17, %v1131_v26 }
 0x187   : > { %1442 = vmatmul.mubr.bf16.vlgmr.msra.gmra.mrb[0].mxu1 %v5022_v58  ;;  %v1154_v7 = vmul.f32 %v4250_v17, %v1130_v20 }
 0x188   : > { %v1108_v19 = vpop.permute.xlu1 %1107  ;;  %1451 = vmatprep.mubr.bf16.mxu1 %v5025_v53 }
 0x189   : > { %v1127_v10 = vsel %vm1121_vm7, %v1100_v23, %v1108_v19  ;;  %v1106_v11 = vpop.permute.xlu0 %1105  ;;  %v1170_v37 = vpack.c.bf16 %v1158_v2, %v1154_v7 }
 0x18a   : > { %v1159_v24 = vmul.f32 %v4251_v44, %v1127_v10  ;;  %v1126_v32 = vsel %vm1121_vm7, %v1098_v0, %v1106_v11 }
 0x18b   : > { %v1155_v12 = vmul.f32 %v4251_v44, %v1126_v32  ;;  %1346 = vmatmul.mubr.bf16.gmra.mrb[4].mxu0 %v5027_v48 }
 0x18c   : > { %v1116_v35 = vpop.permute.xlu1 %1115  ;;  %1388 = vmatprep.mubr.bf16.mxu0 %v8218_v9 }
 0x18d   : > { %v1123_v43 = vsel %vm1121_vm7, %v1108_v19, %v1116_v35  ;;  %v1135_v46 = vsel %vm1121_vm7, %v1116_v35, %v1092_v60  ;;  %v1114_v31 = vpop.permute.xlu0 %1113  ;;  %v1171_v49 = vpack.c.bf16 %v1159_v24, %v1155_v12  ;;  %v344_v24 = vld [vmem:[%s8205_s4 + $0x88] sm:$0xff] }
 0x18e   : > { %v1160_v50 = vmul.f32 %v4252_v47, %v1123_v43  ;;  %v1161_v57 = vmul.f32 %v4253_v29, %v1135_v46  ;;  %v1122_v41 = vsel %vm1121_vm7, %v1106_v11, %v1114_v31  ;;  %v1134_v40 = vsel %vm1121_vm7, %v1114_v31, %v1090_v62  ;;  %v343_v11 = vld [vmem:[%s8205_s4 + $0x80] sm:$0xff] }
 0x18f   : > { %v1156_v58 = vmul.f32 %v4252_v47, %v1122_v41  ;;  %v1157_v53 = vmul.f32 %v4253_v29, %v1134_v40  ;;  %1356 = vmatprep.subr.bf16.mxu0 %v1171_v49  ;;  %1452 = vmatmul.mubr.bf16.gmra.mrb[4].mxu1 %v5027_v48  ;;  %v6115_v43 = vpack.c.bf16 %v344_v24, %v343_v11  ;;  %v330_v11 = vld [vmem:[%s8205_s4 + $0x18] sm:$0xff]  ;;  %v377_v24 = vld [vmem:[%s8205_s4 + $0x190] sm:$0xff] }
 0x190   : > { %1357 = vmatpush1.bf16.msra.mxu0 %v1170_v37  ;;  %v1096_v16 = vpop.permute.xlu1 %1095  ;;  %1494 = vmatprep.mubr.bf16.mxu1 %v8218_v9 }
 0x191   : > { %v1172_v22 = vpack.c.bf16 %v1160_v50, %v1156_v58  ;;  %v1094_v60 = vpop.permute.xlu0 %1093  ;;  %v1173_v23 = vpack.c.bf16 %v1161_v57, %v1157_v53  ;;  %8472 = vst [vmem:[#allocation36_spill] sm:$0xff] %v6115_v43  ;;  %v327_v57 = vld [vmem:[%s8205_s4] sm:$0xff]  ;;  %v328_v53 = vld [vmem:[%s8205_s4 + $0x8] sm:$0xff] }
 0x193   : > { %1462 = vmatprep.subr.bf16.mxu1 %v1173_v23 }
 0x194   : > { %1463 = vmatpush1.bf16.msra.mxu1 %v1172_v22  ;;  %v1104_v0 = vpop.permute.xlu1 %1103  ;;  %v376_v22 = vld [vmem:[%s8205_s4 + $0x188] sm:$0xff] }
 0x195   : > { %v1102_v26 = vpop.permute.xlu0 %1101  ;;  %v1133_v20 = vsel %vm1121_vm7, %v1096_v16, %v1104_v0 }
 0x196   : > { %v1132_v62 = vsel %vm1121_vm7, %v1094_v60, %v1102_v26  ;;  %v1166_v2 = vmul.f32 %v4250_v17, %v1133_v20  ;;  %v346_v20 = vld [vmem:[%s8205_s4 + $0x98] sm:$0xff] }
 0x197   : > { %v1162_v48 = vmul.f32 %v4250_v17, %v1132_v62 }
 0x198   : > { %v1112_v19 = vpop.permute.xlu1 %1111 }
 0x199   : > { %v1129_v7 = vsel %vm1121_vm7, %v1104_v0, %v1112_v19  ;;  %v1110_v10 = vpop.permute.xlu0 %1109  ;;  %v1174_v17 = vpack.c.bf16 %v1166_v2, %v1162_v48  ;;  %v329_v2 = vld [vmem:[%s8205_s4 + $0x10] sm:$0xff]  ;;  %v359_v48 = vld [vmem:[%s8205_s4 + $0x100] sm:$0xff] }
 0x19a   : > { %v1167_v32 = vmul.f32 %v4251_v44, %v1129_v7  ;;  %v1128_v12 = vsel %vm1121_vm7, %v1102_v26, %v1110_v10  ;;  %v5028_v26 = vld [vmem:[%s8202_s1 + $0x8] ss:$12 sps:$4 sm:$0xff]  }
 0x19b   : > { %v1163_v35 = vmul.f32 %v4251_v44, %v1128_v12  ;;  %v360_v7 = vld [vmem:[%s8205_s4 + $0x108] sm:$0xff]  ;;  %v347_v12 = vld [vmem:[%s8205_s4 + $0xa0] sm:$0xff] }
 0x19c   : > { %v1120_v37 = vpop.permute.xlu1 %1119 }
 0x19d   : > { %v1125_v46 = vsel %vm1121_vm7, %v1112_v19, %v1120_v37  ;;  %v1137_v31 = vsel %vm1121_vm7, %v1120_v37, %v1096_v16  ;;  %v1118_v49 = vpop.permute.xlu0 %1117  ;;  %v1175_v50 = vpack.c.bf16 %v1167_v32, %v1163_v35  ;;  %v375_v16 = vld [vmem:[%s8205_s4 + $0x180] sm:$0xff]  ;;  %v378_v32 = vld [vmem:[%s8205_s4 + $0x198] sm:$0xff]  ;;  %v348_v35 = vld [vmem:[%s8205_s4 + $0xa8] sm:$0xff]  ;;  %v6179_v37 = vpack.c.bf16 %v360_v7, %v359_v48 }
 0x19e   : > { %v1168_v41 = vmul.f32 %v4252_v47, %v1125_v46  ;;  %v1169_v40 = vmul.f32 %v4253_v29, %v1137_v31  ;;  %v1124_v44 = vsel %vm1121_vm7, %v1110_v10, %v1118_v49  ;;  %v1136_v58 = vsel %vm1121_vm7, %v1118_v49, %v1094_v60  ;;  %v345_v60 = vld [vmem:[%s8205_s4 + $0x90] sm:$0xff]  ;;  %v331_v31 = vld [vmem:[%s8205_s4 + $0x20] sm:$0xff]  ;;  %v382_v48 = vld [vmem:[%s8205_s4 + $0x1b8] sm:$0xff] }
 0x19f   : > { %v1164_v23 = vmul.f32 %v4252_v47, %v1124_v44  ;;  %v1165_v0 = vmul.f32 %v4253_v29, %v1136_v58  ;;  %1358 = vmatprep.subr.bf16.mxu0 %v1175_v50  ;;  %v6147_v47 = vpack.c.bf16 %v328_v53, %v327_v57  ;;  %v6149_v29 = vpack.c.bf16 %v376_v22, %v375_v16  ;;  %v361_v49 = vld [vmem:[%s8205_s4 + $0x110] sm:$0xff]  ;;  %v362_v50 = vld [vmem:[%s8205_s4 + $0x118] sm:$0xff]  ;;  %v380_v44 = vld [vmem:[%s8205_s4 + $0x1a8] sm:$0xff] }
 0x1a0   : > { %1359 = vmatpush1.bf16.msra.mxu0 %v1174_v17  ;;  %v6160_v10 = vpack.c.bf16 %v346_v20, %v345_v60  ;;  %8476 = vst [vmem:[#allocation40_spill] sm:$0xff] %v6179_v37  ;;  %v6183_v17 = vpack.c.bf16 %v330_v11, %v329_v2  ;;  %v6185_v46 = vpack.c.bf16 %v378_v32, %v377_v24  ;;  %v5029_v58 = vld [vmem:[%s8202_s1 + $0x20] ss:$12 sps:$4 sm:$0xff]   ;;  %v349_v53 = vld [vmem:[%s8205_s4 + $0xb0] sm:$0xff]  ;;  %v350_v16 = vld [vmem:[%s8205_s4 + $0xb8] sm:$0xff] }
 0x1a1   : > { %v1176_v62 = vpack.c.bf16 %v1168_v41, %v1164_v23  ;;  %v1177_v19 = vpack.c.bf16 %v1169_v40, %v1165_v0  ;;  %4682 = vmatprep.subr.bf16.mxu0 %v6115_v43  ;;  %8473 = vst [vmem:[#allocation37_spill] sm:$0xff] %v6147_v47  ;;  %8474 = vst [vmem:[#allocation38_spill] sm:$0xff] %v6149_v29  ;;  %v6197_v57 = vpack.c.bf16 %v348_v35, %v347_v12  ;;  %v332_v41 = vld [vmem:[%s8205_s4 + $0x28] sm:$0xff]  ;;  %v379_v40 = vld [vmem:[%s8205_s4 + $0x1a0] sm:$0xff] }
 0x1a2   : > { %8475 = vst [vmem:[#allocation39_spill] sm:$0xff] %v6160_v10  ;;  %8477 = vst [vmem:[#allocation41_spill] sm:$0xff] %v6183_v17  ;;  %v6220_v22 = vpack.c.bf16 %v362_v50, %v361_v49  ;;  %v6224_v23 = vpack.c.bf16 %v332_v41, %v331_v31  ;;  %v6226_v0 = vpack.c.bf16 %v380_v44, %v379_v40  ;;  %v363_v60 = vld [vmem:[%s8205_s4 + $0x120] sm:$0xff]  ;;  %v364_v20 = vld [vmem:[%s8205_s4 + $0x128] sm:$0xff] }
 0x1a3   : > { %4260 = vmatmul.mubr.msk.bf16.vlgmr.msra.gmra.mrb[0].mxu0 %vm1296_vm8, %v5028_v26  ;;  %1464 = vmatprep.subr.bf16.mxu1 %v1177_v19  ;;  %8478 = vst [vmem:[#allocation42_spill] sm:$0xff] %v6185_v46  ;;  %8479 = vst [vmem:[#allocation43_spill] sm:$0xff] %v6197_v57  ;;  %v334_v19 = vld [vmem:[%s8205_s4 + $0x38] sm:$0xff]  ;;  %v381_v2 = vld [vmem:[%s8205_s4 + $0x1b0] sm:$0xff]  ;;  %v6257_v24 = vpack.c.bf16 %v364_v20, %v363_v60 }
 0x1a4   : > { %1465 = vmatpush1.bf16.msra.mxu1 %v1176_v62  ;;  %1398 = vmatprep.mubr.bf16.mxu0 %v8218_v9  ;;  %8480 = vst [vmem:[#allocation44_spill] sm:$0xff] %v6220_v22  ;;  %8481 = vst [vmem:[#allocation45_spill] sm:$0xff] %v6224_v23  ;;  %v6238_v62 = vpack.c.bf16 %v350_v16, %v349_v53  ;;  %v351_v7 = vld [vmem:[%s8205_s4 + $0xc0] sm:$0xff]  ;;  %v352_v11 = vld [vmem:[%s8205_s4 + $0xc8] sm:$0xff]  ;;  %v6263_v12 = vpack.c.bf16 %v382_v48, %v381_v2 }
 0x1a5   : > { %4684 = vmatpush3.bf16.msra.mxu0 %v6147_v47  ;;  %4714 = vmatprep.subr.bf16.mxu1 %v6149_v29  ;;  %8482 = vst [vmem:[#allocation46_spill] sm:$0xff] %v6226_v0  ;;  %8484 = vst [vmem:[#allocation48_spill] sm:$0xff] %v6257_v24  ;;  %v335_v35 = vld [vmem:[%s8205_s4 + $0x40] sm:$0xff]  ;;  %v365_v31 = vld [vmem:[%s8205_s4 + $0x130] sm:$0xff]  ;;  %v6275_v50 = vpack.c.bf16 %v352_v11, %v351_v7 }
 0x1a6   : > { %4686 = vmatprep.subr.bf16.mxu0 %v6160_v10  ;;  %8483 = vst [vmem:[#allocation47_spill] sm:$0xff] %v6238_v62  ;;  %8486 = vst [vmem:[#allocation50_spill] sm:$0xff] %v6263_v12  ;;  %v366_v49 = vld [vmem:[%s8205_s4 + $0x138] sm:$0xff]  ;;  %v336_v41 = vld [vmem:[%s8205_s4 + $0x48] sm:$0xff] }
 0x1a7   : > { %4262 = vmatmul.mubr.msk.bf16.vlgmr.msra.gmra.mrb[0].mxu1 %vm1296_vm8, %v5028_v26  ;;  %v333_v26 = vld [vmem:[%s8205_s4 + $0x30] sm:$0xff]  ;;  %8487 = vst [vmem:[#allocation51_spill] sm:$0xff] %v6275_v50  ;;  %v383_v40 = vld [vmem:[%s8205_s4 + $0x1c0] sm:$0xff]  ;;  %v384_v44 = vld [vmem:[%s8205_s4 + $0x1c8] sm:$0xff]  ;;  %v6298_v60 = vpack.c.bf16 %v336_v41, %v335_v35 }
 0x1a8   : > { %1504 = vmatprep.mubr.bf16.mxu1 %v8218_v9  ;;  %4716 = vmatpush3.bf16.msra.mxu1 %v6179_v37  ;;  %v6261_v32 = vpack.c.bf16 %v334_v19, %v333_v26  ;;  %v353_v53 = vld [vmem:[%s8205_s4 + $0xd0] sm:$0xff]  ;;  %v354_v16 = vld [vmem:[%s8205_s4 + $0xd8] sm:$0xff]  ;;  %v6294_v26 = vpack.c.bf16 %v366_v49, %v365_v31  ;;  %v6300_v20 = vpack.c.bf16 %v384_v44, %v383_v40  ;;  %v367_v19 = vld [vmem:[%s8205_s4 + $0x140] sm:$0xff] }
 0x1a9   : > { %4688 = vmatpush3.bf16.msra.mxu0 %v6183_v17  ;;  %4718 = vmatprep.subr.bf16.mxu1 %v6185_v46  ;;  %8489 = vst [vmem:[#allocation53_spill] sm:$0xff] %v6298_v60  ;;  %v368_v2 = vld [vmem:[%s8205_s4 + $0x148] sm:$0xff]  ;;  %v6312_v48 = vpack.c.bf16 %v354_v16, %v353_v53  ;;  %v338_v7 = vld [vmem:[%s8205_s4 + $0x58] sm:$0xff]  ;;  %v385_v11 = vld [vmem:[%s8205_s4 + $0x1d0] sm:$0xff] }
 0x1aa   : > { %4690 = vmatprep.subr.bf16.mxu0 %v6197_v57  ;;  %8485 = vst [vmem:[#allocation49_spill] sm:$0xff] %v6261_v32  ;;  %8488 = vst [vmem:[#allocation52_spill] sm:$0xff] %v6294_v26  ;;  %v386_v35 = vld [vmem:[%s8205_s4 + $0x1d8] sm:$0xff]  ;;  %v355_v31 = vld [vmem:[%s8205_s4 + $0xe0] sm:$0xff]  ;;  %v6330_v41 = vpack.c.bf16 %v368_v2, %v367_v19 }
 0x1ab   : > { %4261 = vmatmul.mubr.msk.bf16.gmra.mrb[4].mxu0 %vm1296_vm8, %v5029_v58  ;;  %8490 = vst [vmem:[#allocation54_spill] sm:$0xff] %v6300_v20  ;;  %8491 = vst [vmem:[#allocation55_spill] sm:$0xff] %v6312_v48  ;;  %v356_v49 = vld [vmem:[%s8205_s4 + $0xe8] sm:$0xff]  ;;  %v6336_v44 = vpack.c.bf16 %v386_v35, %v385_v11  ;;  %v339_v53 = vld [vmem:[%s8205_s4 + $0x60] sm:$0xff] }
 0x1ac   : > { %4720 = vmatpush3.bf16.msra.mxu1 %v6220_v22  ;;  %8492 = vst [vmem:[#allocation56_spill] sm:$0xff] %v6330_v41  ;;  %v369_v16 = vld [vmem:[%s8205_s4 + $0x150] sm:$0xff]  ;;  %v370_v19 = vld [vmem:[%s8205_s4 + $0x158] sm:$0xff]  ;;  %v6348_v2 = vpack.c.bf16 %v356_v49, %v355_v31  ;;  %v388_v11 = vld [vmem:[%s8205_s4 + $0x1e8] sm:$0xff] }
 0x1ad   : > { %4692 = vmatpush3.bf16.msra.mxu0 %v6224_v23  ;;  %4722 = vmatprep.subr.bf16.mxu1 %v6226_v0  ;;  %8494 = vst [vmem:[#allocation58_spill] sm:$0xff] %v6336_v44  ;;  %v357_v35 = vld [vmem:[%s8205_s4 + $0xf0] sm:$0xff]  ;;  %v358_v31 = vld [vmem:[%s8205_s4 + $0xf8] sm:$0xff]  ;;  %v6366_v49 = vpack.c.bf16 %v370_v19, %v369_v16  ;;  %v371_v19 = vld [vmem:[%s8205_s4 + $0x160] sm:$0xff] }
 0x1ae   : > { %4694 = vmatprep.subr.bf16.mxu0 %v6238_v62  ;;  %8495 = vst [vmem:[#allocation59_spill] sm:$0xff] %v6348_v2  ;;  %v6375_v38 = vpack.c.bf16 %v358_v31, %v357_v35  ;;  %v341_v16 = vld [vmem:[%s8205_s4 + $0x70] sm:$0xff]  ;;  %v390_v31 = vld [vmem:[%s8205_s4 + $0x1f8] sm:$0xff] }
 0x1af   : > { %4263 = vmatmul.mubr.msk.bf16.gmra.mrb[4].mxu1 %vm1296_vm8, %v5029_v58  ;;  %v337_v58 = vld [vmem:[%s8205_s4 + $0x50] sm:$0xff]  ;;  %8496 = vst [vmem:[#allocation60_spill] sm:$0xff] %v6366_v49 }
 0x1b0   : > { %4724 = vmatpush3.bf16.msra.mxu1 %v6257_v24  ;;  %v6334_v40 = vpack.c.bf16 %v338_v7, %v337_v58  ;;  %v340_v58 = vld [vmem:[%s8205_s4 + $0x68] sm:$0xff]  ;;  %v387_v7 = vld [vmem:[%s8205_s4 + $0x1e0] sm:$0xff]  ;;  %8499 = vst [vmem:[#allocation63_spill] sm:$0xff] %v6375_v38  ;;  %v389_v35 = vld [vmem:[%s8205_s4 + $0x1f0] sm:$0xff] }
 0x1b1   : > { %4696 = vmatpush3.bf16.msra.mxu0 %v6261_v32  ;;  %4726 = vmatprep.subr.bf16.mxu1 %v6263_v12  ;;  %v6370_v9 = vpack.c.bf16 %v340_v58, %v339_v53  ;;  %v6372_v30 = vpack.c.bf16 %v388_v11, %v387_v7  ;;  %v342_v53 = vld [vmem:[%s8205_s4 + $0x78] sm:$0xff]  ;;  %v372_v7 = vld [vmem:[%s8205_s4 + $0x168] sm:$0xff] }
 0x1b2   : > { %4698 = vmatprep.subr.bf16.mxu0 %v6275_v50  ;;  %8493 = vst [vmem:[#allocation57_spill] sm:$0xff] %v6334_v40  ;;  %v6390_v58 = vpack.c.bf16 %v342_v53, %v341_v16  ;;  %v6395_v11 = vpack.c.bf16 %v372_v7, %v371_v19  ;;  %v6405_v16 = vpack.c.bf16 %v390_v31, %v389_v35  ;;  %v373_v53 = vld [vmem:[%s8205_s4 + $0x170] sm:$0xff]  ;;  %v374_v19 = vld [vmem:[%s8205_s4 + $0x178] sm:$0xff] }
 0x1b3   : > { %8497 = vst [vmem:[#allocation61_spill] sm:$0xff] %v6370_v9  ;;  %8498 = vst [vmem:[#allocation62_spill] sm:$0xff] %v6372_v30  ;;  %v6413_v7 = vpack.c.bf16 %v374_v19, %v373_v53 }
 0x1b4   : > { %4728 = vmatpush3.bf16.msra.mxu1 %v6294_v26  ;;  %8500 = vst [vmem:[#allocation64_spill] sm:$0xff] %v6390_v58  ;;  %8501 = vst [vmem:[#allocation65_spill] sm:$0xff] %v6395_v11 }
 0x1b5   : > { %4700 = vmatpush3.bf16.msra.mxu0 %v6298_v60  ;;  %4730 = vmatprep.subr.bf16.mxu1 %v6300_v20  ;;  %8502 = vst [vmem:[#allocation66_spill] sm:$0xff] %v6405_v16  ;;  %8503 = vst [vmem:[#allocation67_spill] sm:$0xff] %v6413_v7 }
 0x1b6   : > { %4702 = vmatprep.subr.bf16.mxu0 %v6312_v48 }
 0x1b8   : > { %4732 = vmatpush3.bf16.msra.mxu1 %v6330_v41 }
 0x1b9   : > { %4704 = vmatpush3.bf16.msra.mxu0 %v6334_v40  ;;  %4734 = vmatprep.subr.bf16.mxu1 %v6336_v44 }
 0x1ba   : > { %4706 = vmatprep.subr.bf16.mxu0 %v6348_v2 }
 0x1bc   : > { %4736 = vmatpush3.bf16.msra.mxu1 %v6366_v49 }
 0x1bd   : > { %4708 = vmatpush3.bf16.msra.mxu0 %v6370_v9  ;;  %4738 = vmatprep.subr.bf16.mxu1 %v6372_v30 }
 0x1be   : > { %4710 = vmatprep.subr.bf16.mxu0 %v6375_v38 }
 0x1c0   : > { %4740 = vmatpush3.bf16.msra.mxu1 %v6395_v11 }
 0x1c1   : > { %4712 = vmatpush3.bf16.msra.mxu0 %v6390_v58  ;;  %4742 = vmatprep.subr.bf16.mxu1 %v6405_v16 }
 0x1c2   : > { %4264 = vmatprep.subr.msk.mxu0 %vm1720_vm9, %v6475_v8 }
 0x1c4   : > { %4744 = vmatpush3.bf16.msra.mxu1 %v6413_v7 }
 0x1c5   : > { %4270 = vmatprep.subr.msk.mxu1 %vm1720_vm9, %v6479_v1 }
 0x276   : > { %v6417_v13 = vpop.f32.mrb[0].mxu0 }
 0x277   : > { %v6419_v21 = vpop.f32.mrb[1].mxu0 }
 0x278   : > { %v6421_v35 = vpop.f32.mrb[2].mxu0  ;;  %1579 = vmatprep.mubr.f32.mxu0 %v6419_v21 }
 0x279   : > { %v6424_v31 = vpop.f32.mrb[3].mxu0  ;;  %1580 = vmatmul.mubr.f32.vlgmr.msra.gmra.mrb[8].mxu0 %v6417_v13 }
 0x27a   : > { %v6427_v36 = vpop.f32.mrb[0].mxu1  ;;  %1584 = vmatprep.mubr.f32.mxu0 %v6424_v31  ;;  %4265 = vmatpush1.msk.msra.mxu0 %vm1720_vm9, %v6469_v15 }
 0x27b   : > { %v6430_v53 = vpop.f32.mrb[1].mxu1  ;;  %4746 = vmatprep.subr.bf16.mxu0 %v6115_v43 }
 0x27c   : > { %v6432_v19 = vpop.f32.mrb[2].mxu1  ;;  %1664 = vmatprep.mubr.f32.mxu1 %v6430_v53 }
 0x27d   : > { %v6435_v63 = vpop.f32.mrb[3].mxu1  ;;  %1585 = vmatmul.mubr.f32.gmra.mrb[10].mxu0 %v6421_v35  ;;  %1665 = vmatmul.mubr.f32.vlgmr.msra.gmra.mrb[8].mxu1 %v6427_v36 }
 0x27e   : > { %v6439_v54 = vpop.f32.mrb[4].mxu0  ;;  %1669 = vmatprep.mubr.f32.mxu1 %v6435_v63  ;;  %4271 = vmatpush1.msk.msra.mxu1 %vm1720_vm9, %v6471_v14 }
 0x27f   : > { %v6442_v42 = vpop.f32.mrb[5].mxu0  ;;  %4778 = vmatprep.subr.bf16.mxu1 %v6149_v29 }
 0x280   : > { %8504 = vst [vmem:[#allocation68_spill] sm:$0xff] %v6442_v42  ;;  %v6444_v28 = vpop.f32.mrb[6].mxu0  ;;  %1589 = vmatprep.mubr.f32.mxu0 %v6442_v42 }
 0x281   : > { %8505 = vst [vmem:[#allocation69_spill] sm:$0xff] %v6444_v28  ;;  %v6447_v25 = vpop.f32.mrb[7].mxu0  ;;  %1590 = vmatmul.mubr.f32.gmra.mrb[12].mxu0 %v6439_v54  ;;  %1670 = vmatmul.mubr.f32.gmra.mrb[10].mxu1 %v6432_v19 }
 0x282   : > { %8506 = vst [vmem:[#allocation70_spill] sm:$0xff] %v6447_v25  ;;  %v6451_v27 = vpop.f32.mrb[4].mxu1  ;;  %1594 = vmatprep.mubr.f32.mxu0 %v6447_v25 }
 0x283   : > { %v6454_v18 = vpop.f32.mrb[5].mxu1 }
 0x284   : > { %8507 = vst [vmem:[#allocation71_spill] sm:$0xff] %v6454_v18  ;;  %v6456_v6 = vpop.f32.mrb[6].mxu1  ;;  %1674 = vmatprep.mubr.f32.mxu1 %v6454_v18 }
 0x285   : > { %8508 = vst [vmem:[#allocation72_spill] sm:$0xff] %v6456_v6  ;;  %v6459_v3 = vpop.f32.mrb[7].mxu1  ;;  %1595 = vmatmul.mubr.f32.gmra.mrb[14].mxu0 %v6444_v28  ;;  %1675 = vmatmul.mubr.f32.gmra.mrb[12].mxu1 %v6451_v27 }
 0x286   : > { %8509 = vst [vmem:[#allocation73_spill] sm:$0xff] %v6459_v3  ;;  %1679 = vmatprep.mubr.f32.mxu1 %v6459_v3  ;;  %1793 = vmatprep.mubr.f32.mxu0 %v8281_v33 }
 0x289   : > { %1680 = vmatmul.mubr.f32.gmra.mrb[14].mxu1 %v6456_v6 }
 0x28a   : > { %1882 = vmatprep.mubr.f32.mxu1 %v8281_v33 }
 0x34c   : > { %v4361_v51 = vpop.f32.mrb[8].mxu0 }
 0x34d   : > { %v4362_v61 = vpop.f32.mrb[9].mxu0 }
 0x34e   : > { %v4363_v4 = vadd.f32 %v4362_v61, %v4361_v51 }
 0x350   : > { %v4364_v5 = vpop.f32.mrb[10].mxu0  ;;  %v4405_v45 = vpop.f32.mrb[8].mxu1 }
 0x351   : > { %v4365_v59 = vpop.f32.mrb[11].mxu0  ;;  %v4406_v56 = vpop.f32.mrb[9].mxu1 }
 0x352   : > { %v4366_v55 = vadd.f32 %v4365_v59, %v4364_v5  ;;  %v4407_v52 = vadd.f32 %v4406_v56, %v4405_v45  ;;  %v8514_v5 = vmov 0.0  }
 0x354   : > { %v1667_v39 = vadd.f32 %v4407_v52, %v4363_v4  ;;  %v4367_v34 = vpop.f32.mrb[12].mxu0  ;;  %v4408_v3 = vpop.f32.mrb[10].mxu1 }
 0x355   : > { %v4368_v25 = vpop.f32.mrb[13].mxu0  ;;  %v4409_v6 = vpop.f32.mrb[11].mxu1 }
 0x356   : > { %v1685_v33 = vmul.f32 0.00390625, %v1667_v39  ;;  %v4369_v28 = vadd.f32 %v4368_v25, %v4367_v34  ;;  %v4410_v43 = vadd.f32 %v4409_v6, %v4408_v3 }
 0x358   : > { %v1672_v18 = vadd.f32 %v4410_v43, %v4366_v55  ;;  %v4370_v29 = vpop.f32.mrb[14].mxu0  ;;  %v4411_v42 = vpop.f32.mrb[12].mxu1  ;;  %4266 = vmatmul.mubr.msk.f32.vlgmr.msra.gmra.mrb[16].mxu0 %vm1707_vm10, %v1685_v33  ;;  %4272 = vmatmul.mubr.msk.f32.vlgmr.msra.gmra.mrb[16].mxu1 %vm1707_vm10, %v1685_v33 }
 0x359   : > { %v4371_v51 = vpop.f32.mrb[15].mxu0  ;;  %v4412_v61 = vpop.f32.mrb[13].mxu1  ;;  %1799 = vmatprep.mubr.f32.mxu0 %v8514_v5  ;;  %1888 = vmatprep.mubr.f32.mxu1 %v8514_v5 }
 0x35a   : > { %v1686_v52 = vmul.f32 0.00390625, %v1672_v18  ;;  %v4372_v56 = vadd.f32 %v4371_v51, %v4370_v29  ;;  %v4413_v4 = vadd.f32 %v4412_v61, %v4411_v42  ;;  %4748 = vmatpush3.bf16.msra.mxu0 %v6147_v47  ;;  %4780 = vmatpush3.bf16.msra.mxu1 %v6179_v37 }
 0x35b   : > { %4750 = vmatprep.subr.bf16.mxu0 %v6160_v10  ;;  %4782 = vmatprep.subr.bf16.mxu1 %v6185_v46  ;;  %v8540_v46 = vld [vmem:[#allocation9_spill] sm:$0xff] }
 0x35c   : > { %v1677_v34 = vadd.f32 %v4413_v4, %v4369_v28  ;;  %v4414_v39 = vpop.f32.mrb[14].mxu1  ;;  %4267 = vmatmul.mubr.msk.f32.gmra.mrb[18].mxu0 %vm1707_vm10, %v1686_v52  ;;  %4273 = vmatmul.mubr.msk.f32.gmra.mrb[18].mxu1 %vm1707_vm10, %v1686_v52 }
 0x35d   : > { %v4415_v55 = vpop.f32.mrb[15].mxu1  ;;  %1805 = vmatprep.mubr.f32.mxu0 %v8514_v5  ;;  %1894 = vmatprep.mubr.f32.mxu1 %v8514_v5 }
 0x35e   : > { %v1687_v3 = vmul.f32 0.00390625, %v1677_v34  ;;  %v4416_v6 = vadd.f32 %v4415_v55, %v4414_v39  ;;  %4752 = vmatpush3.bf16.msra.mxu0 %v6183_v17  ;;  %4784 = vmatpush3.bf16.msra.mxu1 %v6220_v22 }
 0x35f   : > { %4754 = vmatprep.subr.bf16.mxu0 %v6197_v57  ;;  %4786 = vmatprep.subr.bf16.mxu1 %v6226_v0 }
 0x360   : > { %v1682_v18 = vadd.f32 %v4416_v6, %v4372_v56  ;;  %4268 = vmatmul.mubr.msk.f32.gmra.mrb[20].mxu0 %vm1707_vm10, %v1687_v3  ;;  %4274 = vmatmul.mubr.msk.f32.gmra.mrb[20].mxu1 %vm1707_vm10, %v1687_v3 }
 0x361   : > { %1811 = vmatprep.mubr.f32.mxu0 %v8514_v5  ;;  %1900 = vmatprep.mubr.f32.mxu1 %v8514_v5 }
 0x362   : > { %v1688_v25 = vmul.f32 0.00390625, %v1682_v18  ;;  %4756 = vmatpush3.bf16.msra.mxu0 %v6224_v23  ;;  %4788 = vmatpush3.bf16.msra.mxu1 %v6257_v24 }
 0x363   : > { %4758 = vmatprep.subr.bf16.mxu0 %v6238_v62  ;;  %4790 = vmatprep.subr.bf16.mxu1 %v6263_v12 }
 0x364   : > { %4269 = vmatmul.mubr.msk.f32.gmra.mrb[22].mxu0 %vm1707_vm10, %v1688_v25  ;;  %4275 = vmatmul.mubr.msk.f32.gmra.mrb[22].mxu1 %vm1707_vm10, %v1688_v25 }
 0x366   : > { %4760 = vmatpush3.bf16.msra.mxu0 %v6261_v32  ;;  %4792 = vmatpush3.bf16.msra.mxu1 %v6294_v26 }
 0x367   : > { %4762 = vmatprep.subr.bf16.mxu0 %v6275_v50  ;;  %4794 = vmatprep.subr.bf16.mxu1 %v6300_v20 }
 0x36a   : > { %4764 = vmatpush3.bf16.msra.mxu0 %v6298_v60  ;;  %4796 = vmatpush3.bf16.msra.mxu1 %v6330_v41 }
 0x36b   : > { %4766 = vmatprep.subr.bf16.mxu0 %v6312_v48  ;;  %4798 = vmatprep.subr.bf16.mxu1 %v6336_v44 }
 0x36e   : > { %4768 = vmatpush3.bf16.msra.mxu0 %v6334_v40  ;;  %4800 = vmatpush3.bf16.msra.mxu1 %v6366_v49 }
 0x36f   : > { %4770 = vmatprep.subr.bf16.mxu0 %v6348_v2  ;;  %4802 = vmatprep.subr.bf16.mxu1 %v6372_v30 }
 0x372   : > { %4772 = vmatpush3.bf16.msra.mxu0 %v6370_v9  ;;  %4804 = vmatpush3.bf16.msra.mxu1 %v6395_v11 }
 0x373   : > { %4774 = vmatprep.subr.bf16.mxu0 %v6375_v38  ;;  %4806 = vmatprep.subr.bf16.mxu1 %v6405_v16 }
 0x376   : > { %4776 = vmatpush3.bf16.msra.mxu0 %v6390_v58  ;;  %4808 = vmatpush3.bf16.msra.mxu1 %v6413_v7 }
 0x377   : > { %4276 = vmatprep.subr.msk.mxu0 %vm1720_vm9, %v6475_v8  ;;  %4282 = vmatprep.subr.msk.mxu1 %vm1720_vm9, %v6479_v1 }
 0x42b   : > { %v1795_v28 = vpop.f32.mrb[16].mxu0  ;;  %v1884_v42 = vpop.f32.mrb[16].mxu1 }
 0x42c   : > { %v6542_v43 = vsub.f32 %v6417_v13, %v1795_v28  ;;  %v6545_v29 = vsub.f32 %v6427_v36, %v1884_v42  ;;  %v1797_v33 = vpop.f32.mrb[17].mxu0  ;;  %v1886_v45 = vpop.f32.mrb[17].mxu1 }
 0x42d   : > { %v6548_v59 = vsub.f32 %v6419_v21, %v1797_v33  ;;  %v6551_v51 = vsub.f32 %v6430_v53, %v1886_v45  ;;  %v8515_v45 = vld [vmem:[#allocation68_spill] sm:$0xff] }
 0x42e   : > { %v1923_v36 = vmul.f32 %v6542_v43, %v6542_v43  ;;  %v1925_v4 = vmul.f32 %v6545_v29, %v6545_v29 }
 0x42f   : > { %v1924_v61 = vmul.f32 %v6548_v59, %v6548_v59  ;;  %v1926_v52 = vmul.f32 %v6551_v51, %v6551_v51  ;;  %v1801_v56 = vpop.f32.mrb[18].mxu0  ;;  %v1890_v13 = vpop.f32.mrb[18].mxu1 }
 0x430   : > { %v6562_v21 = vsub.f32 %v6421_v35, %v1801_v56  ;;  %v6565_v53 = vsub.f32 %v6432_v19, %v1890_v13  ;;  %v1803_v34 = vpop.f32.mrb[19].mxu0  ;;  %v1892_v39 = vpop.f32.mrb[19].mxu1 }
 0x431   : > { %v6568_v55 = vsub.f32 %v6424_v31, %v1803_v34  ;;  %v6571_v3 = vsub.f32 %v6435_v63, %v1892_v39  ;;  %2003 = vmatprep.mubr.f32.mxu0 %v1924_v61  ;;  %2088 = vmatprep.mubr.f32.mxu1 %v1926_v52  ;;  %v8516_v52 = vld [vmem:[#allocation71_spill] sm:$0xff]  ;;  %v8517_v39 = vld [vmem:[#allocation69_spill] sm:$0xff] }
 0x432   : > { %2004 = vmatmul.mubr.f32.vlgmr.msra.gmra.mrb[24].mxu0 %v1923_v36  ;;  %2089 = vmatmul.mubr.f32.vlgmr.msra.gmra.mrb[24].mxu1 %v1925_v4  ;;  %v1927_v63 = vmul.f32 %v6562_v21, %v6562_v21  ;;  %v1929_v31 = vmul.f32 %v6565_v53, %v6565_v53 }
 0x433   : > { %v1928_v6 = vmul.f32 %v6568_v55, %v6568_v55  ;;  %v1930_v35 = vmul.f32 %v6571_v3, %v6571_v3  ;;  %v1807_v19 = vpop.f32.mrb[20].mxu0  ;;  %v1896_v18 = vpop.f32.mrb[20].mxu1  ;;  %4277 = vmatpush1.msk.msra.mxu0 %vm1720_vm9, %v6469_v15  ;;  %4283 = vmatpush1.msk.msra.mxu1 %vm1720_vm9, %v6471_v14 }
 0x434   : > { %v6586_v25 = vsub.f32 %v6439_v54, %v1807_v19  ;;  %v6589_v28 = vsub.f32 %v6451_v27, %v1896_v18  ;;  %v1809_v42 = vpop.f32.mrb[21].mxu0  ;;  %v1898_v33 = vpop.f32.mrb[21].mxu1 }
 0x435   : > { %v6592_v61 = vsub.f32 %v8515_v45, %v1809_v42  ;;  %v6595_v56 = vsub.f32 %v8516_v52, %v1898_v33  ;;  %2008 = vmatprep.mubr.f32.mxu0 %v1928_v6  ;;  %2093 = vmatprep.mubr.f32.mxu1 %v1930_v35  ;;  %v8518_v6 = vld [vmem:[#allocation72_spill] sm:$0xff]  ;;  %v8520_v33 = vld [vmem:[#allocation73_spill] sm:$0xff] }
 0x436   : > { %2009 = vmatmul.mubr.f32.gmra.mrb[26].mxu0 %v1927_v63  ;;  %2094 = vmatmul.mubr.f32.gmra.mrb[26].mxu1 %v1929_v31  ;;  %v1931_v4 = vmul.f32 %v6586_v25, %v6586_v25  ;;  %v1933_v34 = vmul.f32 %v6589_v28, %v6589_v28  ;;  %v8519_v31 = vld [vmem:[#allocation70_spill] sm:$0xff] }
 0x437   : > { %v1932_v13 = vmul.f32 %v6592_v61, %v6592_v61  ;;  %v1934_v54 = vmul.f32 %v6595_v56, %v6595_v56  ;;  %v1813_v27 = vpop.f32.mrb[22].mxu0  ;;  %v1902_v36 = vpop.f32.mrb[22].mxu1 }
 0x438   : > { %v6606_v19 = vsub.f32 %v8517_v39, %v1813_v27  ;;  %v6609_v35 = vsub.f32 %v8518_v6, %v1902_v36  ;;  %v1815_v18 = vpop.f32.mrb[23].mxu0  ;;  %v1904_v63 = vpop.f32.mrb[23].mxu1 }
 0x439   : > { %v6612_v42 = vsub.f32 %v8519_v31, %v1815_v18  ;;  %v6615_v45 = vsub.f32 %v8520_v33, %v1904_v63  ;;  %2013 = vmatprep.mubr.f32.mxu0 %v1932_v13  ;;  %2098 = vmatprep.mubr.f32.mxu1 %v1934_v54 }
 0x43a   : > { %2014 = vmatmul.mubr.f32.gmra.mrb[28].mxu0 %v1931_v4  ;;  %2099 = vmatmul.mubr.f32.gmra.mrb[28].mxu1 %v1933_v34  ;;  %v1935_v36 = vmul.f32 %v6606_v19, %v6606_v19  ;;  %v1937_v39 = vmul.f32 %v6609_v35, %v6609_v35 }
 0x43b   : > { %v1936_v52 = vmul.f32 %v6612_v42, %v6612_v42  ;;  %v1938_v27 = vmul.f32 %v6615_v45, %v6615_v45 }
 0x43d   : > { %2018 = vmatprep.mubr.f32.mxu0 %v1936_v52  ;;  %2103 = vmatprep.mubr.f32.mxu1 %v1938_v27 }
 0x43e   : > { %2019 = vmatmul.mubr.f32.gmra.mrb[30].mxu0 %v1935_v36  ;;  %2104 = vmatmul.mubr.f32.gmra.mrb[30].mxu1 %v1937_v39 }
 0x43f   : > { %2197 = vmatprep.mubr.f32.mxu0 %v8514_v5  ;;  %2286 = vmatprep.mubr.f32.mxu1 %v8514_v5 }
 0x505   : > { %v4449_v13 = vpop.f32.mrb[24].mxu0  ;;  %v4493_v54 = vpop.f32.mrb[24].mxu1 }
 0x506   : > { %v4450_v4 = vpop.f32.mrb[25].mxu0  ;;  %v4494_v34 = vpop.f32.mrb[25].mxu1 }
 0x507   : > { %v4451_v6 = vadd.f32 %v4450_v4, %v4449_v13  ;;  %v4495_v18 = vadd.f32 %v4494_v34, %v4493_v54 }
 0x509   : > { %v2091_v63 = vadd.f32 %v4495_v18, %v4451_v6  ;;  %v4452_v31 = vpop.f32.mrb[26].mxu0  ;;  %v4496_v33 = vpop.f32.mrb[26].mxu1 }
 0x50a   : > { %v4453_v14 = vpop.f32.mrb[27].mxu0  ;;  %v4497_v15 = vpop.f32.mrb[27].mxu1 }
 0x50b   : > { %v2109_v1 = vmul.f32 0.00390625, %v2091_v63  ;;  %v4454_v52 = vadd.f32 %v4453_v14, %v4452_v31  ;;  %v4498_v27 = vadd.f32 %v4497_v15, %v4496_v33 }
 0x50d   : > { %v2113_v36 = vadd.f32 1e-05, %v2109_v1  ;;  %v2096_v39 = vadd.f32 %v4498_v27, %v4454_v52  ;;  %v4455_v8 = vpop.f32.mrb[28].mxu0  ;;  %v4499_v7 = vpop.f32.mrb[28].mxu1 }
 0x50e   : > { %v4456_v58 = vpop.f32.mrb[29].mxu0  ;;  %v4500_v16 = vpop.f32.mrb[29].mxu1 }
 0x50f   : > { %5039 = vrsqrt.f32 %v2113_v36  ;;  %v2110_v38 = vmul.f32 0.00390625, %v2096_v39  ;;  %v4457_v11 = vadd.f32 %v4456_v58, %v4455_v8  ;;  %v4501_v9 = vadd.f32 %v4500_v16, %v4499_v7 }
 0x511   : > { %v2114_v13 = vadd.f32 1e-05, %v2110_v38  ;;  %v2101_v54 = vadd.f32 %v4501_v9, %v4457_v11  ;;  %v4458_v4 = vpop.f32.mrb[30].mxu0  ;;  %v4502_v34 = vpop.f32.mrb[30].mxu1 }
 0x512   : > { %v4459_v6 = vpop.f32.mrb[31].mxu0  ;;  %v4503_v18 = vpop.f32.mrb[31].mxu1 }
 0x513   : > { %5041 = vrsqrt.f32 %v2114_v13  ;;  %v2111_v63 = vmul.f32 0.00390625, %v2101_v54  ;;  %v4460_v14 = vadd.f32 %v4459_v6, %v4458_v4  ;;  %v4504_v15 = vadd.f32 %v4503_v18, %v4502_v34 }
 0x515   : > { %v2115_v1 = vadd.f32 1e-05, %v2111_v63  ;;  %v2106_v31 = vadd.f32 %v4504_v15, %v4460_v14 }
 0x517   : > { %5043 = vrsqrt.f32 %v2115_v1  ;;  %v2112_v33 = vmul.f32 0.00390625, %v2106_v31 }
 0x519   : > { %v5040_v52 = vpop.eup %5039  ;;  %v2116_v27 = vadd.f32 1e-05, %v2112_v33 }
 0x51a   : > { %4278 = vmatmul.mubr.msk.f32.vlgmr.msra.gmra.mrb[32].mxu0 %vm1707_vm10, %v5040_v52  ;;  %4284 = vmatmul.mubr.msk.f32.vlgmr.msra.gmra.mrb[32].mxu1 %vm1707_vm10, %v5040_v52 }
 0x51b   : > { %5045 = vrsqrt.f32 %v2116_v27  ;;  %2203 = vmatprep.mubr.f32.mxu0 %v8514_v5  ;;  %2292 = vmatprep.mubr.f32.mxu1 %v8514_v5 }
 0x51d   : > { %v5042_v8 = vpop.eup %5041 }
 0x51e   : > { %4279 = vmatmul.mubr.msk.f32.gmra.mrb[34].mxu0 %vm1707_vm10, %v5042_v8  ;;  %4285 = vmatmul.mubr.msk.f32.gmra.mrb[34].mxu1 %vm1707_vm10, %v5042_v8 }
 0x51f   : > { %2209 = vmatprep.mubr.f32.mxu0 %v8514_v5  ;;  %2298 = vmatprep.mubr.f32.mxu1 %v8514_v5 }
 0x521   : > { %v5044_v38 = vpop.eup %5043 }
 0x522   : > { %4280 = vmatmul.mubr.msk.f32.gmra.mrb[36].mxu0 %vm1707_vm10, %v5044_v38  ;;  %4286 = vmatmul.mubr.msk.f32.gmra.mrb[36].mxu1 %vm1707_vm10, %v5044_v38 }
 0x523   : > { %2215 = vmatprep.mubr.f32.mxu0 %v8514_v5  ;;  %2304 = vmatprep.mubr.f32.mxu1 %v8514_v5 }
 0x525   : > { %v5046_v9 = vpop.eup %5045 }
 0x526   : > { %4281 = vmatmul.mubr.msk.f32.gmra.mrb[38].mxu0 %vm1707_vm10, %v5046_v9  ;;  %4287 = vmatmul.mubr.msk.f32.gmra.mrb[38].mxu1 %vm1707_vm10, %v5046_v9 }
 0x5ed   : > { %v2199_v58 = vpop.f32.mrb[32].mxu0  ;;  %v2288_v11 = vpop.f32.mrb[32].mxu1 }
 0x5ee   : > { %v2311_v16 = vmul.f32 %v2199_v58, %v6542_v43  ;;  %v2201_v7 = vpop.f32.mrb[33].mxu0  ;;  %v2290_v36 = vpop.f32.mrb[33].mxu1  ;;  %v2313_v13 = vmul.f32 %v2288_v11, %v6545_v29 }
 0x5ef   : > { %v2312_v38 = vmul.f32 %v2201_v7, %v6548_v59  ;;  %v2314_v58 = vmul.f32 %v2290_v36, %v6551_v51 }
 0x5f0   : > { %v6642_v39 = vmax.f32 %v2311_v16, 0.0  ;;  %v6648_v63 = vmax.f32 %v2313_v13, 0.0 }
 0x5f1   : > { %v2205_v54 = vpop.f32.mrb[34].mxu0  ;;  %v2294_v4 = vpop.f32.mrb[34].mxu1  ;;  %v6730_v9 = vmax.f32 %v2312_v38, 0.0  ;;  %v6738_v16 = vmax.f32 %v2314_v58, 0.0 }
 0x5f2   : > { %8521 = vst [vmem:[#allocation68_spill] sm:$0xff] %v6642_v39  ;;  %v2315_v34 = vmul.f32 %v2205_v54, %v6562_v21  ;;  %v2296_v6 = vpop.f32.mrb[35].mxu1  ;;  %2343 = vrot.lane.b32.xlu0 %v6642_v39, %s5142_s19  ;;  %v2207_v18 = vpop.f32.mrb[35].mxu0  ;;  %8522 = vst [vmem:[#allocation71_spill] sm:$0xff] %v6648_v63  ;;  %v2317_v43 = vmul.f32 %v2294_v4, %v6565_v53 }
 0x5f3   : > { %8528 = vst [vmem:[#allocation72_spill] sm:$0xff] %v6730_v9  ;;  %v2316_v11 = vmul.f32 %v2207_v18, %v6568_v55  ;;  %v2318_v59 = vmul.f32 %v2296_v6, %v6571_v3 }
 0x5f4   : > { %v6650_v14 = vmax.f32 %v2315_v34, 0.0  ;;  %v6667_v33 = vmax.f32 %v2317_v43, 0.0 }
 0x5f5   : > { %v6653_v15 = vpop.f32.mrb[36].mxu0  ;;  %v6655_v1 = vpop.f32.mrb[36].mxu1  ;;  %v6741_v7 = vmax.f32 %v2316_v11, 0.0  ;;  %v6747_v51 = vmax.f32 %v2318_v59, 0.0 }
 0x5f6   : > { %8523 = vst [vmem:[#allocation69_spill] sm:$0xff] %v6650_v14  ;;  %v6657_v29 = vpop.f32.mrb[37].mxu1  ;;  %2359 = vrot.lane.b32.xlu0 %v6648_v63, %s5142_s19  ;;  %2345 = vrot.lane.b32.xlu1 %v6650_v14, %s5142_s19  ;;  %v6663_v21 = vpop.f32.mrb[37].mxu0  ;;  %v2319_v55 = vmul.f32 %v6653_v15, %v6586_v25  ;;  %v2321_v13 = vmul.f32 %v6655_v1, %v6589_v28 }
 0x5f7   : > { %8529 = vst [vmem:[#allocation70_spill] sm:$0xff] %v6741_v7  ;;  %v2320_v60 = vmul.f32 %v6663_v21, %v6592_v61  ;;  %v2322_v26 = vmul.f32 %v6657_v29, %v6595_v56  ;;  %v5037_v21 = vld [vmem:[%s8203_s2 + $0x8] ss:$12 sps:$4 sm:$0xff]  }
 0x5f8   : > { %v6805_v36 = vmax.f32 %v2319_v55, 0.0  ;;  %v6819_v25 = vmax.f32 %v2321_v13, 0.0 }
 0x5f9   : > { %v6669_v53 = vpop.f32.mrb[38].mxu0  ;;  %v6671_v52 = vpop.f32.mrb[38].mxu1  ;;  %v6935_v32 = vmax.f32 %v2320_v60, 0.0  ;;  %v6948_v23 = vmax.f32 %v2322_v26, 0.0 }
 0x5fa   : > { %2423 = vrot.lane.b32.xlu0 %v6642_v39, %s5143_s20  ;;  %2361 = vrot.lane.b32.xlu1 %v6667_v33, %s5142_s19  ;;  %v6677_v27 = vpop.f32.mrb[39].mxu0  ;;  %v6679_v8 = vpop.f32.mrb[39].mxu1  ;;  %8530 = vst [vmem:[#allocation73_spill] sm:$0xff] %v6805_v36  ;;  %v2323_v54 = vmul.f32 %v6669_v53, %v6606_v19  ;;  %8531 = vst [vmem:[#allocation78_spill] sm:$0xff] %v6819_v25  ;;  %v2325_v28 = vmul.f32 %v6671_v52, %v6609_v35 }
 0x5fb   : > { %v2324_v61 = vmul.f32 %v6677_v27, %v6612_v42  ;;  %8537 = vst [vmem:[#allocation7_spill] sm:$0xff] %v6948_v23  ;;  %v2326_v0 = vmul.f32 %v6679_v8, %v6615_v45  ;;  %v8538_v27 = vld [vmem:[#allocation8_spill] sm:$0xff] }
 0x5fc   : > { %v6821_v6 = vmax.f32 %v2323_v54, 0.0  ;;  %v6833_v43 = vmax.f32 %v2325_v28, 0.0 }
 0x5fd   : > { %v6950_v29 = vmax.f32 %v2324_v61, 0.0  ;;  %v6975_v17 = vmax.f32 %v2326_v0, 0.0 }
 0x5fe   : > { %2439 = vrot.lane.b32.xlu0 %v6648_v63, %s5143_s20  ;;  %2425 = vrot.lane.b32.xlu1 %v6650_v14, %s5143_s20  ;;  %8532 = vst [vmem:[#allocation79_spill] sm:$0xff] %v6821_v6  ;;  %8533 = vst [vmem:[#allocation80_spill] sm:$0xff] %v6833_v43 }
 0x5ff   : > { %8539 = vst [vmem:[#allocation8_spill] sm:$0xff] %v6975_v17 }
 0x602   : > { %2503 = vrot.lane.b32.xlu0 %v6642_v39, %s5144_s26  ;;  %2441 = vrot.lane.b32.xlu1 %v6667_v33, %s5143_s20 }
 0x606   : > { %2519 = vrot.lane.b32.xlu0 %v6648_v63, %s5144_s26  ;;  %2505 = vrot.lane.b32.xlu1 %v6650_v14, %s5144_s26 }
 0x60a   : > { %2583 = vrot.lane.b32.xlu0 %v6642_v39, %s5145_s28  ;;  %2521 = vrot.lane.b32.xlu1 %v6667_v33, %s5144_s26 }
 0x60e   : > { %2599 = vrot.lane.b32.xlu0 %v6648_v63, %s5145_s28  ;;  %2585 = vrot.lane.b32.xlu1 %v6650_v14, %s5145_s28 }
 0x612   : > { %2679 = vrot.lane.b32.xlu0 %v6642_v39, %s8524_s12  ;;  %2601 = vrot.lane.b32.xlu1 %v6667_v33, %s5145_s28 }
 0x616   : > { %2695 = vrot.lane.b32.xlu0 %v6648_v63, %s8524_s12  ;;  %2681 = vrot.lane.b32.xlu1 %v6650_v14, %s8524_s12 }
 0x61a   : > { %2759 = vrot.lane.b32.xlu0 %v6642_v39, %s8525_s25  ;;  %2697 = vrot.lane.b32.xlu1 %v6667_v33, %s8524_s12 }
 0x61e   : > { %2775 = vrot.lane.b32.xlu0 %v6648_v63, %s8525_s25  ;;  %2761 = vrot.lane.b32.xlu1 %v6650_v14, %s8525_s25 }
 0x622   : > { %2839 = vrot.lane.b32.xlu0 %v6642_v39, %s8526_s14  ;;  %2777 = vrot.lane.b32.xlu1 %v6667_v33, %s8525_s25 }
 0x626   : > { %2855 = vrot.lane.b32.xlu0 %v6648_v63, %s8526_s14  ;;  %2841 = vrot.lane.b32.xlu1 %v6650_v14, %s8526_s14 }
 0x62a   : > { %2919 = vrot.lane.b32.xlu0 %v6642_v39, %s8527_s15  ;;  %2857 = vrot.lane.b32.xlu1 %v6667_v33, %s8526_s14 }
 0x62e   : > { %2351 = vrot.lane.b32.xlu0 %v6730_v9, %s5142_s19  ;;  %2921 = vrot.lane.b32.xlu1 %v6650_v14, %s8527_s15 }
 0x632   : > { %2367 = vrot.lane.b32.xlu0 %v6738_v16, %s5142_s19  ;;  %2353 = vrot.lane.b32.xlu1 %v6741_v7, %s5142_s19 }
 0x636   : > { %2431 = vrot.lane.b32.xlu0 %v6730_v9, %s5143_s20  ;;  %2369 = vrot.lane.b32.xlu1 %v6747_v51, %s5142_s19 }
 0x63a   : > { %2447 = vrot.lane.b32.xlu0 %v6738_v16, %s5143_s20  ;;  %2433 = vrot.lane.b32.xlu1 %v6741_v7, %s5143_s20 }
 0x63e   : > { %2511 = vrot.lane.b32.xlu0 %v6730_v9, %s5144_s26  ;;  %2449 = vrot.lane.b32.xlu1 %v6747_v51, %s5143_s20 }
 0x642   : > { %2527 = vrot.lane.b32.xlu0 %v6738_v16, %s5144_s26  ;;  %2513 = vrot.lane.b32.xlu1 %v6741_v7, %s5144_s26 }
 0x646   : > { %2591 = vrot.lane.b32.xlu0 %v6730_v9, %s5145_s28  ;;  %2529 = vrot.lane.b32.xlu1 %v6747_v51, %s5144_s26 }
 0x64a   : > { %2607 = vrot.lane.b32.xlu0 %v6738_v16, %s5145_s28  ;;  %2593 = vrot.lane.b32.xlu1 %v6741_v7, %s5145_s28 }
 0x64e   : > { %2687 = vrot.lane.b32.xlu0 %v6730_v9, %s8524_s12  ;;  %2609 = vrot.lane.b32.xlu1 %v6747_v51, %s5145_s28 }
 0x652   : > { %2703 = vrot.lane.b32.xlu0 %v6738_v16, %s8524_s12  ;;  %2689 = vrot.lane.b32.xlu1 %v6741_v7, %s8524_s12 }
 0x656   : > { %2767 = vrot.lane.b32.xlu0 %v6730_v9, %s8525_s25  ;;  %2705 = vrot.lane.b32.xlu1 %v6747_v51, %s8524_s12 }
 0x65a   : > { %2783 = vrot.lane.b32.xlu0 %v6738_v16, %s8525_s25  ;;  %2769 = vrot.lane.b32.xlu1 %v6741_v7, %s8525_s25 }
 0x65e   : > { %2847 = vrot.lane.b32.xlu0 %v6730_v9, %s8526_s14  ;;  %2785 = vrot.lane.b32.xlu1 %v6747_v51, %s8525_s25 }
 0x662   : > { %2863 = vrot.lane.b32.xlu0 %v6738_v16, %s8526_s14  ;;  %2849 = vrot.lane.b32.xlu1 %v6741_v7, %s8526_s14 }
 0x664   : > { %v6799_v3 = vpop.permute.xlu0 %2343 }
 0x666   : > { %2927 = vrot.lane.b32.xlu0 %v6730_v9, %s8527_s15  ;;  %2865 = vrot.lane.b32.xlu1 %v6747_v51, %s8526_s14 }
 0x668   : > { %v6811_v4 = vpop.permute.xlu0 %2359  ;;  %v6813_v34 = vpop.permute.xlu1 %2345 }
 0x66a   : > { %2929 = vrot.lane.b32.xlu1 %v6741_v7, %s8527_s15  ;;  %2347 = vrot.lane.b32.xlu0 %v6805_v36, %s5142_s19 }
 0x66c   : > { %v6825_v18 = vpop.permute.xlu0 %2423  ;;  %v6827_v19 = vpop.permute.xlu1 %2361 }
 0x66e   : > { %2363 = vrot.lane.b32.xlu0 %v6819_v25, %s5142_s19  ;;  %2349 = vrot.lane.b32.xlu1 %v6821_v6, %s5142_s19 }
 0x670   : > { %v6835_v15 = vpop.permute.xlu0 %2439  ;;  %v6837_v1 = vpop.permute.xlu1 %2425 }
 0x672   : > { %2427 = vrot.lane.b32.xlu0 %v6805_v36, %s5143_s20  ;;  %2365 = vrot.lane.b32.xlu1 %v6833_v43, %s5142_s19 }
 0x674   : > { %v6843_v35 = vpop.permute.xlu0 %2503  ;;  %v6845_v53 = vpop.permute.xlu1 %2441 }
 0x676   : > { %2443 = vrot.lane.b32.xlu0 %v6819_v25, %s5143_s20  ;;  %2429 = vrot.lane.b32.xlu1 %v6821_v6, %s5143_s20 }
 0x678   : > { %v6851_v52 = vpop.permute.xlu0 %2519  ;;  %v6853_v38 = vpop.permute.xlu1 %2505 }
 0x67a   : > { %2507 = vrot.lane.b32.xlu0 %v6805_v36, %s5144_s26  ;;  %2445 = vrot.lane.b32.xlu1 %v6833_v43, %s5143_s20 }
 0x67c   : > { %v6859_v58 = vpop.permute.xlu0 %2583  ;;  %v6861_v11 = vpop.permute.xlu1 %2521 }
 0x67e   : > { %2523 = vrot.lane.b32.xlu0 %v6819_v25, %s5144_s26  ;;  %2509 = vrot.lane.b32.xlu1 %v6821_v6, %s5144_s26 }
 0x680   : > { %v6867_v59 = vpop.permute.xlu0 %2599  ;;  %v6869_v55 = vpop.permute.xlu1 %2585 }
 0x682   : > { %2587 = vrot.lane.b32.xlu0 %v6805_v36, %s5145_s28  ;;  %2525 = vrot.lane.b32.xlu1 %v6833_v43, %s5144_s26 }
 0x684   : > { %v6875_v13 = vpop.permute.xlu0 %2679  ;;  %v6877_v54 = vpop.permute.xlu1 %2601 }
 0x686   : > { %2603 = vrot.lane.b32.xlu0 %v6819_v25, %s5145_s28  ;;  %2589 = vrot.lane.b32.xlu1 %v6821_v6, %s5145_s28 }
 0x688   : > { %v6883_v28 = vpop.permute.xlu0 %2695  ;;  %v6885_v31 = vpop.permute.xlu1 %2681 }
 0x68a   : > { %2683 = vrot.lane.b32.xlu0 %v6805_v36, %s8524_s12  ;;  %2605 = vrot.lane.b32.xlu1 %v6833_v43, %s5145_s28 }
 0x68c   : > { %v6891_v5 = vpop.permute.xlu0 %2759  ;;  %v6893_v30 = vpop.permute.xlu1 %2697 }
 0x68e   : > { %2699 = vrot.lane.b32.xlu0 %v6819_v25, %s8524_s12  ;;  %2685 = vrot.lane.b32.xlu1 %v6821_v6, %s8524_s12 }
 0x690   : > { %v6899_v2 = vpop.permute.xlu0 %2775  ;;  %v6901_v49 = vpop.permute.xlu1 %2761 }
 0x692   : > { %2763 = vrot.lane.b32.xlu0 %v6805_v36, %s8525_s25  ;;  %2701 = vrot.lane.b32.xlu1 %v6833_v43, %s8524_s12 }
 0x694   : > { %v6907_v40 = vpop.permute.xlu0 %2839  ;;  %v6909_v44 = vpop.permute.xlu1 %2777 }
 0x696   : > { %2779 = vrot.lane.b32.xlu0 %v6819_v25, %s8525_s25  ;;  %2765 = vrot.lane.b32.xlu1 %v6821_v6, %s8525_s25 }
 0x698   : > { %v6915_v48 = vpop.permute.xlu0 %2855  ;;  %v6917_v41 = vpop.permute.xlu1 %2841 }
 0x69a   : > { %2843 = vrot.lane.b32.xlu0 %v6805_v36, %s8526_s14  ;;  %2781 = vrot.lane.b32.xlu1 %v6833_v43, %s8525_s25 }
 0x69c   : > { %v6925_v20 = vpop.permute.xlu0 %2919  ;;  %v6927_v50 = vpop.permute.xlu1 %2857 }
 0x69d   : > { %8534 = vst [vmem:[#allocation81_spill] sm:$0xff] %v6925_v20 }
 0x69e   : > { %2859 = vrot.lane.b32.xlu0 %v6819_v25, %s8526_s14  ;;  %2845 = vrot.lane.b32.xlu1 %v6821_v6, %s8526_s14 }
 0x6a0   : > { %v2352_v12 = vpop.permute.xlu0 %2351  ;;  %v6937_v62 = vpop.permute.xlu1 %2921 }
 0x6a1   : > { %8535 = vst [vmem:[#allocation82_spill] sm:$0xff] %v6937_v62  ;;  %v2383_v24 = vsel %vm426_vm0, %v6799_v3, %v2352_v12  ;;  %v8542_v62 = vld [vmem:[#allocation11_spill] sm:$0xff] }
 0x6a2   : > { %2355 = vrot.lane.b32.xlu0 %v6935_v32, %s5142_s19  ;;  %2861 = vrot.lane.b32.xlu1 %v6833_v43, %s8526_s14  ;;  %v2392_v57 = vmul.f32 %v2383_v24, %v8538_v27  ;;  %v2379_v24 = vsel %vm426_vm0, %v2352_v12, %v6811_v4 }
 0x6a3   : > { %v2393_v0 = vmul.f32 %v2379_v24, %v8540_v46 }
 0x6a4   : > { %v2368_v60 = vpop.permute.xlu0 %2367  ;;  %v2354_v56 = vpop.permute.xlu1 %2353 }
 0x6a5   : > { %v2384_v42 = vsel %vm426_vm0, %v6813_v34, %v2354_v56  ;;  %v2380_v22 = vsel %vm426_vm0, %v2354_v56, %v6827_v19  ;;  %v2375_v61 = vsel %vm426_vm0, %v6811_v4, %v2368_v60  ;;  %v2387_v45 = vsel %vm426_vm0, %v2368_v60, %v6799_v3  ;;  %v8541_v60 = vld [vmem:[#allocation10_spill] sm:$0xff] }
 0x6a6   : > { %v2396_v26 = vmul.f32 %v2384_v42, %v8538_v27  ;;  %2371 = vrot.lane.b32.xlu0 %v6948_v23, %s5142_s19  ;;  %2357 = vrot.lane.b32.xlu1 %v6950_v29, %s5142_s19  ;;  %v2397_v10 = vmul.f32 %v2380_v22, %v8540_v46  ;;  %v2391_v47 = vmul.f32 %v2387_v45, %v8541_v60 }
 0x6a7   : > { %v2394_v20 = vmul.f32 %v2375_v61, %v8542_v62 }
 0x6a8   : > { %v2432_v8 = vpop.permute.xlu0 %2431  ;;  %v2370_v56 = vpop.permute.xlu1 %2369  ;;  %v2408_v42 = vpack.c.bf16 %v2396_v26, %v2392_v57  ;;  %v2409_v61 = vpack.c.bf16 %v2397_v10, %v2393_v0 }
 0x6a9   : > { %v2376_v37 = vsel %vm426_vm0, %v6827_v19, %v2370_v56  ;;  %v2388_v3 = vsel %vm426_vm0, %v2370_v56, %v6813_v34  ;;  %v2459_v22 = vsel %vm523_vm1, %v2432_v8, %v6835_v15  ;;  %v2463_v4 = vsel %vm523_vm1, %v6825_v18, %v2432_v8  ;;  %v8543_v8 = vld [vmem:[#allocation12_spill] sm:$0xff] }
 0x6aa   : > { %v2395_v12 = vmul.f32 %v2388_v3, %v8541_v60  ;;  %v2398_v57 = vmul.f32 %v2376_v37, %v8542_v62  ;;  %3115 = vmatprep.subr.bf16.mxu0 %v2408_v42  ;;  %2435 = vrot.lane.b32.xlu0 %v6935_v32, %s5143_s20  ;;  %v7006_v56 = vmul.f32 %v2463_v4, %v8543_v8  ;;  %v8544_v42 = vld [vmem:[#allocation13_spill] sm:$0xff] }
 0x6ab   : > { %2373 = vrot.lane.b32.xlu1 %v6975_v17, %s5142_s19  ;;  %v7009_v3 = vmul.f32 %v2459_v22, %v8544_v42  ;;  %s5153_s19 = smov [#allocation4]  }
 0x6ac   : > { %v2407_v34 = vpack.c.bf16 %v2395_v12, %v2391_v47  ;;  %v2448_v19 = vpop.permute.xlu0 %2447  ;;  %v2434_v37 = vpop.permute.xlu1 %2433  ;;  %v2410_v26 = vpack.c.bf16 %v2398_v57, %v2394_v20 }
 0x6ad   : > { %v2460_v45 = vsel %vm523_vm1, %v2434_v37, %v6845_v53  ;;  %v2464_v24 = vsel %vm523_vm1, %v6837_v1, %v2434_v37  ;;  %v2455_v10 = vsel %vm523_vm1, %v6835_v15, %v2448_v19  ;;  %v2467_v12 = vsel %vm523_vm1, %v2448_v19, %v6825_v18  ;;  %v8546_v37 = vld [vmem:[#allocation15_spill] sm:$0xff] }
 0x6ae   : > { %v7012_v47 = vmul.f32 %v2464_v24, %v8543_v8  ;;  %v7015_v20 = vmul.f32 %v2460_v45, %v8544_v42  ;;  %3116 = vmatpush1.bf16.msra.mxu0 %v2407_v34  ;;  %3221 = vmatprep.subr.bf16.mxu1 %v2410_v26  ;;  %v8545_v34 = vld [vmem:[#allocation14_spill] sm:$0xff]  ;;  %v7041_v26 = vmul.f32 %v2455_v10, %v8546_v37  ;;  %v8548_v24 = vld [vmem:[#allocation17_spill] sm:$0xff] }
 0x6af   : > { %2451 = vrot.lane.b32.xlu0 %v6948_v23, %s5143_s20  ;;  %2437 = vrot.lane.b32.xlu1 %v6950_v29, %s5143_s20  ;;  %v7038_v19 = vmul.f32 %v2467_v12, %v8545_v34 }
 0x6b0   : > { %3222 = vmatpush1.bf16.msra.mxu1 %v2409_v61  ;;  %v2512_v0 = vpop.permute.xlu0 %2511  ;;  %v2450_v22 = vpop.permute.xlu1 %2449 }
 0x6b1   : > { %v2456_v18 = vsel %vm523_vm1, %v6845_v53, %v2450_v22  ;;  %v2468_v4 = vsel %vm523_vm1, %v2450_v22, %v6837_v1  ;;  %v2539_v53 = vsel %vm620_vm2, %v2512_v0, %v6851_v52  ;;  %v2543_v1 = vsel %vm620_vm2, %v6843_v35, %v2512_v0 }
 0x6b2   : > { %v7044_v61 = vmul.f32 %v2468_v4, %v8545_v34  ;;  %v7047_v45 = vmul.f32 %v2456_v18, %v8546_v37  ;;  %v8547_v4 = vld [vmem:[#allocation16_spill] sm:$0xff]  ;;  %v7073_v15 = vmul.f32 %v2539_v53, %v8548_v24  ;;  %v8553_v53 = vld [vmem:[#allocation19_spill] sm:$0xff] }
 0x6b3   : > { %2515 = vrot.lane.b32.xlu0 %v6935_v32, %s5144_s26  ;;  %2453 = vrot.lane.b32.xlu1 %v6975_v17, %s5143_s20  ;;  %v7070_v57 = vmul.f32 %v2543_v1, %v8547_v4  ;;  %s5082_s20 = sshll.u32 %s5153_s19, 4  ;;  %s5083_s20 = int_to_ptr.vmem [resolvable:$false] %s5082_s20 }
 0x6b4   : > { %v2528_v10 = vpop.permute.xlu0 %2527  ;;  %v2514_v12 = vpop.permute.xlu1 %2513  ;;  %8549 = vst [vmem:[#allocation9_spill] sm:$0xff] %v7073_v15  ;;  %p5085_p2 = scmp.lt.s32.totalorder %s8151_s16, %s5083_s20 }
 0x6b5   : > { %v2540_v18 = vsel %vm620_vm2, %v2514_v12, %v6861_v11  ;;  %v2544_v0 = vsel %vm620_vm2, %v6853_v38, %v2514_v12  ;;  %v2535_v22 = vsel %vm620_vm2, %v6851_v52, %v2528_v10  ;;  %v2547_v12 = vsel %vm620_vm2, %v2528_v10, %v6843_v35  ;;  %v8551_v10 = vld [vmem:[#allocation18_spill] sm:$0xff] }
 0x6b6   : > { %v7076_v39 = vmul.f32 %v2544_v0, %v8547_v4  ;;  %v7079_v14 = vmul.f32 %v2540_v18, %v8548_v24  ;;  %v7102_v7 = vmul.f32 %v2547_v12, %v8551_v10  ;;  %v7105_v9 = vmul.f32 %v2535_v22, %v8553_v53  ;;  %v8555_v0 = vld [vmem:[#allocation20_spill] sm:$0xff]  ;;  %v8556_v22 = vld [vmem:[#allocation21_spill] sm:$0xff] }
 0x6b7   : > { %2531 = vrot.lane.b32.xlu0 %v6948_v23, %s5144_s26  ;;  %2517 = vrot.lane.b32.xlu1 %v6950_v29, %s5144_s26 }
 0x6b8   : > { %8550 = vst [vmem:[#allocation10_spill] sm:$0xff] %v7079_v14  ;;  %v2592_v1 = vpop.permute.xlu0 %2591  ;;  %v2530_v18 = vpop.permute.xlu1 %2529  ;;  %8552 = vst [vmem:[#allocation11_spill] sm:$0xff] %v7102_v7 }
 0x6b9   : > { %v2536_v52 = vsel %vm620_vm2, %v6861_v11, %v2530_v18  ;;  %v2548_v35 = vsel %vm620_vm2, %v2530_v18, %v6853_v38  ;;  %v2619_v11 = vsel %vm717_vm3, %v2592_v1, %v6867_v59  ;;  %v2623_v38 = vsel %vm717_vm3, %v6859_v58, %v2592_v1 }
 0x6ba   : > { %v7108_v15 = vmul.f32 %v2548_v35, %v8551_v10  ;;  %v7111_v14 = vmul.f32 %v2536_v52, %v8553_v53  ;;  %v7134_v53 = vmul.f32 %v2623_v38, %v8555_v0  ;;  %v7137_v7 = vmul.f32 %v2619_v11, %v8556_v22  ;;  %v8561_v11 = vld [vmem:[#allocation23_spill] sm:$0xff] }
 0x6bb   : > { %2595 = vrot.lane.b32.xlu0 %v6935_v32, %s5145_s28  ;;  %2533 = vrot.lane.b32.xlu1 %v6975_v17, %s5144_s26  ;;  %s5084_s26 = scalar_lea.vmem %s5083_s20, 4096 }
 0x6bc   : > { %8554 = vst [vmem:[#allocation12_spill] sm:$0xff] %v7108_v15  ;;  %v2608_v12 = vpop.permute.xlu0 %2607  ;;  %v2594_v18 = vpop.permute.xlu1 %2593  ;;  %8557 = vst [vmem:[#allocation13_spill] sm:$0xff] %v7137_v7 }
 0x6bd   : > { %v2620_v35 = vsel %vm717_vm3, %v2594_v18, %v6877_v54  ;;  %v2624_v1 = vsel %vm717_vm3, %v6869_v55, %v2594_v18  ;;  %v2615_v52 = vsel %vm717_vm3, %v6867_v59, %v2608_v12  ;;  %v2627_v18 = vsel %vm717_vm3, %v2608_v12, %v6859_v58  ;;  %v8559_v12 = vld [vmem:[#allocation22_spill] sm:$0xff] }
 0x6be   : > { %v7140_v15 = vmul.f32 %v2624_v1, %v8555_v0  ;;  %v7143_v10 = vmul.f32 %v2620_v35, %v8556_v22  ;;  %v7166_v22 = vmul.f32 %v2627_v18, %v8559_v12  ;;  %v7169_v7 = vmul.f32 %v2615_v52, %v8561_v11  ;;  %v8563_v1 = vld [vmem:[#allocation24_spill] sm:$0xff]  ;;  %v8565_v52 = vld [vmem:[#allocation25_spill] sm:$0xff] }
 0x6bf   : > { %2611 = vrot.lane.b32.xlu0 %v6948_v23, %s5145_s28  ;;  %2597 = vrot.lane.b32.xlu1 %v6950_v29, %s5145_s28 }
 0x6c0   : > { %8558 = vst [vmem:[#allocation14_spill] sm:$0xff] %v7143_v10  ;;  %v2688_v38 = vpop.permute.xlu0 %2687  ;;  %v2610_v35 = vpop.permute.xlu1 %2609  ;;  %8560 = vst [vmem:[#allocation15_spill] sm:$0xff] %v7166_v22 }
 0x6c1   : > { %v2616_v59 = vsel %vm717_vm3, %v6877_v54, %v2610_v35  ;;  %v2628_v58 = vsel %vm717_vm3, %v2610_v35, %v6869_v55  ;;  %v2715_v54 = vsel %vm830_vm4, %v2688_v38, %v6883_v28  ;;  %v2719_v55 = vsel %vm830_vm4, %v6875_v13, %v2688_v38 }
 0x6c2   : > { %v7172_v10 = vmul.f32 %v2628_v58, %v8559_v12  ;;  %v7175_v0 = vmul.f32 %v2616_v59, %v8561_v11  ;;  %v7201_v22 = vmul.f32 %v2715_v54, %v8565_v52  ;;  %v8571_v54 = vld [vmem:[#allocation27_spill] sm:$0xff] }
 0x6c3   : > { %2935 = vrot.lane.b32.xlu0 %v6648_v63, %s8527_s15  ;;  %2613 = vrot.lane.b32.xlu1 %v6975_v17, %s5145_s28  ;;  %v7198_v63 = vmul.f32 %v2719_v55, %v8563_v1 }
 0x6c4   : > { %8562 = vst [vmem:[#allocation16_spill] sm:$0xff] %v7172_v10  ;;  %v2704_v18 = vpop.permute.xlu0 %2703  ;;  %v2690_v35 = vpop.permute.xlu1 %2689  ;;  %8566 = vst [vmem:[#allocation22_spill] sm:$0xff] %v7201_v22 }
 0x6c5   : > { %v2716_v58 = vsel %vm830_vm4, %v2690_v35, %v6893_v30  ;;  %v2720_v38 = vsel %vm830_vm4, %v6885_v31, %v2690_v35  ;;  %8564 = vst [vmem:[#allocation17_spill] sm:$0xff] %v7198_v63  ;;  %v2711_v59 = vsel %vm830_vm4, %v6883_v28, %v2704_v18  ;;  %v2723_v35 = vsel %vm830_vm4, %v2704_v18, %v6875_v13  ;;  %v8569_v18 = vld [vmem:[#allocation26_spill] sm:$0xff] }
 0x6c6   : > { %v7204_v10 = vmul.f32 %v2720_v38, %v8563_v1  ;;  %v7207_v11 = vmul.f32 %v2716_v58, %v8565_v52  ;;  %v7230_v1 = vmul.f32 %v2711_v59, %v8569_v18  ;;  %v7233_v63 = vmul.f32 %v2723_v35, %v8571_v54  ;;  %v8575_v38 = vld [vmem:[#allocation28_spill] sm:$0xff]  ;;  %v8577_v59 = vld [vmem:[#allocation29_spill] sm:$0xff] }
 0x6c7   : > { %2691 = vrot.lane.b32.xlu0 %v6935_v32, %s8524_s12  ;;  %2937 = vrot.lane.b32.xlu1 %v6667_v33, %s8527_s15 }
 0x6c8   : > { %8567 = vst [vmem:[#allocation83_spill] sm:$0xff] %v7204_v10  ;;  %8568 = vst [vmem:[#allocation84_spill] sm:$0xff] %v7207_v11  ;;  %v2768_v55 = vpop.permute.xlu0 %2767  ;;  %v2706_v58 = vpop.permute.xlu1 %2705 }
 0x6c9   : > { %v2712_v28 = vsel %vm830_vm4, %v6893_v30, %v2706_v58  ;;  %v2724_v13 = vsel %vm830_vm4, %v2706_v58, %v6885_v31  ;;  %8570 = vst [vmem:[#allocation85_spill] sm:$0xff] %v7230_v1  ;;  %8572 = vst [vmem:[#allocation86_spill] sm:$0xff] %v7233_v63  ;;  %v2795_v30 = vsel %vm927_vm5, %v2768_v55, %v6899_v2 }
 0x6ca   : > { %v7236_v10 = vmul.f32 %v2712_v28, %v8569_v18  ;;  %v7239_v52 = vmul.f32 %v2724_v13, %v8571_v54  ;;  %v2799_v31 = vsel %vm927_vm5, %v6891_v5, %v2768_v55  ;;  %v7265_v1 = vmul.f32 %v2795_v30, %v8577_v59  ;;  %v8583_v30 = vld [vmem:[#allocation31_spill] sm:$0xff] }
 0x6cb   : > { %2707 = vrot.lane.b32.xlu0 %v6948_v23, %s8524_s12  ;;  %2945 = vrot.lane.b32.xlu1 %v6747_v51, %s8527_s15  ;;  %v7262_v54 = vmul.f32 %v2799_v31, %v8575_v38 }
 0x6cc   : > { %8573 = vst [vmem:[#allocation87_spill] sm:$0xff] %v7236_v10  ;;  %8574 = vst [vmem:[#allocation88_spill] sm:$0xff] %v7239_v52  ;;  %v2784_v35 = vpop.permute.xlu0 %2783  ;;  %v2770_v58 = vpop.permute.xlu1 %2769 }
 0x6cd   : > { %v2796_v13 = vsel %vm927_vm5, %v2770_v58, %v6909_v44  ;;  %v2800_v55 = vsel %vm927_vm5, %v6901_v49, %v2770_v58  ;;  %8576 = vst [vmem:[#allocation89_spill] sm:$0xff] %v7262_v54  ;;  %8578 = vst [vmem:[#allocation90_spill] sm:$0xff] %v7265_v1  ;;  %v2791_v28 = vsel %vm927_vm5, %v6899_v2, %v2784_v35 }
 0x6ce   : > { %v7268_v10 = vmul.f32 %v2800_v55, %v8575_v38  ;;  %v7271_v18 = vmul.f32 %v2796_v13, %v8577_v59  ;;  %v2803_v58 = vsel %vm927_vm5, %v2784_v35, %v6891_v5  ;;  %v8581_v35 = vld [vmem:[#allocation30_spill] sm:$0xff]  ;;  %v8587_v55 = vld [vmem:[#allocation32_spill] sm:$0xff] }
 0x6cf   : > { %2771 = vrot.lane.b32.xlu0 %v6935_v32, %s8525_s25  ;;  %2693 = vrot.lane.b32.xlu1 %v6950_v29, %s8524_s12  ;;  %v7294_v38 = vmul.f32 %v2791_v28, %v8581_v35  ;;  %v7297_v54 = vmul.f32 %v2803_v58, %v8583_v30  ;;  %v8589_v28 = vld [vmem:[#allocation33_spill] sm:$0xff] }
 0x6d0   : > { %8579 = vst [vmem:[#allocation91_spill] sm:$0xff] %v7268_v10  ;;  %8580 = vst [vmem:[#allocation92_spill] sm:$0xff] %v7271_v18  ;;  %v2848_v31 = vpop.permute.xlu0 %2847  ;;  %v2786_v13 = vpop.permute.xlu1 %2785 }
 0x6d1   : > { %v2792_v2 = vsel %vm927_vm5, %v6909_v44, %v2786_v13  ;;  %v2804_v5 = vsel %vm927_vm5, %v2786_v13, %v6901_v49  ;;  %8582 = vst [vmem:[#allocation93_spill] sm:$0xff] %v7294_v38  ;;  %8584 = vst [vmem:[#allocation94_spill] sm:$0xff] %v7297_v54  ;;  %v2875_v44 = vsel %vm1024_vm6, %v2848_v31, %v6915_v48 }
 0x6d2   : > { %v7300_v10 = vmul.f32 %v2792_v2, %v8581_v35  ;;  %v7303_v59 = vmul.f32 %v2804_v5, %v8583_v30  ;;  %v2879_v49 = vsel %vm1024_vm6, %v6907_v40, %v2848_v31  ;;  %v7329_v38 = vmul.f32 %v2875_v44, %v8589_v28  ;;  %v8596_v44 = vld [vmem:[#allocation35_spill] sm:$0xff] }
 0x6d3   : > { %2787 = vrot.lane.b32.xlu0 %v6948_v23, %s8525_s25  ;;  %2709 = vrot.lane.b32.xlu1 %v6975_v17, %s8524_s12  ;;  %v7326_v30 = vmul.f32 %v2879_v49, %v8587_v55 }
 0x6d4   : > { %8585 = vst [vmem:[#allocation95_spill] sm:$0xff] %v7300_v10  ;;  %8586 = vst [vmem:[#allocation96_spill] sm:$0xff] %v7303_v59  ;;  %v2864_v58 = vpop.permute.xlu0 %2863  ;;  %v2850_v13 = vpop.permute.xlu1 %2849 }
 0x6d5   : > { %v2876_v5 = vsel %vm1024_vm6, %v2850_v13, %v6927_v50  ;;  %v2880_v31 = vsel %vm1024_vm6, %v6917_v41, %v2850_v13  ;;  %8588 = vst [vmem:[#allocation97_spill] sm:$0xff] %v7326_v30  ;;  %8590 = vst [vmem:[#allocation98_spill] sm:$0xff] %v7329_v38  ;;  %v2871_v2 = vsel %vm1024_vm6, %v6915_v48, %v2864_v58 }
 0x6d6   : > { %v7332_v10 = vmul.f32 %v2880_v31, %v8587_v55  ;;  %v7335_v35 = vmul.f32 %v2876_v5, %v8589_v28  ;;  %v2883_v13 = vsel %vm1024_vm6, %v2864_v58, %v6907_v40  ;;  %v8594_v58 = vld [vmem:[#allocation34_spill] sm:$0xff] }
 0x6d7   : > { %2851 = vrot.lane.b32.xlu0 %v6935_v32, %s8526_s14  ;;  %2773 = vrot.lane.b32.xlu1 %v6950_v29, %s8525_s25  ;;  %v7360_v55 = vmul.f32 %v2871_v2, %v8594_v58  ;;  %v7363_v30 = vmul.f32 %v2883_v13, %v8596_v44 }
 0x6d8   : > { %8591 = vst [vmem:[#allocation99_spill] sm:$0xff] %v7332_v10  ;;  %8592 = vst [vmem:[#allocation100_spill] sm:$0xff] %v7335_v35  ;;  %v7349_v49 = vpop.permute.xlu0 %2927  ;;  %v2866_v5 = vpop.permute.xlu1 %2865 }
 0x6d9   : > { %8593 = vst [vmem:[#allocation101_spill] sm:$0xff] %v7349_v49  ;;  %v2872_v48 = vsel %vm1024_vm6, %v6927_v50, %v2866_v5  ;;  %v2884_v40 = vsel %vm1024_vm6, %v2866_v5, %v6917_v41  ;;  %8595 = vst [vmem:[#allocation102_spill] sm:$0xff] %v7360_v55  ;;  %v5033_v5 = vld [vmem:[%s8203_s2 + $0x4] ss:$12 sps:$4 sm:$0xff]  }
 0x6da   : > { %8597 = vst [vmem:[#allocation103_spill] sm:$0xff] %v7363_v30  ;;  %v7366_v10 = vmul.f32 %v2872_v48, %v8594_v58  ;;  %v7369_v28 = vmul.f32 %v2884_v40, %v8596_v44  ;;  %3147 = vmatprep.mubr.bf16.mxu0 %v5033_v5  ;;  %3253 = vmatprep.mubr.bf16.mxu1 %v5033_v5 }
 0x6db   : > { %2867 = vrot.lane.b32.xlu0 %v6948_v23, %s8526_s14  ;;  %2789 = vrot.lane.b32.xlu1 %v6975_v17, %s8525_s25  ;;  %s8149_s25 = scalar_lea.hbm %s8207_s6, %s4328_s9 }
 0x6dc   : > { %8598 = vst [vmem:[#allocation104_spill] sm:$0xff] %v7366_v10  ;;  %8599 = vst [vmem:[#allocation105_spill] sm:$0xff] %v7369_v28  ;;  %v7377_v41 = vpop.permute.xlu1 %2929  ;;  %v2348_v2 = vpop.permute.xlu0 %2347 }
 0x6dd   : > { %8600 = vst [vmem:[#allocation106_spill] sm:$0xff] %v7377_v41 }
 0x6df   : > { %2943 = vrot.lane.b32.xlu0 %v6738_v16, %s8527_s15  ;;  %2853 = vrot.lane.b32.xlu1 %v6950_v29, %s8526_s14 }
 0x6e0   : > { %v2364_v48 = vpop.permute.xlu0 %2363  ;;  %v2350_v40 = vpop.permute.xlu1 %2349 }
 0x6e3   : > { %2923 = vrot.lane.b32.xlu0 %v6805_v36, %s8527_s15  ;;  %2869 = vrot.lane.b32.xlu1 %v6975_v17, %s8526_s14 }
 0x6e4   : > { %v7392_v50 = vpop.permute.xlu0 %2427  ;;  %v2366_v13 = vpop.permute.xlu1 %2365 }
 0x6e7   : > { %2931 = vrot.lane.b32.xlu0 %v6935_v32, %s8527_s15  ;;  %2925 = vrot.lane.b32.xlu1 %v6821_v6, %s8527_s15 }
 0x6e8   : > { %v7398_v5 = vpop.permute.xlu0 %2443  ;;  %v7400_v31 = vpop.permute.xlu1 %2429 }
 0x6eb   : > { %2939 = vrot.lane.b32.xlu0 %v6819_v25, %s8527_s15  ;;  %2941 = vrot.lane.b32.xlu1 %v6833_v43, %s8527_s15 }
 0x6ec   : > { %v7406_v55 = vpop.permute.xlu0 %2507  ;;  %v7408_v10 = vpop.permute.xlu1 %2445 }
 0x6ef   : > { %2947 = vrot.lane.b32.xlu0 %v6948_v23, %s8527_s15  ;;  %2933 = vrot.lane.b32.xlu1 %v6950_v29, %s8527_s15 }
 0x6f0   : > { %v7414_v44 = vpop.permute.xlu0 %2523  ;;  %v7416_v58 = vpop.permute.xlu1 %2509 }
 0x6f3   : > { %2949 = vrot.lane.b32.xlu1 %v6975_v17, %s8527_s15  ;;  %s5078_s15 = scalar_lea.vmem %s8151_s16, 2048 }
 0x6f4   : > { %v7420_v30 = vpop.permute.xlu0 %2587  ;;  %v7422_v28 = vpop.permute.xlu1 %2525  ;;  %p5079_p13 = scmp.ne.s32.totalorder %s8151_s16, %s5078_s15  ;;  %p5086_p3 = scmp.lt.s32.totalorder %s5084_s26, %s5078_s15 }
 0x6f6   : > { %p5080_p0 = pnand %p5079_p13, %p5230_p6  ;;  %p5087_p4 = por %p5086_p3, %p5085_p2 }
 0x6f8   : > { %v7424_v38 = vpop.permute.xlu0 %2603  ;;  %v7426_v35 = vpop.permute.xlu1 %2589  ;;  %p5081_p1 = pneg %p5080_p0 }
 0x6fa   : > { %p5088_p5 = pnand %p5087_p4, %p5081_p1 }
 0x6fc   : > { %v7428_v41 = vpop.permute.xlu0 %2683  ;;  %v7430_v49 = vpop.permute.xlu1 %2605 }
 0x6fd   : > { %8601 = vst [vmem:[#allocation107_spill] sm:$0xff] %v7428_v41 }
 0x700   : > { %v7432_v54 = vpop.permute.xlu0 %2699  ;;  %v7434_v59 = vpop.permute.xlu1 %2685 }
 0x701   : > { %8602 = vst [vmem:[#allocation108_spill] sm:$0xff] %v7432_v54  ;;  %8603 = vst [vmem:[#allocation109_spill] sm:$0xff] %v7434_v59 }
 0x704   : > { %v7436_v1 = vpop.permute.xlu0 %2763  ;;  %v7438_v18 = vpop.permute.xlu1 %2701 }
 0x705   : > { %8604 = vst [vmem:[#allocation110_spill] sm:$0xff] %v7436_v1  ;;  %8605 = vst [vmem:[#allocation111_spill] sm:$0xff] %v7438_v18 }
 0x708   : > { %v7440_v63 = vpop.permute.xlu0 %2779  ;;  %v7442_v52 = vpop.permute.xlu1 %2765 }
 0x709   : > { %8606 = vst [vmem:[#allocation112_spill] sm:$0xff] %v7440_v63  ;;  %8607 = vst [vmem:[#allocation113_spill] sm:$0xff] %v7442_v52 }
 0x70c   : > { %v7444_v22 = vpop.permute.xlu0 %2843  ;;  %v7446_v11 = vpop.permute.xlu1 %2781 }
 0x70d   : > { %8608 = vst [vmem:[#allocation114_spill] sm:$0xff] %v7444_v22  ;;  %8609 = vst [vmem:[#allocation115_spill] sm:$0xff] %v7446_v11 }
 0x710   : > { %v7448_v43 = vpop.permute.xlu0 %2859  ;;  %v7450_v41 = vpop.permute.xlu1 %2845 }
 0x711   : > { %8610 = vst [vmem:[#allocation116_spill] sm:$0xff] %v7448_v43  ;;  %8611 = vst [vmem:[#allocation117_spill] sm:$0xff] %v7450_v41 }
 0x714   : > { %v2356_v25 = vpop.permute.xlu0 %2355  ;;  %v7452_v6 = vpop.permute.xlu1 %2861 }
 0x715   : > { %8612 = vst [vmem:[#allocation118_spill] sm:$0xff] %v7452_v6  ;;  %v2385_v1 = vsel %vm426_vm0, %v2348_v2, %v2356_v25  ;;  %v2381_v17 = vsel %vm426_vm0, %v2356_v25, %v2364_v48 }
 0x716   : > { %v2400_v52 = vmul.f32 %v2385_v1, %v8538_v27 }
 0x718   : > { %v2372_v59 = vpop.permute.xlu0 %2371  ;;  %v2358_v18 = vpop.permute.xlu1 %2357 }
 0x719   : > { %v2386_v63 = vsel %vm426_vm0, %v2350_v40, %v2358_v18  ;;  %v2389_v22 = vsel %vm426_vm0, %v2372_v59, %v2348_v2  ;;  %v2377_v41 = vsel %vm426_vm0, %v2364_v48, %v2372_v59  ;;  %v2382_v6 = vsel %vm426_vm0, %v2358_v18, %v2366_v13 }
 0x71a   : > { %v2404_v43 = vmul.f32 %v2386_v63, %v8538_v27  ;;  %v2399_v23 = vmul.f32 %v2389_v22, %v8541_v60  ;;  %v2402_v27 = vmul.f32 %v2377_v41, %v8542_v62  ;;  %v2405_v59 = vmul.f32 %v2382_v6, %v8540_v46 }
 0x71c   : > { %v2436_v11 = vpop.permute.xlu0 %2435  ;;  %v2412_v54 = vpack.c.bf16 %v2404_v43, %v2400_v52  ;;  %v2401_v43 = vmul.f32 %v2381_v17, %v8540_v46 }
 0x71d   : > { %v2374_v36 = vpop.permute.xlu1 %2373  ;;  %v2465_v25 = vsel %vm523_vm1, %v7392_v50, %v2436_v11 }
 0x71e   : > { %v2378_v1 = vsel %vm426_vm0, %v2366_v13, %v2374_v36  ;;  %v2390_v63 = vsel %vm426_vm0, %v2374_v36, %v2350_v40  ;;  %3117 = vmatprep.subr.bf16.mxu0 %v2412_v54  ;;  %v2413_v36 = vpack.c.bf16 %v2405_v59, %v2401_v43  ;;  %v2461_v40 = vsel %vm523_vm1, %v2436_v11, %v7398_v5 }
 0x71f   : > { %v2403_v18 = vmul.f32 %v2390_v63, %v8541_v60  ;;  %v2406_v2 = vmul.f32 %v2378_v1, %v8542_v62  ;;  %v2480_v60 = vmul.f32 %v2465_v25, %v8543_v8  ;;  %v2481_v59 = vmul.f32 %v2461_v40, %v8544_v42 }
 0x721   : > { %v2411_v22 = vpack.c.bf16 %v2403_v18, %v2399_v23  ;;  %v2452_v52 = vpop.permute.xlu0 %2451  ;;  %v2414_v13 = vpack.c.bf16 %v2406_v2, %v2402_v27  ;;  %v2438_v48 = vpop.permute.xlu1 %2437  ;;  %v8613_v23 = vpack.c.bf16 %v7012_v47, %v7006_v56  ;;  %v8615_v27 = vpack.c.bf16 %v7044_v61, %v7038_v19 }
 0x722   : > { %v2466_v6 = vsel %vm523_vm1, %v7400_v31, %v2438_v48  ;;  %v2462_v17 = vsel %vm523_vm1, %v2438_v48, %v7408_v10  ;;  %v2457_v62 = vsel %vm523_vm1, %v7398_v5, %v2452_v52  ;;  %v2469_v54 = vsel %vm523_vm1, %v2452_v52, %v7392_v50 }
 0x723   : > { %3118 = vmatpush1.bf16.msra.mxu0 %v2411_v22  ;;  %v2484_v46 = vmul.f32 %v2466_v6, %v8543_v8  ;;  %3223 = vmatprep.subr.bf16.mxu1 %v2414_v13  ;;  %v8614_v8 = vpack.c.bf16 %v7047_v45, %v7041_v26  ;;  %v2485_v1 = vmul.f32 %v2462_v17, %v8544_v42  ;;  %v8620_v17 = vld [vmem:[#allocation19_spill] sm:$0xff] }
 0x724   : > { %3119 = vmatprep.subr.bf16.mxu0 %v8613_v23  ;;  %3224 = vmatpush1.bf16.msra.mxu1 %v2413_v36  ;;  %v2479_v11 = vmul.f32 %v2469_v54, %v8545_v34  ;;  %v2482_v26 = vmul.f32 %v2457_v62, %v8546_v37  ;;  %v8617_v22 = vpack.c.bf16 %v7076_v39, %v7070_v57  ;;  %v8619_v57 = vld [vmem:[#allocation18_spill] sm:$0xff]  ;;  %v8622_v23 = vld [vmem:[#allocation11_spill] sm:$0xff] }
 0x725   : > { %v2516_v41 = vpop.permute.xlu0 %2515  ;;  %3225 = vmatprep.subr.bf16.mxu1 %v8614_v8  ;;  %v2454_v56 = vpop.permute.xlu1 %2453  ;;  %v2492_v47 = vpack.c.bf16 %v2484_v46, %v2480_v60  ;;  %v2493_v43 = vpack.c.bf16 %v2485_v1, %v2481_v59  ;;  %v8618_v13 = vpack.c.bf16 %v7111_v14, %v7105_v9  ;;  %v8621_v9 = vld [vmem:[#allocation12_spill] sm:$0xff]  ;;  %v8628_v59 = vpack.c.bf16 %v7140_v15, %v7134_v53 }
 0x726   : > { %v2458_v63 = vsel %vm523_vm1, %v7408_v10, %v2454_v56  ;;  %v2470_v50 = vsel %vm523_vm1, %v2454_v56, %v7400_v31  ;;  %v2545_v10 = vsel %vm620_vm2, %v7406_v55, %v2516_v41  ;;  %v8616_v31 = vpack.c.bf16 %v7015_v20, %v7009_v3 }
 0x727   : > { %3120 = vmatpush1.bf16.msra.mxu0 %v8615_v27  ;;  %v2483_v45 = vmul.f32 %v2470_v50, %v8545_v34  ;;  %v2486_v5 = vmul.f32 %v2458_v63, %v8546_v37  ;;  %v2560_v37 = vmul.f32 %v2545_v10, %v8547_v4  ;;  %v8623_v62 = vpack.c.bf16 %v8621_v9, %v8622_v23  ;;  %v8627_v27 = vld [vmem:[#allocation20_spill] sm:$0xff]  ;;  %v8644_v23 = vld [vmem:[#allocation7_spill] sm:$0xff] }
 0x728   : > { %3121 = vmatprep.subr.bf16.mxu0 %v2492_v47  ;;  %3226 = vmatpush1.bf16.msra.mxu1 %v8616_v31 }
 0x729   : > { %v2532_v19 = vpop.permute.xlu0 %2531  ;;  %v2491_v61 = vpack.c.bf16 %v2483_v45, %v2479_v11  ;;  %v2518_v18 = vpop.permute.xlu1 %2517  ;;  %v2494_v2 = vpack.c.bf16 %v2486_v5, %v2482_v26 }
 0x72a   : > { %v2546_v34 = vsel %vm620_vm2, %v7416_v58, %v2518_v18  ;;  %v2542_v42 = vsel %vm620_vm2, %v2518_v18, %v7422_v28  ;;  %v2537_v3 = vsel %vm620_vm2, %v7414_v44, %v2532_v19  ;;  %v2549_v20 = vsel %vm620_vm2, %v2532_v19, %v7406_v55 }
 0x72b   : > { %v2564_v25 = vmul.f32 %v2546_v34, %v8547_v4  ;;  %3122 = vmatpush1.bf16.msra.mxu0 %v2491_v61  ;;  %3227 = vmatprep.subr.bf16.mxu1 %v2494_v2  ;;  %v2541_v4 = vsel %vm620_vm2, %v2516_v41, %v7414_v44  ;;  %v2565_v6 = vmul.f32 %v2542_v42, %v8548_v24  ;;  %v8625_v41 = vld [vmem:[#allocation9_spill] sm:$0xff]  ;;  %v8631_v34 = vld [vmem:[#allocation23_spill] sm:$0xff] }
 0x72c   : > { %3123 = vmatprep.subr.bf16.mxu0 %v8617_v22  ;;  %3228 = vmatpush1.bf16.msra.mxu1 %v2493_v43  ;;  %v2559_v60 = vmul.f32 %v2549_v20, %v8619_v57  ;;  %v2562_v44 = vmul.f32 %v2537_v3, %v8620_v17  ;;  %v2561_v54 = vmul.f32 %v2541_v4, %v8548_v24  ;;  %v8630_v2 = vld [vmem:[#allocation21_spill] sm:$0xff]  ;;  %v8633_v42 = vld [vmem:[#allocation15_spill] sm:$0xff] }
 0x72d   : > { %v2596_v52 = vpop.permute.xlu0 %2595  ;;  %3229 = vmatprep.subr.bf16.mxu1 %v8618_v13  ;;  %v2534_v48 = vpop.permute.xlu1 %2533  ;;  %v2572_v36 = vpack.c.bf16 %v2564_v25, %v2560_v37  ;;  %v8629_v19 = vpack.c.bf16 %v7175_v0, %v7169_v7  ;;  %v8632_v0 = vld [vmem:[#allocation16_spill] sm:$0xff]  ;;  %v8636_v20 = vld [vmem:[#allocation13_spill] sm:$0xff] }
 0x72e   : > { %v2538_v55 = vsel %vm620_vm2, %v7422_v28, %v2534_v48  ;;  %v2550_v39 = vsel %vm620_vm2, %v2534_v48, %v7416_v58  ;;  %v2625_v28 = vsel %vm717_vm3, %v7420_v30, %v2596_v52  ;;  %v8624_v58 = vld [vmem:[#allocation10_spill] sm:$0xff]  ;;  %v2573_v63 = vpack.c.bf16 %v2565_v6, %v2561_v54 }
 0x72f   : > { %v2563_v46 = vmul.f32 %v2550_v39, %v8619_v57  ;;  %v2566_v14 = vmul.f32 %v2538_v55, %v8620_v17  ;;  %3124 = vmatpush1.bf16.msra.mxu0 %v8623_v62  ;;  %v8626_v40 = vpack.c.bf16 %v8624_v58, %v8625_v41  ;;  %v2640_v24 = vmul.f32 %v2625_v28, %v8627_v27  ;;  %v8640_v17 = vld [vmem:[#allocation71_spill] sm:$0xff]  ;;  %v8645_v62 = vld [vmem:[#allocation8_spill] sm:$0xff] }
 0x730   : > { %3125 = vmatprep.subr.bf16.mxu0 %v2572_v36  ;;  %v2621_v31 = vsel %vm717_vm3, %v2596_v52, %v7424_v38  ;;  %v8634_v25 = vpack.c.bf16 %v8632_v0, %v8633_v42  ;;  %v8639_v36 = vld [vmem:[#allocation70_spill] sm:$0xff]  ;;  %v2666_v55 = vpack.c.bf16 %v6747_v51, %v6738_v16  ;;  %v2670_v54 = vpack.c.bf16 %v8645_v62, %v8644_v23  ;;  %v8646_v16 = vld [vmem:[#allocation108_spill] sm:$0xff]  ;;  %v8673_v62 = vld [vmem:[#allocation113_spill] sm:$0xff] }
 0x731   : > { %3230 = vmatpush1.bf16.msra.mxu1 %v8626_v40  ;;  %v2612_v8 = vpop.permute.xlu0 %2611  ;;  %v2571_v56 = vpack.c.bf16 %v2563_v46, %v2559_v60  ;;  %v2598_v47 = vpop.permute.xlu1 %2597  ;;  %v2574_v1 = vpack.c.bf16 %v2566_v14, %v2562_v44  ;;  %v2641_v3 = vmul.f32 %v2621_v31, %v8630_v2  ;;  %v2668_v60 = vpack.c.bf16 %v6950_v29, %v6935_v32  ;;  %v8641_v46 = vld [vmem:[#allocation69_spill] sm:$0xff]  ;;  %v8642_v14 = vld [vmem:[#allocation68_spill] sm:$0xff]  ;;  %v8648_v29 = vld [vmem:[#allocation79_spill] sm:$0xff] }
 0x732   : > { %v2626_v50 = vsel %vm717_vm3, %v7426_v35, %v2598_v47  ;;  %v2622_v11 = vsel %vm717_vm3, %v2598_v47, %v7430_v49  ;;  %v2617_v45 = vsel %vm717_vm3, %v7424_v38, %v2612_v8  ;;  %v2629_v5 = vsel %vm717_vm3, %v2612_v8, %v7420_v30  ;;  %v8647_v32 = vld [vmem:[#allocation73_spill] sm:$0xff]  ;;  %v8651_v47 = vld [vmem:[#allocation78_spill] sm:$0xff] }
 0x733   : > { %v2644_v26 = vmul.f32 %v2626_v50, %v8627_v27  ;;  %3126 = vmatpush1.bf16.msra.mxu0 %v2571_v56  ;;  %3231 = vmatprep.subr.bf16.mxu1 %v2574_v1  ;;  %v2645_v43 = vmul.f32 %v2622_v11, %v8630_v2  ;;  %v2639_v30 = vmul.f32 %v2629_v5, %v8559_v12  ;;  %v8650_v8 = vld [vmem:[#allocation109_spill] sm:$0xff]  ;;  %v8652_v1 = vld [vmem:[#allocation80_spill] sm:$0xff]  ;;  %v8653_v50 = vld [vmem:[#allocation107_spill] sm:$0xff] }
 0x734   : > { %3127 = vmatprep.subr.bf16.mxu0 %v8628_v59  ;;  %v2642_v38 = vmul.f32 %v2617_v45, %v8631_v34  ;;  %v2665_v44 = vpack.c.bf16 %v6667_v33, %v8640_v17  ;;  %v8643_v9 = vpack.c.bf16 %v8641_v46, %v8642_v14  ;;  %v2667_v41 = vpack.c.bf16 %v8648_v29, %v8647_v32  ;;  %v8649_v33 = vld [vmem:[#allocation111_spill] sm:$0xff]  ;;  %v8655_v59 = vld [vmem:[#allocation84_spill] sm:$0xff]  ;;  %v8656_v31 = vld [vmem:[#allocation22_spill] sm:$0xff] }
 0x735   : > { %3232 = vmatpush1.bf16.msra.mxu1 %v2573_v63  ;;  %v7586_v10 = vpop.permute.xlu0 %2935  ;;  %v2614_v61 = vpop.permute.xlu1 %2613  ;;  %v2652_v18 = vpack.c.bf16 %v2644_v26, %v2640_v24  ;;  %v2653_v48 = vpack.c.bf16 %v2645_v43, %v2641_v3  ;;  %v2669_v63 = vpack.c.bf16 %v8652_v1, %v8651_v47  ;;  %v8654_v24 = vld [vmem:[#allocation25_spill] sm:$0xff]  ;;  %v8659_v43 = vld [vmem:[#allocation88_spill] sm:$0xff]  ;;  %v8662_v0 = vld [vmem:[#allocation26_spill] sm:$0xff] }
 0x736   : > { %3233 = vmatprep.subr.bf16.mxu1 %v8629_v19  ;;  %v2618_v15 = vsel %vm717_vm3, %v7430_v49, %v2614_v61  ;;  %v2630_v53 = vsel %vm717_vm3, %v2614_v61, %v7426_v35  ;;  %v8635_v49 = vld [vmem:[#allocation14_spill] sm:$0xff]  ;;  %v8657_v19 = vpack.c.bf16 %v8655_v59, %v8656_v31  ;;  %v8675_v29 = vld [vmem:[#allocation92_spill] sm:$0xff]  ;;  %v8683_v59 = vld [vmem:[#allocation31_spill] sm:$0xff] }
 0x737   : > { %v2643_v37 = vmul.f32 %v2630_v53, %v8559_v12  ;;  %v2646_v7 = vmul.f32 %v2618_v15, %v8631_v34  ;;  %3128 = vmatpush1.bf16.msra.mxu0 %v8634_v25  ;;  %v8637_v22 = vpack.c.bf16 %v8635_v49, %v8636_v20  ;;  %v8638_v12 = vld [vmem:[#allocation72_spill] sm:$0xff]  ;;  %v8660_v15 = vld [vmem:[#allocation86_spill] sm:$0xff]  ;;  %v8663_v25 = vld [vmem:[#allocation27_spill] sm:$0xff] }
 0x738   : > { %3129 = vmatprep.subr.bf16.mxu0 %v2652_v18  ;;  %v2664_v6 = vpack.c.bf16 %v8639_v36, %v8638_v12  ;;  %v8658_v18 = vld [vmem:[#allocation24_spill] sm:$0xff]  ;;  %v8661_v53 = vpack.c.bf16 %v8659_v43, %v8660_v15  ;;  %v8668_v12 = vld [vmem:[#allocation87_spill] sm:$0xff]  ;;  %v8669_v36 = vld [vmem:[#allocation85_spill] sm:$0xff] }
 0x739   : > { %3234 = vmatpush1.bf16.msra.mxu1 %v8637_v22  ;;  %v2692_v35 = vpop.permute.xlu0 %2691  ;;  %v2651_v52 = vpack.c.bf16 %v2643_v37, %v2639_v30  ;;  %v7612_v4 = vpop.permute.xlu1 %2937  ;;  %v2654_v13 = vpack.c.bf16 %v2646_v7, %v2642_v38  ;;  %v8664_v22 = vld [vmem:[#allocation83_spill] sm:$0xff]  ;;  %v8671_v46 = vld [vmem:[#allocation110_spill] sm:$0xff]  ;;  %v8679_v47 = vld [vmem:[#allocation96_spill] sm:$0xff] }
 0x73a   : > { %v2717_v51 = vsel %vm830_vm4, %v2692_v35, %v8646_v16  ;;  %v2721_v27 = vsel %vm830_vm4, %v8653_v50, %v2692_v35  ;;  %v8665_v35 = vld [vmem:[#allocation17_spill] sm:$0xff]  ;;  %v8680_v1 = vld [vmem:[#allocation94_spill] sm:$0xff]  ;;  %v8685_v43 = vld [vmem:[#allocation91_spill] sm:$0xff] }
 0x73b   : > { %3130 = vmatpush1.bf16.msra.mxu0 %v2651_v52  ;;  %3235 = vmatprep.subr.bf16.mxu1 %v2654_v13  ;;  %v2736_v11 = vmul.f32 %v2717_v51, %v8654_v24  ;;  %v2735_v38 = vmul.f32 %v2721_v27, %v8658_v18  ;;  %v8666_v52 = vpack.c.bf16 %v8664_v22, %v8665_v35  ;;  %v8667_v13 = vld [vmem:[#allocation112_spill] sm:$0xff]  ;;  %v8686_v15 = vld [vmem:[#allocation89_spill] sm:$0xff] }
 0x73c   : > { %3131 = vmatprep.subr.bf16.mxu0 %v2664_v6  ;;  %v8670_v6 = vpack.c.bf16 %v8668_v12, %v8669_v36  ;;  %v8696_v36 = vld [vmem:[#allocation33_spill] sm:$0xff] }
 0x73d   : > { %3236 = vmatpush1.bf16.msra.mxu1 %v2653_v48  ;;  %v2708_v39 = vpop.permute.xlu0 %2707  ;;  %v7618_v57 = vpop.permute.xlu1 %2945 }
 0x73e   : > { %3237 = vmatprep.subr.bf16.mxu1 %v2666_v55  ;;  %v2713_v45 = vsel %vm830_vm4, %v8646_v16, %v2708_v39  ;;  %v2725_v5 = vsel %vm830_vm4, %v2708_v39, %v8653_v50  ;;  %v8674_v16 = vld [vmem:[#allocation29_spill] sm:$0xff] }
 0x73f   : > { %3132 = vmatpush1.bf16.msra.mxu0 %v8643_v9  ;;  %v2737_v42 = vmul.f32 %v2713_v45, %v8662_v0  ;;  %v2738_v3 = vmul.f32 %v2725_v5, %v8663_v25  ;;  %v8672_v9 = vld [vmem:[#allocation115_spill] sm:$0xff] }
 0x740   : > { %3133 = vmatprep.subr.bf16.mxu0 %v2668_v60 }
 0x741   : > { %3238 = vmatpush1.bf16.msra.mxu1 %v2665_v44  ;;  %v2772_v28 = vpop.permute.xlu0 %2771  ;;  %v2694_v58 = vpop.permute.xlu1 %2693 }
 0x742   : > { %3239 = vmatprep.subr.bf16.mxu1 %v2670_v54  ;;  %v2718_v40 = vsel %vm830_vm4, %v2694_v58, %v8649_v33  ;;  %v2722_v56 = vsel %vm830_vm4, %v8650_v8, %v2694_v58  ;;  %v2797_v48 = vsel %vm927_vm5, %v2772_v28, %v8667_v13  ;;  %v2801_v14 = vsel %vm927_vm5, %v8671_v46, %v2772_v28 }
 0x743   : > { %v2740_v26 = vmul.f32 %v2718_v40, %v8654_v24  ;;  %3134 = vmatpush1.bf16.msra.mxu0 %v2667_v41  ;;  %v2739_v2 = vmul.f32 %v2722_v56, %v8658_v18  ;;  %v2816_v51 = vmul.f32 %v2797_v48, %v8674_v16  ;;  %v8676_v41 = vld [vmem:[#allocation90_spill] sm:$0xff] }
 0x744   : > { %3135 = vmatprep.subr.bf16.mxu0 %v8657_v19  ;;  %v8684_v19 = vld [vmem:[#allocation116_spill] sm:$0xff]  ;;  %v8695_v48 = vld [vmem:[#allocation114_spill] sm:$0xff] }
 0x745   : > { %3240 = vmatpush1.bf16.msra.mxu1 %v2669_v63  ;;  %v2788_v61 = vpop.permute.xlu0 %2787  ;;  %v2710_v30 = vpop.permute.xlu1 %2709  ;;  %v2748_v34 = vpack.c.bf16 %v2740_v26, %v2736_v11  ;;  %v2747_v39 = vpack.c.bf16 %v2739_v2, %v2735_v38  ;;  %v8681_v63 = vpack.c.bf16 %v8679_v47, %v8680_v1  ;;  %v8682_v11 = vld [vmem:[#allocation30_spill] sm:$0xff] }
 0x746   : > { %3241 = vmatprep.subr.bf16.mxu1 %v8661_v53  ;;  %v2714_v37 = vsel %vm830_vm4, %v8649_v33, %v2710_v30  ;;  %v2726_v7 = vsel %vm830_vm4, %v2710_v30, %v8650_v8  ;;  %v2793_v58 = vsel %vm927_vm5, %v8667_v13, %v2788_v61  ;;  %v2805_v28 = vsel %vm927_vm5, %v2788_v61, %v8671_v46  ;;  %v8678_v8 = vld [vmem:[#allocation28_spill] sm:$0xff]  ;;  %v8688_v30 = vld [vmem:[#allocation101_spill] sm:$0xff] }
 0x747   : > { %v2741_v49 = vmul.f32 %v2714_v37, %v8662_v0  ;;  %v2742_v20 = vmul.f32 %v2726_v7, %v8663_v25  ;;  %3136 = vmatpush1.bf16.msra.mxu0 %v8666_v52  ;;  %v8677_v33 = vpack.c.bf16 %v8675_v29, %v8676_v41  ;;  %v2815_v24 = vmul.f32 %v2801_v14, %v8678_v8  ;;  %v8690_v37 = vld [vmem:[#allocation106_spill] sm:$0xff]  ;;  %v8693_v25 = vld [vmem:[#allocation93_spill] sm:$0xff]  ;;  %v8702_v29 = vld [vmem:[#allocation32_spill] sm:$0xff] }
 0x748   : > { %3137 = vmatprep.subr.bf16.mxu0 %v2748_v34  ;;  %v2817_v26 = vmul.f32 %v2793_v58, %v8682_v11  ;;  %v2818_v31 = vmul.f32 %v2805_v28, %v8683_v59  ;;  %v8687_v53 = vpack.c.bf16 %v8685_v43, %v8686_v15  ;;  %v8689_v34 = vld [vmem:[#allocation81_spill] sm:$0xff]  ;;  %v8691_v7 = vld [vmem:[#allocation82_spill] sm:$0xff]  ;;  %v5060_v43 = vld [vmem:[%s8204_s3 + $0x20] ss:$0 sm:$0xff] }
 0x749   : > { %3242 = vmatpush1.bf16.msra.mxu1 %v8670_v6  ;;  %v2852_v55 = vpop.permute.xlu0 %2851  ;;  %v2749_v60 = vpack.c.bf16 %v2741_v49, %v2737_v42  ;;  %v2774_v17 = vpop.permute.xlu1 %2773  ;;  %v2750_v44 = vpack.c.bf16 %v2742_v20, %v2738_v3  ;;  %v2959_v38 = vsel %vm1121_vm7, %v8689_v34, %v8688_v30  ;;  %v2960_v0 = vsel %vm1121_vm7, %v8691_v7, %v8690_v37  ;;  %v8692_v42 = vld [vmem:[#allocation95_spill] sm:$0xff] }
 0x74a   : > { %v2798_v23 = vsel %vm927_vm5, %v2774_v17, %v8672_v9  ;;  %v2802_v54 = vsel %vm927_vm5, %v8673_v62, %v2774_v17  ;;  %v2877_v61 = vsel %vm1024_vm6, %v2852_v55, %v8684_v19  ;;  %v8694_v3 = vpack.c.bf16 %v8692_v42, %v8693_v25  ;;  %v8698_v17 = vld [vmem:[#allocation117_spill] sm:$0xff] }
 0x74b   : > { %v2820_v32 = vmul.f32 %v2798_v23, %v8674_v16  ;;  %3138 = vmatpush1.bf16.msra.mxu0 %v2747_v39  ;;  %3243 = vmatprep.subr.bf16.mxu1 %v2750_v44  ;;  %v2819_v56 = vmul.f32 %v2802_v54, %v8678_v8  ;;  %v2956_v20 = vsel %vm1121_vm7, %v8690_v37, %v7612_v4  ;;  %v8697_v39 = vld [vmem:[#allocation118_spill] sm:$0xff]  ;;  %v7760_v23 = vld [vmem:[%s8204_s3 + $0x28] ss:$0 sm:$0xff]  ;;  %v8704_v8 = vld [vmem:[#allocation103_spill] sm:$0xff] }
 0x74c   : > { %3139 = vmatprep.subr.bf16.mxu0 %v8677_v33  ;;  %v2881_v12 = vsel %vm1024_vm6, %v8695_v48, %v2852_v55  ;;  %v2896_v6 = vmul.f32 %v2877_v61, %v8696_v36  ;;  %v8699_v16 = vld [vmem:[#allocation100_spill] sm:$0xff]  ;;  %v2964_v28 = vsel %vm1121_vm7, %v7618_v57, %v8691_v7  ;;  %v8708_v61 = vld [vmem:[#allocation99_spill] sm:$0xff]  ;;  %v2971_v15 = vmul.f32 %v5060_v43, %v2960_v0  ;;  %v5061_v0 = vld [vmem:[%s8204_s3 + $0x30] ss:$0 sm:$0xff] }
 0x74d   : > { %3244 = vmatpush1.bf16.msra.mxu1 %v2749_v60  ;;  %v2868_v40 = vpop.permute.xlu0 %2867  ;;  %v2790_v50 = vpop.permute.xlu1 %2789  ;;  %v2828_v27 = vpack.c.bf16 %v2820_v32, %v2816_v51  ;;  %v2827_v22 = vpack.c.bf16 %v2819_v56, %v2815_v24  ;;  %v8700_v51 = vld [vmem:[#allocation98_spill] sm:$0xff]  ;;  %v2895_v41 = vmul.f32 %v2881_v12, %v8702_v29 }
 0x74e   : > { %3245 = vmatprep.subr.bf16.mxu1 %v8681_v63  ;;  %v2794_v45 = vsel %vm927_vm5, %v8672_v9, %v2790_v50  ;;  %v2806_v5 = vsel %vm927_vm5, %v2790_v50, %v8673_v62  ;;  %v2873_v46 = vsel %vm1024_vm6, %v8684_v19, %v2868_v40  ;;  %v2885_v14 = vsel %vm1024_vm6, %v2868_v40, %v8695_v48  ;;  %v8703_v40 = vld [vmem:[#allocation105_spill] sm:$0xff]  ;;  %v8706_v63 = vld [vmem:[#allocation34_spill] sm:$0xff] }
 0x74f   : > { %v2821_v18 = vmul.f32 %v2794_v45, %v8682_v11  ;;  %v2822_v2 = vmul.f32 %v2806_v5, %v8683_v59  ;;  %3140 = vmatpush1.bf16.msra.mxu0 %v8687_v53  ;;  %v2955_v9 = vsel %vm1121_vm7, %v8688_v30, %v7586_v10  ;;  %v2972_v62 = vmul.f32 %v7760_v23, %v2956_v20  ;;  %v5059_v5 = vld [vmem:[%s8204_s3 + $0x38] ss:$0 sm:$0xff]  ;;  %v8711_v30 = vld [vmem:[#allocation104_spill] sm:$0xff] }
 0x750   : > { %3141 = vmatprep.subr.bf16.mxu0 %v2828_v27  ;;  %v8701_v58 = vpack.c.bf16 %v8699_v16, %v8700_v51  ;;  %v8705_v56 = vpack.c.bf16 %v8703_v40, %v8704_v8  ;;  %v2897_v50 = vmul.f32 %v2873_v46, %v8706_v63  ;;  %v8707_v27 = vld [vmem:[#allocation35_spill] sm:$0xff]  ;;  %v2952_v53 = vsel %vm1121_vm7, %v7612_v4, %v7618_v57  ;;  %v5034_v12 = vld [vmem:[%s8203_s2 + $0x1c] ss:$12 sps:$4 sm:$0xff]  }
 0x751   : > { %3246 = vmatpush1.bf16.msra.mxu1 %v8694_v3  ;;  %v2944_v49 = vpop.permute.xlu0 %2943  ;;  %v2829_v35 = vpack.c.bf16 %v2821_v18, %v2817_v26  ;;  %v2854_v52 = vpop.permute.xlu1 %2853  ;;  %v2830_v13 = vpack.c.bf16 %v2822_v2, %v2818_v31  ;;  %v2898_v24 = vmul.f32 %v2885_v14, %v8707_v27  ;;  %v8709_v18 = vld [vmem:[#allocation97_spill] sm:$0xff]  ;;  %v2974_v42 = vmul.f32 %v5059_v5, %v2964_v28  ;;  %v5031_v4 = vld [vmem:[%s8203_s2] ss:$12 sps:$4 sm:$0xff]  }
 0x752   : > { %v2878_v60 = vsel %vm1024_vm6, %v2854_v52, %v8697_v39  ;;  %v2882_v44 = vsel %vm1024_vm6, %v8698_v17, %v2854_v52  ;;  %v2963_v54 = vsel %vm1121_vm7, %v2944_v49, %v8689_v34  ;;  %v2951_v45 = vsel %vm1121_vm7, %v7586_v10, %v2944_v49  ;;  %v8712_v34 = vld [vmem:[#allocation102_spill] sm:$0xff] }
 0x753   : > { %v2900_v55 = vmul.f32 %v2878_v60, %v8696_v36  ;;  %3142 = vmatpush1.bf16.msra.mxu0 %v2827_v22  ;;  %3247 = vmatprep.subr.bf16.mxu1 %v2830_v13  ;;  %v2899_v33 = vmul.f32 %v2882_v44, %v8702_v29  ;;  %v2970_v59 = vmul.f32 %v5059_v5, %v2963_v54 }
 0x754   : > { %3143 = vmatprep.subr.bf16.mxu0 %v8701_v58  ;;  %v8710_v2 = vpack.c.bf16 %v8708_v61, %v8709_v18  ;;  %v2968_v10 = vmul.f32 %v7760_v23, %v2955_v9  ;;  %v8713_v37 = vpack.c.bf16 %v8711_v30, %v8712_v34  ;;  %v2969_v22 = vmul.f32 %v5061_v0, %v2951_v45  ;;  %v5036_v9 = vld [vmem:[%s8203_s2 + $0x18] ss:$12 sps:$4 sm:$0xff]   ;;  %v5038_v45 = vld [vmem:[%s8203_s2 + $0x20] ss:$12 sps:$4 sm:$0xff]   ;;  %v8725_v18 = vld [vmem:[#allocation45_spill] sm:$0xff] }
 0x755   : > { %3248 = vmatpush1.bf16.msra.mxu1 %v2829_v35  ;;  %v7769_v32 = vpop.permute.xlu0 %2923  ;;  %v2870_v47 = vpop.permute.xlu1 %2869  ;;  %v2908_v1 = vpack.c.bf16 %v2900_v55, %v2896_v6  ;;  %v2907_v25 = vpack.c.bf16 %v2899_v33, %v2895_v41  ;;  %v2967_v57 = vmul.f32 %v5060_v43, %v2959_v38  ;;  %v2986_v52 = vpack.c.bf16 %v2974_v42, %v2970_v59  ;;  %v8721_v59 = vld [vmem:[#allocation41_spill] sm:$0xff]  ;;  %v8724_v61 = vld [vmem:[#allocation46_spill] sm:$0xff]  ;;  %v8731_v30 = vld [vmem:[#allocation51_spill] sm:$0xff] }
 0x756   : > { %3249 = vmatprep.subr.bf16.mxu1 %v8705_v56  ;;  %v2874_v11 = vsel %vm1024_vm6, %v8697_v39, %v2870_v47  ;;  %v2886_v26 = vsel %vm1024_vm6, %v2870_v47, %v8698_v17  ;;  %v2984_v35 = vpack.c.bf16 %v2972_v62, %v2968_v10  ;;  %v2973_v13 = vmul.f32 %v5061_v0, %v2952_v53  ;;  %v8729_v10 = vld [vmem:[#allocation49_spill] sm:$0xff]  ;;  %v8730_v53 = vld [vmem:[#allocation52_spill] sm:$0xff]  ;;  %v8732_v34 = vld [vmem:[#allocation54_spill] sm:$0xff] }
 0x757   : > { %v2901_v31 = vmul.f32 %v2874_v11, %v8706_v63  ;;  %v2902_v19 = vmul.f32 %v2886_v26, %v8707_v27  ;;  %3144 = vmatpush1.bf16.msra.mxu0 %v8710_v2  ;;  %v2983_v36 = vpack.c.bf16 %v2971_v15, %v2967_v57  ;;  %v8716_v27 = vld [vmem:[#allocation38_spill] sm:$0xff]  ;;  %v8718_v11 = vld [vmem:[#allocation40_spill] sm:$0xff]  ;;  %v8719_v26 = vld [vmem:[#allocation39_spill] sm:$0xff] }
 0x758   : > { %3145 = vmatprep.subr.bf16.mxu0 %v2908_v1  ;;  %v2985_v39 = vpack.c.bf16 %v2973_v13, %v2969_v22  ;;  %v8726_v2 = vld [vmem:[#allocation48_spill] sm:$0xff]  ;;  %v8728_v15 = vld [vmem:[#allocation50_spill] sm:$0xff]  ;;  %v8735_v42 = vld [vmem:[#allocation55_spill] sm:$0xff] }
 0x759   : > { %3250 = vmatpush1.bf16.msra.mxu1 %v8713_v37  ;;  %v2932_v7 = vpop.permute.xlu0 %2931  ;;  %v2909_v3 = vpack.c.bf16 %v2901_v31, %v2897_v50  ;;  %v2926_v49 = vpop.permute.xlu1 %2925  ;;  %v2910_v20 = vpack.c.bf16 %v2902_v19, %v2898_v24  ;;  %v8715_v50 = vld [vmem:[#allocation36_spill] sm:$0xff]  ;;  %v8717_v24 = vld [vmem:[#allocation37_spill] sm:$0xff]  ;;  %v8723_v19 = vld [vmem:[#allocation43_spill] sm:$0xff] }
 0x75a   : > { %v2961_v38 = vsel %vm1121_vm7, %v7769_v32, %v2932_v7  ;;  %v8722_v31 = vld [vmem:[#allocation44_spill] sm:$0xff]  ;;  %v8733_v37 = vld [vmem:[#allocation53_spill] sm:$0xff]  ;;  %v8744_v57 = vld [vmem:[#allocation66_spill] sm:$0xff] }
 0x75b   : > { %3146 = vmatpush1.bf16.msra.mxu0 %v2907_v25  ;;  %3251 = vmatprep.subr.bf16.mxu1 %v2910_v20  ;;  %v2975_v46 = vmul.f32 %v5060_v43, %v2961_v38  ;;  %v8736_v25 = vld [vmem:[#allocation58_spill] sm:$0xff]  ;;  %v8739_v20 = vld [vmem:[#allocation59_spill] sm:$0xff]  ;;  %v8741_v22 = vld [vmem:[#allocation61_spill] sm:$0xff] }
 0x75c   : > { %3168 = vmatprep.subr.bf16.mxu0 %v2984_v35  ;;  %v8742_v35 = vld [vmem:[#allocation65_spill] sm:$0xff]  ;;  %v8746_v13 = vld [vmem:[#allocation67_spill] sm:$0xff] }
 0x75d   : > { %3252 = vmatpush1.bf16.msra.mxu1 %v2909_v3  ;;  %v2940_v48 = vpop.permute.xlu0 %2939  ;;  %v2942_v6 = vpop.permute.xlu1 %2941  ;;  %v8737_v3 = vld [vmem:[#allocation57_spill] sm:$0xff] }
 0x75e   : > { %3274 = vmatprep.subr.bf16.mxu1 %v2986_v52  ;;  %3148 = vmatmul.mubr.bf16.vlgmr.msra.gmra.mrb[40].mxu0 %v5031_v4  ;;  %v2957_v60 = vsel %vm1121_vm7, %v2932_v7, %v2940_v48  ;;  %v8734_v7 = vld [vmem:[#allocation56_spill] sm:$0xff] }
 0x75f   : > { %3169 = vmatpush1.bf16.msra.mxu0 %v2983_v36  ;;  %3157 = vmatprep.mubr.bf16.mxu0 %v5034_v12  ;;  %v2976_v62 = vmul.f32 %v7760_v23, %v2957_v60  ;;  %v8745_v52 = vld [vmem:[#allocation64_spill] sm:$0xff] }
 0x760   : > { %3254 = vmatmul.mubr.bf16.vlgmr.msra.gmra.mrb[40].mxu1 %v5031_v4  ;;  %v8743_v4 = vld [vmem:[#allocation63_spill] sm:$0xff] }
 0x761   : > { %3275 = vmatpush1.bf16.msra.mxu1 %v2985_v39  ;;  %v2948_v17 = vpop.permute.xlu0 %2947  ;;  %v2934_v44 = vpop.permute.xlu1 %2933  ;;  %3263 = vmatprep.mubr.bf16.mxu1 %v5034_v12  ;;  %v8748_v12 = vld [vmem:[#allocation77_spill] sm:$0xff] }
 0x762   : > { %v2958_v14 = vsel %vm1121_vm7, %v2934_v44, %v2942_v6  ;;  %v2962_v55 = vsel %vm1121_vm7, %v2926_v49, %v2934_v44  ;;  %v2953_v54 = vsel %vm1121_vm7, %v2940_v48, %v2948_v17  ;;  %v2965_v58 = vsel %vm1121_vm7, %v2948_v17, %v7769_v32  ;;  %v8747_v48 = vld [vmem:[#allocation76_spill] sm:$0xff] }
 0x763   : > { %v2979_v16 = vmul.f32 %v5060_v43, %v2962_v55  ;;  %v2980_v51 = vmul.f32 %v7760_v23, %v2958_v14  ;;  %v2977_v33 = vmul.f32 %v5061_v0, %v2953_v54  ;;  %v2978_v56 = vmul.f32 %v5059_v5, %v2965_v58  ;;  %v8727_v43 = vld [vmem:[#allocation47_spill] sm:$0xff]  ;;  %v8749_v14 = vld [vmem:[#allocation74_spill] sm:$0xff] }
 0x764   : > { %v8714_v23 = vmov 0   ;;  %v8750_v55 = vld [vmem:[#allocation75_spill] sm:$0xff] }
 0x765   : > { %v2987_v28 = vpack.c.bf16 %v2979_v16, %v2975_v46  ;;  %v2950_v29 = vpop.permute.xlu1 %2949  ;;  %v2988_v41 = vpack.c.bf16 %v2980_v51, %v2976_v62 }
 0x766   : > { %v2954_v40 = vsel %vm1121_vm7, %v2942_v6, %v2950_v29  ;;  %v2966_v8 = vsel %vm1121_vm7, %v2950_v29, %v2926_v49  ;;  %3158 = vmatmul.mubr.bf16.gmra.mrb[44].mxu0 %v5036_v9  ;;  %v8738_v49 = vld [vmem:[#allocation60_spill] sm:$0xff] }
 0x767   : > { %v2981_v47 = vmul.f32 %v5061_v0, %v2954_v40  ;;  %v2982_v1 = vmul.f32 %v5059_v5, %v2966_v8  ;;  %3170 = vmatprep.subr.bf16.mxu0 %v2988_v41  ;;  %3200 = vmatprep.mubr.bf16.mxu0 %v8714_v23  ;;  %v8720_v5 = vld [vmem:[#allocation42_spill] sm:$0xff]  ;;  %v8757_v41 = vmov 0.0  }
 0x768   : > { %3264 = vmatmul.mubr.bf16.gmra.mrb[44].mxu1 %v5036_v9  ;;  %3171 = vmatpush1.bf16.msra.mxu0 %v2987_v28  ;;  %v8740_v0 = vld [vmem:[#allocation62_spill] sm:$0xff] }
 0x769   : > { %v2989_v32 = vpack.c.bf16 %v2981_v47, %v2977_v33  ;;  %v2990_v63 = vpack.c.bf16 %v2982_v1, %v2978_v56  ;;  %3306 = vmatprep.mubr.bf16.mxu1 %v8714_v23  ;;  %4810 = vmatprep.subr.bf16.mxu0 %v8715_v50 }
 0x76b   : > { %3276 = vmatprep.subr.bf16.mxu1 %v2990_v63 }
 0x76c   : > { %3277 = vmatpush1.bf16.msra.mxu1 %v2989_v32 }
 0x76d   : > { %4842 = vmatprep.subr.bf16.mxu1 %v8716_v27 }
 0x76e   : > { %4294 = vmatmul.mubr.msk.bf16.vlgmr.msra.gmra.mrb[40].mxu0 %vm1296_vm8, %v5037_v21 }
 0x76f   : > { %3210 = vmatprep.mubr.bf16.mxu0 %v8714_v23  ;;  %4812 = vmatpush3.bf16.msra.mxu0 %v8717_v24 }
 0x770   : > { %4296 = vmatmul.mubr.msk.bf16.vlgmr.msra.gmra.mrb[40].mxu1 %vm1296_vm8, %v5037_v21  ;;  %4814 = vmatprep.subr.bf16.mxu0 %v8719_v26 }
 0x771   : > { %3316 = vmatprep.mubr.bf16.mxu1 %v8714_v23  ;;  %4844 = vmatpush3.bf16.msra.mxu1 %v8718_v11 }
 0x772   : > { %4846 = vmatprep.subr.bf16.mxu1 %v8720_v5 }
 0x773   : > { %4816 = vmatpush3.bf16.msra.mxu0 %v8721_v59 }
 0x774   : > { %4818 = vmatprep.subr.bf16.mxu0 %v8723_v19 }
 0x775   : > { %4848 = vmatpush3.bf16.msra.mxu1 %v8722_v31 }
 0x776   : > { %4295 = vmatmul.mubr.msk.bf16.gmra.mrb[44].mxu0 %vm1296_vm8, %v5038_v45  ;;  %4850 = vmatprep.subr.bf16.mxu1 %v8724_v61 }
 0x777   : > { %4820 = vmatpush3.bf16.msra.mxu0 %v8725_v18 }
 0x778   : > { %4297 = vmatmul.mubr.msk.bf16.gmra.mrb[44].mxu1 %vm1296_vm8, %v5038_v45  ;;  %4822 = vmatprep.subr.bf16.mxu0 %v8727_v43 }
 0x779   : > { %4852 = vmatpush3.bf16.msra.mxu1 %v8726_v2 }
 0x77a   : > { %4854 = vmatprep.subr.bf16.mxu1 %v8728_v15 }
 0x77b   : > { %4824 = vmatpush3.bf16.msra.mxu0 %v8729_v10 }
 0x77c   : > { %4826 = vmatprep.subr.bf16.mxu0 %v8731_v30 }
 0x77d   : > { %4856 = vmatpush3.bf16.msra.mxu1 %v8730_v53 }
 0x77e   : > { %4858 = vmatprep.subr.bf16.mxu1 %v8732_v34 }
 0x77f   : > { %4828 = vmatpush3.bf16.msra.mxu0 %v8733_v37 }
 0x780   : > { %4830 = vmatprep.subr.bf16.mxu0 %v8735_v42 }
 0x781   : > { %4860 = vmatpush3.bf16.msra.mxu1 %v8734_v7 }
 0x782   : > { %4862 = vmatprep.subr.bf16.mxu1 %v8736_v25 }
 0x783   : > { %4832 = vmatpush3.bf16.msra.mxu0 %v8737_v3 }
 0x784   : > { %4834 = vmatprep.subr.bf16.mxu0 %v8739_v20 }
 0x785   : > { %4864 = vmatpush3.bf16.msra.mxu1 %v8738_v49 }
 0x786   : > { %4866 = vmatprep.subr.bf16.mxu1 %v8740_v0 }
 0x787   : > { %4836 = vmatpush3.bf16.msra.mxu0 %v8741_v22 }
 0x788   : > { %4838 = vmatprep.subr.bf16.mxu0 %v8743_v4 }
 0x789   : > { %4868 = vmatpush3.bf16.msra.mxu1 %v8742_v35 }
 0x78a   : > { %4870 = vmatprep.subr.bf16.mxu1 %v8744_v57 }
 0x78b   : > { %4840 = vmatpush3.bf16.msra.mxu0 %v8745_v52 }
 0x78c   : > { %4298 = vmatprep.subr.msk.mxu0 %vm1720_vm9, %v8747_v48 }
 0x78d   : > { %4872 = vmatpush3.bf16.msra.mxu1 %v8746_v13 }
 0x78e   : > { %4304 = vmatprep.subr.msk.mxu1 %vm1720_vm9, %v8748_v12 }
 0x841   : > { %v7892_v36 = vpop.f32.mrb[40].mxu0 }
 0x842   : > { %v7894_v6 = vpop.f32.mrb[41].mxu0 }
 0x843   : > { %v7896_v39 = vpop.f32.mrb[40].mxu1  ;;  %v7898_v38 = vpop.f32.mrb[42].mxu0  ;;  %3391 = vmatprep.mubr.f32.mxu0 %v7894_v6 }
 0x844   : > { %v7900_v60 = vpop.f32.mrb[41].mxu1  ;;  %v7903_v17 = vpop.f32.mrb[43].mxu0  ;;  %3392 = vmatmul.mubr.f32.vlgmr.msra.gmra.mrb[48].mxu0 %v7892_v36 }
 0x845   : > { %v7905_v44 = vpop.f32.mrb[42].mxu1  ;;  %3476 = vmatprep.mubr.f32.mxu1 %v7900_v60  ;;  %3396 = vmatprep.mubr.f32.mxu0 %v7903_v17 }
 0x846   : > { %v7909_v46 = vpop.f32.mrb[43].mxu1  ;;  %3477 = vmatmul.mubr.f32.vlgmr.msra.gmra.mrb[48].mxu1 %v7896_v39  ;;  %4299 = vmatpush1.msk.msra.mxu0 %vm1720_vm9, %v8749_v14 }
 0x847   : > { %3481 = vmatprep.mubr.f32.mxu1 %v7909_v46  ;;  %4305 = vmatpush1.msk.msra.mxu1 %vm1720_vm9, %v8750_v55 }
 0x848   : > { %4874 = vmatprep.subr.bf16.mxu0 %v8715_v50  ;;  %3397 = vmatmul.mubr.f32.gmra.mrb[50].mxu0 %v7898_v38 }
 0x849   : > { %4906 = vmatprep.subr.bf16.mxu1 %v8716_v27  ;;  %v7921_v9 = vpop.f32.mrb[44].mxu0 }
 0x84a   : > { %3482 = vmatmul.mubr.f32.gmra.mrb[50].mxu1 %v7905_v44  ;;  %v7924_v62 = vpop.f32.mrb[45].mxu0 }
 0x84b   : > { %8751 = vst [vmem:[#allocation18_spill] sm:$0xff] %v7924_v62  ;;  %v7926_v54 = vpop.f32.mrb[44].mxu1  ;;  %v7928_v16 = vpop.f32.mrb[46].mxu0  ;;  %3401 = vmatprep.mubr.f32.mxu0 %v7924_v62 }
 0x84c   : > { %8752 = vst [vmem:[#allocation19_spill] sm:$0xff] %v7928_v16  ;;  %v7930_v51 = vpop.f32.mrb[45].mxu1  ;;  %v7933_v58 = vpop.f32.mrb[47].mxu0  ;;  %3402 = vmatmul.mubr.f32.gmra.mrb[52].mxu0 %v7921_v9 }
 0x84d   : > { %8753 = vst [vmem:[#allocation12_spill] sm:$0xff] %v7930_v51  ;;  %8754 = vst [vmem:[#allocation11_spill] sm:$0xff] %v7933_v58  ;;  %v7935_v28 = vpop.f32.mrb[46].mxu1  ;;  %3486 = vmatprep.mubr.f32.mxu1 %v7930_v51  ;;  %3406 = vmatprep.mubr.f32.mxu0 %v7933_v58 }
 0x84e   : > { %8755 = vst [vmem:[#allocation10_spill] sm:$0xff] %v7935_v28  ;;  %v7939_v29 = vpop.f32.mrb[47].mxu1  ;;  %3487 = vmatmul.mubr.f32.gmra.mrb[52].mxu1 %v7926_v54 }
 0x84f   : > { %8756 = vst [vmem:[#allocation9_spill] sm:$0xff] %v7939_v29  ;;  %3491 = vmatprep.mubr.f32.mxu1 %v7939_v29 }
 0x850   : > { %3407 = vmatmul.mubr.f32.gmra.mrb[54].mxu0 %v7928_v16 }
 0x851   : > { %3577 = vmatprep.mubr.f32.mxu0 %v8757_v41 }
 0x852   : > { %3492 = vmatmul.mubr.f32.gmra.mrb[54].mxu1 %v7935_v28 }
 0x853   : > { %3666 = vmatprep.mubr.f32.mxu1 %v8757_v41 }
 0x917   : > { %v4537_v33 = vpop.f32.mrb[48].mxu0 }
 0x918   : > { %v4538_v40 = vpop.f32.mrb[49].mxu0 }
 0x919   : > { %v4581_v8 = vpop.f32.mrb[48].mxu1  ;;  %v4539_v56 = vadd.f32 %v4538_v40, %v4537_v33 }
 0x91a   : > { %v4582_v47 = vpop.f32.mrb[49].mxu1 }
 0x91b   : > { %v4583_v1 = vadd.f32 %v4582_v47, %v4581_v8  ;;  %v4540_v23 = vpop.f32.mrb[50].mxu0 }
 0x91c   : > { %v4541_v63 = vpop.f32.mrb[51].mxu0 }
 0x91d   : > { %v3479_v32 = vadd.f32 %v4583_v1, %v4539_v56  ;;  %v4584_v50 = vpop.f32.mrb[50].mxu1  ;;  %v4542_v21 = vadd.f32 %v4541_v63, %v4540_v23 }
 0x91e   : > { %v4585_v27 = vpop.f32.mrb[51].mxu1 }
 0x91f   : > { %v3497_v45 = vmul.f32 0.00390625, %v3479_v32  ;;  %v4586_v29 = vadd.f32 %v4585_v27, %v4584_v50  ;;  %v4543_v58 = vpop.f32.mrb[52].mxu0  ;;  %v8762_v50 = vld [vmem:[#allocation11_spill] sm:$0xff]  ;;  %v8763_v27 = vld [vmem:[#allocation9_spill] sm:$0xff] }
 0x920   : > { %v4544_v16 = vpop.f32.mrb[53].mxu0 }
 0x921   : > { %v3484_v28 = vadd.f32 %v4586_v29, %v4542_v21  ;;  %v4587_v51 = vpop.f32.mrb[52].mxu1  ;;  %4300 = vmatmul.mubr.msk.f32.vlgmr.msra.gmra.mrb[56].mxu0 %vm1707_vm10, %v3497_v45  ;;  %4306 = vmatmul.mubr.msk.f32.vlgmr.msra.gmra.mrb[56].mxu1 %vm1707_vm10, %v3497_v45  ;;  %v4545_v62 = vadd.f32 %v4544_v16, %v4543_v58 }
 0x922   : > { %v4588_v33 = vpop.f32.mrb[53].mxu1  ;;  %3583 = vmatprep.mubr.f32.mxu0 %v8757_v41  ;;  %3672 = vmatprep.mubr.f32.mxu1 %v8757_v41 }
 0x923   : > { %v3498_v40 = vmul.f32 0.00390625, %v3484_v28  ;;  %v4589_v8 = vadd.f32 %v4588_v33, %v4587_v51  ;;  %4876 = vmatpush3.bf16.msra.mxu0 %v8717_v24  ;;  %4908 = vmatpush3.bf16.msra.mxu1 %v8718_v11  ;;  %v4546_v56 = vpop.f32.mrb[54].mxu0  ;;  %v8761_v28 = vld [vmem:[#allocation10_spill] sm:$0xff] }
 0x924   : > { %4878 = vmatprep.subr.bf16.mxu0 %v8719_v26  ;;  %4910 = vmatprep.subr.bf16.mxu1 %v8720_v5  ;;  %v4547_v47 = vpop.f32.mrb[55].mxu0 }
 0x925   : > { %v3489_v29 = vadd.f32 %v4589_v8, %v4545_v62  ;;  %v4590_v1 = vpop.f32.mrb[54].mxu1  ;;  %4301 = vmatmul.mubr.msk.f32.gmra.mrb[58].mxu0 %vm1707_vm10, %v3498_v40  ;;  %4307 = vmatmul.mubr.msk.f32.gmra.mrb[58].mxu1 %vm1707_vm10, %v3498_v40  ;;  %v4548_v16 = vadd.f32 %v4547_v47, %v4546_v56 }
 0x926   : > { %v4591_v58 = vpop.f32.mrb[55].mxu1  ;;  %3589 = vmatprep.mubr.f32.mxu0 %v8757_v41  ;;  %3678 = vmatprep.mubr.f32.mxu1 %v8757_v41 }
 0x927   : > { %v3499_v24 = vmul.f32 0.00390625, %v3489_v29  ;;  %v4592_v11 = vadd.f32 %v4591_v58, %v4590_v1  ;;  %4880 = vmatpush3.bf16.msra.mxu0 %v8721_v59  ;;  %4912 = vmatpush3.bf16.msra.mxu1 %v8722_v31 }
 0x928   : > { %4882 = vmatprep.subr.bf16.mxu0 %v8723_v19  ;;  %4914 = vmatprep.subr.bf16.mxu1 %v8724_v61 }
 0x929   : > { %v3494_v26 = vadd.f32 %v4592_v11, %v4548_v16  ;;  %4302 = vmatmul.mubr.msk.f32.gmra.mrb[60].mxu0 %vm1707_vm10, %v3499_v24  ;;  %4308 = vmatmul.mubr.msk.f32.gmra.mrb[60].mxu1 %vm1707_vm10, %v3499_v24 }
 0x92a   : > { %3595 = vmatprep.mubr.f32.mxu0 %v8757_v41  ;;  %3684 = vmatprep.mubr.f32.mxu1 %v8757_v41 }
 0x92b   : > { %v3500_v5 = vmul.f32 0.00390625, %v3494_v26  ;;  %4884 = vmatpush3.bf16.msra.mxu0 %v8725_v18  ;;  %4916 = vmatpush3.bf16.msra.mxu1 %v8726_v2 }
 0x92c   : > { %4886 = vmatprep.subr.bf16.mxu0 %v8727_v43  ;;  %4918 = vmatprep.subr.bf16.mxu1 %v8728_v15 }
 0x92d   : > { %4303 = vmatmul.mubr.msk.f32.gmra.mrb[62].mxu0 %vm1707_vm10, %v3500_v5  ;;  %4309 = vmatmul.mubr.msk.f32.gmra.mrb[62].mxu1 %vm1707_vm10, %v3500_v5 }
 0x92f   : > { %4888 = vmatpush3.bf16.msra.mxu0 %v8729_v10  ;;  %4920 = vmatpush3.bf16.msra.mxu1 %v8730_v53 }
 0x930   : > { %4890 = vmatprep.subr.bf16.mxu0 %v8731_v30  ;;  %4922 = vmatprep.subr.bf16.mxu1 %v8732_v34 }
 0x933   : > { %4892 = vmatpush3.bf16.msra.mxu0 %v8733_v37  ;;  %4924 = vmatpush3.bf16.msra.mxu1 %v8734_v7 }
 0x934   : > { %4894 = vmatprep.subr.bf16.mxu0 %v8735_v42  ;;  %4926 = vmatprep.subr.bf16.mxu1 %v8736_v25 }
 0x937   : > { %4896 = vmatpush3.bf16.msra.mxu0 %v8737_v3  ;;  %4928 = vmatpush3.bf16.msra.mxu1 %v8738_v49 }
 0x938   : > { %4898 = vmatprep.subr.bf16.mxu0 %v8739_v20  ;;  %4930 = vmatprep.subr.bf16.mxu1 %v8740_v0 }
 0x93b   : > { %4900 = vmatpush3.bf16.msra.mxu0 %v8741_v22  ;;  %4932 = vmatpush3.bf16.msra.mxu1 %v8742_v35 }
 0x93c   : > { %4902 = vmatprep.subr.bf16.mxu0 %v8743_v4  ;;  %4934 = vmatprep.subr.bf16.mxu1 %v8744_v57 }
 0x93f   : > { %4904 = vmatpush3.bf16.msra.mxu0 %v8745_v52  ;;  %4936 = vmatpush3.bf16.msra.mxu1 %v8746_v13 }
 0x940   : > { %4310 = vmatprep.subr.msk.mxu0 %vm1720_vm9, %v8747_v48  ;;  %4316 = vmatprep.subr.msk.mxu1 %vm1720_vm9, %v8748_v12 }
 0x9f4   : > { %v3579_v59 = vpop.f32.mrb[56].mxu0  ;;  %v3668_v31 = vpop.f32.mrb[56].mxu1 }
 0x9f5   : > { %v7997_v19 = vsub.f32 %v7892_v36, %v3579_v59  ;;  %v8000_v61 = vsub.f32 %v7896_v39, %v3668_v31  ;;  %v3581_v18 = vpop.f32.mrb[57].mxu0  ;;  %v3670_v2 = vpop.f32.mrb[57].mxu1  ;;  %v8758_v39 = vld [vmem:[#allocation18_spill] sm:$0xff] }
 0x9f6   : > { %v8003_v43 = vsub.f32 %v7894_v6, %v3581_v18  ;;  %v8006_v15 = vsub.f32 %v7900_v60, %v3670_v2  ;;  %v8759_v60 = vld [vmem:[#allocation12_spill] sm:$0xff] }
 0x9f7   : > { %v3707_v37 = vmul.f32 %v7997_v19, %v7997_v19  ;;  %v3709_v7 = vmul.f32 %v8000_v61, %v8000_v61 }
 0x9f8   : > { %v3708_v10 = vmul.f32 %v8003_v43, %v8003_v43  ;;  %v3710_v53 = vmul.f32 %v8006_v15, %v8006_v15  ;;  %v3585_v30 = vpop.f32.mrb[58].mxu0  ;;  %v3674_v34 = vpop.f32.mrb[58].mxu1 }
 0x9f9   : > { %v8017_v42 = vsub.f32 %v7898_v38, %v3585_v30  ;;  %v8020_v25 = vsub.f32 %v7905_v44, %v3674_v34  ;;  %v3587_v3 = vpop.f32.mrb[59].mxu0  ;;  %v3676_v49 = vpop.f32.mrb[59].mxu1 }
 0x9fa   : > { %v8023_v20 = vsub.f32 %v7903_v17, %v3587_v3  ;;  %v8026_v0 = vsub.f32 %v7909_v46, %v3676_v49  ;;  %3787 = vmatprep.mubr.f32.mxu0 %v3708_v10  ;;  %3872 = vmatprep.mubr.f32.mxu1 %v3710_v53 }
 0x9fb   : > { %3788 = vmatmul.mubr.f32.vlgmr.msra.gmra.mrb[64].mxu0 %v3707_v37  ;;  %3873 = vmatmul.mubr.f32.vlgmr.msra.gmra.mrb[64].mxu1 %v3709_v7  ;;  %v3711_v52 = vmul.f32 %v8017_v42, %v8017_v42  ;;  %v3713_v13 = vmul.f32 %v8020_v25, %v8020_v25 }
 0x9fc   : > { %v3712_v22 = vmul.f32 %v8023_v20, %v8023_v20  ;;  %v3714_v35 = vmul.f32 %v8026_v0, %v8026_v0  ;;  %v3591_v4 = vpop.f32.mrb[60].mxu0  ;;  %v3680_v57 = vpop.f32.mrb[60].mxu1  ;;  %4311 = vmatpush1.msk.msra.mxu0 %vm1720_vm9, %v8749_v14  ;;  %4317 = vmatpush1.msk.msra.mxu1 %vm1720_vm9, %v8750_v55 }
 0x9fd   : > { %v8041_v48 = vsub.f32 %v7921_v9, %v3591_v4  ;;  %v8044_v12 = vsub.f32 %v7926_v54, %v3680_v57  ;;  %v3593_v36 = vpop.f32.mrb[61].mxu0  ;;  %v3682_v6 = vpop.f32.mrb[61].mxu1  ;;  %v8760_v54 = vld [vmem:[#allocation19_spill] sm:$0xff] }
 0x9fe   : > { %v8047_v38 = vsub.f32 %v8758_v39, %v3593_v36  ;;  %v8050_v17 = vsub.f32 %v8759_v60, %v3682_v6  ;;  %3792 = vmatprep.mubr.f32.mxu0 %v3712_v22  ;;  %3877 = vmatprep.mubr.f32.mxu1 %v3714_v35 }
 0x9ff   : > { %3793 = vmatmul.mubr.f32.gmra.mrb[66].mxu0 %v3711_v52  ;;  %3878 = vmatmul.mubr.f32.gmra.mrb[66].mxu1 %v3713_v13  ;;  %v3715_v9 = vmul.f32 %v8041_v48, %v8041_v48  ;;  %v3717_v62 = vmul.f32 %v8044_v12, %v8044_v12 }
 0xa00   : > { %v3716_v44 = vmul.f32 %v8047_v38, %v8047_v38  ;;  %v3718_v46 = vmul.f32 %v8050_v17, %v8050_v17  ;;  %v3597_v14 = vpop.f32.mrb[62].mxu0  ;;  %v3686_v55 = vpop.f32.mrb[62].mxu1 }
 0xa01   : > { %v8061_v51 = vsub.f32 %v8760_v54, %v3597_v14  ;;  %v8064_v23 = vsub.f32 %v8761_v28, %v3686_v55  ;;  %v3599_v32 = vpop.f32.mrb[63].mxu0  ;;  %v3688_v63 = vpop.f32.mrb[63].mxu1 }
 0xa02   : > { %v8067_v21 = vsub.f32 %v8762_v50, %v3599_v32  ;;  %v8070_v45 = vsub.f32 %v8763_v27, %v3688_v63  ;;  %3797 = vmatprep.mubr.f32.mxu0 %v3716_v44  ;;  %3882 = vmatprep.mubr.f32.mxu1 %v3718_v46 }
 0xa03   : > { %3798 = vmatmul.mubr.f32.gmra.mrb[68].mxu0 %v3715_v9  ;;  %3883 = vmatmul.mubr.f32.gmra.mrb[68].mxu1 %v3717_v62  ;;  %v3719_v8 = vmul.f32 %v8061_v51, %v8061_v51  ;;  %v3721_v56 = vmul.f32 %v8064_v23, %v8064_v23 }
 0xa04   : > { %v3720_v33 = vmul.f32 %v8067_v21, %v8067_v21  ;;  %v3722_v40 = vmul.f32 %v8070_v45, %v8070_v45 }
 0xa06   : > { %3802 = vmatprep.mubr.f32.mxu0 %v3720_v33  ;;  %3887 = vmatprep.mubr.f32.mxu1 %v3722_v40 }
 0xa07   : > { %3803 = vmatmul.mubr.f32.gmra.mrb[70].mxu0 %v3719_v8  ;;  %3888 = vmatmul.mubr.f32.gmra.mrb[70].mxu1 %v3721_v56 }
 0xa08   : > { %3981 = vmatprep.mubr.f32.mxu0 %v8757_v41  ;;  %4070 = vmatprep.mubr.f32.mxu1 %v8757_v41 }
 0xace   : > { %v4625_v29 = vpop.f32.mrb[64].mxu0  ;;  %v4669_v47 = vpop.f32.mrb[64].mxu1 }
 0xacf   : > { %v4626_v1 = vpop.f32.mrb[65].mxu0  ;;  %v4670_v16 = vpop.f32.mrb[65].mxu1 }
 0xad0   : > { %v4627_v58 = vadd.f32 %v4626_v1, %v4625_v29  ;;  %v4671_v24 = vadd.f32 %v4670_v16, %v4669_v47  ;;  %v5063_v1 = vld [vmem:[%s5272_s18 + $0x10] sm:$0xff] }
 0xad2   : > { %v3875_v11 = vadd.f32 %v4671_v24, %v4627_v58  ;;  %v4628_v26 = vpop.f32.mrb[66].mxu0  ;;  %v4672_v5 = vpop.f32.mrb[66].mxu1  ;;  %v5064_v58 = vld [vmem:[%s5272_s18 + $0x8] sm:$0xff] }
 0xad3   : > { %v4629_v59 = vpop.f32.mrb[67].mxu0  ;;  %v4673_v31 = vpop.f32.mrb[67].mxu1 }
 0xad4   : > { %v3893_v18 = vmul.f32 0.00390625, %v3875_v11  ;;  %v4630_v2 = vadd.f32 %v4629_v59, %v4628_v26  ;;  %v4674_v10 = vadd.f32 %v4673_v31, %v4672_v5  ;;  %v5065_v11 = vld [vmem:[%s5272_s18 + $0x18] sm:$0xff] }
 0xad6   : > { %v3897_v53 = vadd.f32 1e-05, %v3893_v18  ;;  %v3880_v30 = vadd.f32 %v4674_v10, %v4630_v2  ;;  %v4631_v34 = vpop.f32.mrb[68].mxu0  ;;  %v4675_v37 = vpop.f32.mrb[68].mxu1 }
 0xad7   : > { %v4632_v7 = vpop.f32.mrb[69].mxu0  ;;  %v4676_v3 = vpop.f32.mrb[69].mxu1 }
 0xad8   : > { %5047 = vrsqrt.f32 %v3897_v53  ;;  %v3894_v49 = vmul.f32 0.00390625, %v3880_v30  ;;  %v4633_v22 = vadd.f32 %v4632_v7, %v4631_v34  ;;  %v4677_v35 = vadd.f32 %v4676_v3, %v4675_v37  ;;  %v5067_v34 = vld [vmem:[%s5272_s18 + $0x30] sm:$0xff]  ;;  %v5068_v7 = vld [vmem:[%s5272_s18 + $0x28] sm:$0xff] }
 0xada   : > { %v3898_v4 = vadd.f32 1e-05, %v3894_v49  ;;  %v3885_v57 = vadd.f32 %v4677_v35, %v4633_v22  ;;  %v4634_v52 = vpop.f32.mrb[70].mxu0  ;;  %v4678_v13 = vpop.f32.mrb[70].mxu1 }
 0xadb   : > { %v4635_v36 = vpop.f32.mrb[71].mxu0  ;;  %v4679_v6 = vpop.f32.mrb[71].mxu1 }
 0xadc   : > { %5049 = vrsqrt.f32 %v3898_v4  ;;  %v3895_v39 = vmul.f32 0.00390625, %v3885_v57  ;;  %v4636_v60 = vadd.f32 %v4635_v36, %v4634_v52  ;;  %v4680_v44 = vadd.f32 %v4679_v6, %v4678_v13 }
 0xade   : > { %v3899_v46 = vadd.f32 1e-05, %v3895_v39  ;;  %v3890_v14 = vadd.f32 %v4680_v44, %v4636_v60 }
 0xae0   : > { %5051 = vrsqrt.f32 %v3899_v46  ;;  %v3896_v55 = vmul.f32 0.00390625, %v3890_v14  ;;  %v5070_v46 = vld [vmem:[%s5272_s18 + $0x40] sm:$0xff] }
 0xae2   : > { %v5048_v9 = vpop.eup %5047  ;;  %v3900_v62 = vadd.f32 1e-05, %v3896_v55  ;;  %v5071_v55 = vld [vmem:[%s5272_s18 + $0x50] sm:$0xff] }
 0xae3   : > { %4312 = vmatmul.mubr.msk.f32.vlgmr.msra.gmra.mrb[72].mxu0 %vm1707_vm10, %v5048_v9  ;;  %4318 = vmatmul.mubr.msk.f32.vlgmr.msra.gmra.mrb[72].mxu1 %vm1707_vm10, %v5048_v9 }
 0xae4   : > { %5053 = vrsqrt.f32 %v3900_v62  ;;  %3987 = vmatprep.mubr.f32.mxu0 %v8757_v41  ;;  %4076 = vmatprep.mubr.f32.mxu1 %v8757_v41  ;;  %v5073_v62 = vld [vmem:[%s5272_s18 + $0x58] sm:$0xff] }
 0xae6   : > { %v5050_v54 = vpop.eup %5049 }
 0xae7   : > { %4313 = vmatmul.mubr.msk.f32.gmra.mrb[74].mxu0 %vm1707_vm10, %v5050_v54  ;;  %4319 = vmatmul.mubr.msk.f32.gmra.mrb[74].mxu1 %vm1707_vm10, %v5050_v54 }
 0xae8   : > { %3993 = vmatprep.mubr.f32.mxu0 %v8757_v41  ;;  %4082 = vmatprep.mubr.f32.mxu1 %v8757_v41 }
 0xaea   : > { %v5052_v28 = vpop.eup %5051 }
 0xaeb   : > { %4314 = vmatmul.mubr.msk.f32.gmra.mrb[76].mxu0 %vm1707_vm10, %v5052_v28  ;;  %4320 = vmatmul.mubr.msk.f32.gmra.mrb[76].mxu1 %vm1707_vm10, %v5052_v28 }
 0xaec   : > { %3999 = vmatprep.mubr.f32.mxu0 %v8757_v41  ;;  %4088 = vmatprep.mubr.f32.mxu1 %v8757_v41  ;;  %v5062_v41 = vld [vmem:[%s5272_s18] sm:$0xff] }
 0xaee   : > { %v5054_v32 = vpop.eup %5053 }
 0xaef   : > { %4315 = vmatmul.mubr.msk.f32.gmra.mrb[78].mxu0 %vm1707_vm10, %v5054_v32  ;;  %4321 = vmatmul.mubr.msk.f32.gmra.mrb[78].mxu1 %vm1707_vm10, %v5054_v32 }
 0xbb6   : > { %v3983_v63 = vpop.f32.mrb[72].mxu0  ;;  %v4072_v50 = vpop.f32.mrb[72].mxu1 }
 0xbb7   : > { %v4095_v27 = vmul.f32 %v3983_v63, %v7997_v19  ;;  %v4097_v33 = vmul.f32 %v4072_v50, %v8000_v61  ;;  %v3985_v40 = vpop.f32.mrb[73].mxu0  ;;  %v4074_v8 = vpop.f32.mrb[73].mxu1 }
 0xbb8   : > { %v4096_v56 = vmul.f32 %v3985_v40, %v8003_v43  ;;  %v4098_v29 = vmul.f32 %v4074_v8, %v8006_v15 }
 0xbb9   : > { %v4111_v47 = vadd.f32 %v5062_v41, %v4095_v27  ;;  %v4113_v16 = vadd.f32 %v5063_v1, %v4097_v33  ;;  %v5076_v1 = vld [vmem:[%s5272_s18 + $0x68] sm:$0xff] }
 0xbba   : > { %v4112_v24 = vadd.f32 %v5064_v58, %v4096_v56  ;;  %v4114_v26 = vadd.f32 %v5065_v11, %v4098_v29  ;;  %v3989_v5 = vpop.f32.mrb[74].mxu0  ;;  %v4078_v19 = vpop.f32.mrb[74].mxu1 }
 0xbbb   : > { %v4127_v61 = vmax.f32 %v4111_v47, 0.0  ;;  %v4129_v59 = vmax.f32 %v4113_v16, 0.0  ;;  %v4099_v31 = vmul.f32 %v3989_v5, %v8017_v42  ;;  %v4101_v43 = vmul.f32 %v4078_v19, %v8020_v25  ;;  %v3991_v15 = vpop.f32.mrb[75].mxu0  ;;  %v4080_v18 = vpop.f32.mrb[75].mxu1  ;;  %v5066_v42 = vld [vmem:[%s5272_s18 + $0x20] sm:$0xff] }
 0xbbc   : > { %v4128_v2 = vmax.f32 %v4112_v24, 0.0  ;;  %v4130_v10 = vmax.f32 %v4114_v26, 0.0  ;;  %v4100_v53 = vmul.f32 %v3991_v15, %v8023_v20  ;;  %v4102_v30 = vmul.f32 %v4080_v18, %v8026_v0  ;;  %v5069_v20 = vld [vmem:[%s5272_s18 + $0x38] sm:$0xff] }
 0xbbd   : > { %4143 = vst [vmem:[%s8109_s29] sm:$0xff] %v4127_v61  ;;  %4145 = vst [vmem:[%s8109_s29 + $0x10] sm:$0xff] %v4129_v59  ;;  %v4115_v25 = vadd.f32 %v5066_v42, %v4099_v31  ;;  %v4117_v37 = vadd.f32 %v5067_v34, %v4101_v43 }
 0xbbe   : > { %4144 = vst [vmem:[%s8109_s29 + $0x8] sm:$0xff] %v4128_v2  ;;  %4146 = vst [vmem:[%s8109_s29 + $0x18] sm:$0xff] %v4130_v10  ;;  %v4116_v3 = vadd.f32 %v5068_v7, %v4100_v53  ;;  %v4118_v0 = vadd.f32 %v5069_v20, %v4102_v30  ;;  %v3995_v49 = vpop.f32.mrb[76].mxu0  ;;  %v4084_v22 = vpop.f32.mrb[76].mxu1 }
 0xbbf   : > { %v4131_v35 = vmax.f32 %v4115_v25, 0.0  ;;  %v4133_v4 = vmax.f32 %v4117_v37, 0.0  ;;  %v4103_v57 = vmul.f32 %v3995_v49, %v8041_v48  ;;  %v4105_v52 = vmul.f32 %v4084_v22, %v8044_v12  ;;  %v3997_v13 = vpop.f32.mrb[77].mxu0  ;;  %v4086_v36 = vpop.f32.mrb[77].mxu1  ;;  %v5072_v48 = vld [vmem:[%s5272_s18 + $0x48] sm:$0xff] }
 0xbc0   : > { %v4132_v6 = vmax.f32 %v4116_v3, 0.0  ;;  %v4134_v39 = vmax.f32 %v4118_v0, 0.0  ;;  %v4104_v60 = vmul.f32 %v3997_v13, %v8047_v38  ;;  %v4106_v44 = vmul.f32 %v4086_v36, %v8050_v17 }
 0xbc1   : > { %4147 = vst [vmem:[%s8109_s29 + $0x20] sm:$0xff] %v4131_v35  ;;  %4149 = vst [vmem:[%s8109_s29 + $0x30] sm:$0xff] %v4133_v4  ;;  %v4119_v14 = vadd.f32 %v5070_v46, %v4103_v57  ;;  %v4121_v9 = vadd.f32 %v5071_v55, %v4105_v52 }
 0xbc2   : > { %4148 = vst [vmem:[%s8109_s29 + $0x28] sm:$0xff] %v4132_v6  ;;  %4150 = vst [vmem:[%s8109_s29 + $0x38] sm:$0xff] %v4134_v39  ;;  %v4120_v12 = vadd.f32 %v5072_v48, %v4104_v60  ;;  %v4122_v54 = vadd.f32 %v5073_v62, %v4106_v44  ;;  %v4001_v28 = vpop.f32.mrb[78].mxu0  ;;  %v4090_v38 = vpop.f32.mrb[78].mxu1 }
 0xbc3   : > { %v4135_v17 = vmax.f32 %v4119_v14, 0.0  ;;  %v4137_v32 = vmax.f32 %v4121_v9, 0.0  ;;  %v4107_v63 = vmul.f32 %v4001_v28, %v8061_v51  ;;  %v4109_v50 = vmul.f32 %v4090_v38, %v8064_v23  ;;  %v4003_v27 = vpop.f32.mrb[79].mxu0  ;;  %v4092_v33 = vpop.f32.mrb[79].mxu1  ;;  %v5074_v51 = vld [vmem:[%s5272_s18 + $0x60] sm:$0xff]  ;;  %v5075_v23 = vld [vmem:[%s5272_s18 + $0x70] sm:$0xff] }
 0xbc4   : > { %v4136_v40 = vmax.f32 %v4120_v12, 0.0  ;;  %v4138_v8 = vmax.f32 %v4122_v54, 0.0  ;;  %v4108_v56 = vmul.f32 %v4003_v27, %v8067_v21  ;;  %v4110_v29 = vmul.f32 %v4092_v33, %v8070_v45  ;;  %v5077_v21 = vld [vmem:[%s5272_s18 + $0x78] sm:$0xff]  ;;  %s8765_s18 = sand.u32 1, %s5132_s22  }
 0xbc5   : > { %4151 = vst [vmem:[%s8109_s29 + $0x40] sm:$0xff] %v4135_v17  ;;  %4153 = vst [vmem:[%s8109_s29 + $0x50] sm:$0xff] %v4137_v32  ;;  %v4123_v41 = vadd.f32 %v5074_v51, %v4107_v63  ;;  %v4125_v47 = vadd.f32 %v5075_v23, %v4109_v50  ;;  %s8159_s14 = scalar_lea.sflag [#allocation5], %s8765_s18 }
 0xbc6   : > { %4152 = vst [vmem:[%s8109_s29 + $0x48] sm:$0xff] %v4136_v40  ;;  %4154 = vst [vmem:[%s8109_s29 + $0x58] sm:$0xff] %v4138_v8  ;;  %v4124_v16 = vadd.f32 %v5076_v1, %v4108_v56  ;;  %v4126_v58 = vadd.f32 %v5077_v21, %v4110_v29 }
 0xbc7   : > { %v4139_v45 = vmax.f32 %v4123_v41, 0.0  ;;  %v4141_v24 = vmax.f32 %v4125_v47, 0.0 }
 0xbc8   : > { %v4140_v11 = vmax.f32 %v4124_v16, 0.0  ;;  %v4142_v26 = vmax.f32 %v4126_v58, 0.0 }
 0xbc9   : > { %4155 = vst [vmem:[%s8109_s29 + $0x60] sm:$0xff] %v4139_v45  ;;  %4157 = vst [vmem:[%s8109_s29 + $0x70] sm:$0xff] %v4141_v24 }
 0xbca   : > { %4156 = vst [vmem:[%s8109_s29 + $0x68] sm:$0xff] %v4140_v11  ;;  %4158 = vst [vmem:[%s8109_s29 + $0x78] sm:$0xff] %v4142_v26 }
 0xbcb   : > { %5091 = shalt.err (!%p5088_p5)
}
 0xbcc   : > { %s5092_s28 = scalar_lea.hbm %s8149_s25, 2048  ;;  %s5096_s29 = scalar_lea.hbm %s8207_s6, 4096 }
 0xbcd   : > { %p5093_p7 = scmp.ne.s32.totalorder %s8149_s25, %s5092_s28  ;;  %p5097_p12 = scmp.lt.u32.totalorder %s8149_s25, %s8207_s6 }
 0xbce   : > { %p5098_p13 = scmp.lt.u32.totalorder %s5096_s29, %s5092_s28  ;;  %p5100_p1 = scmp.lt.u32.totalorder %s5092_s28, %s8149_s25 }
 0xbcf   : > { %p5094_p10 = pnand %p5093_p7, %p5230_p6 }
 0xbd0   : > { %p5099_p0 = por %p5098_p13, %p5097_p12 }
 0xbd1   : > { %p5095_p11 = pneg %p5094_p10 }
 0xbd2   : > { %p5101_p2 = por %p5100_p1, %p5099_p0 }
 0xbd4   : > { %p5102_p3 = pnand %p5101_p2, %p5095_p11 }
 0xbd6   : > { %5105 = shalt.err (!%p5102_p3)
}
 0xbd7   : > { %s5154_s11 = smov 512   ;;  %s5155_s12 = smov 1024  }
 0xbd8   : > { %s5156_s18 = smov 32  }
 0xbd9   : > { %4969 = dma.vmem_to_hbm [thread:$0]  (%p5230_p6), %s8151_s16, 2048, %s8149_s25, %s8159_s14, %s5154_s11, %s5155_s12, %s5156_s18  }
 0xbda PF: > { %s4188_s15 = sand.u32 1, %s5128_s21   ;;  %p4972_p4 = pnand %p4243_p9, %p5234_p8 }
 0xbdb   : > { %s4189_s19 = scalar_lea.sflag [#allocation5], %s4188_s15 }
 0xbdc   : > { %5123 = dma.done.wait (!%p4972_p4), %s4189_s19, 2048  }
 0xbdd   : > { %5125 = vsyncadd (!%p4972_p4), %s4189_s19, 4294965248  ;;  %p16_p5 = scmp.ge.s32.totalorder %s5215_s27, 4   ;;  %s8766_s21 = smov %s5132_s22 }
 0xbde   : > { %s8767_s22 = smov %s5136_s23  ;;  %s8768_s23 = smov %s5228_s30 }
 0xbdf   : > { %s8769_s24 = smov %s5215_s27  ;;  %18 = sbr.rel (!%p16_p5) target bundleno = 3 (0x3), region = 107 }
 0xbe6   :  { %4194 = vsyncpa [#allocation5], 1 }
 0xbe7   :  { %4196 = vsyncpa [#allocation5 + $0x1], 1 }

</bundles_post_ra>
